<compile_context>
chip_gen: v7x
topology: tpu7x:2x2x1
jax: 0.10.0
libtpu: 0.0.40
codegen_flags: <defaults>
</compile_context>

<pallas_src>
import math

import jax
import jax.numpy as jnp
from jax.experimental import pallas as pl
from jax.experimental.pallas import tpu as pltpu

# ----- problem sizes (small, consistent with a BERT-style encoder) -----------
B = 2            # batch
S = 8            # number of visual tokens (sequence length)
H = 32           # hidden size
NUM_HEADS = 4
HEAD_DIM = H // NUM_HEADS
INTER = 64       # intermediate (FFN) size
NUM_LAYERS = 2   # cfg.MODEL.BERT.NUM_HIDDEN_LAYERS
LN_EPS = 1e-12   # BertLayerNorm eps
BS = B * S
NEG_INF = -1e9   # cross-batch attention blocker (block-diagonal mask)


# ----- in-kernel math helpers -------------------------------------------------
def _gelu_tanh(x):
    # tanh-approx GELU: one EUP tanh + a few VALU ops (EUP slot is otherwise idle).
    c = math.sqrt(2.0 / math.pi)
    return 0.5 * x * (1.0 + jnp.tanh(c * (x + 0.044715 * x * x * x)))


def _layernorm(x, gamma, beta):
    mean = jnp.mean(x, axis=-1, keepdims=True)
    var = jnp.mean((x - mean) ** 2, axis=-1, keepdims=True)
    return (x - mean) * jax.lax.rsqrt(var + LN_EPS) * gamma + beta


# ----- Pallas kernel: whole BertLayer stack in one invocation -----------------
def encoder_kernel(x_ref, mask_ref,
                   wq_ref, wk_ref, wv_ref, bq_ref, bk_ref, bv_ref,
                   wo_ref, vecs_ref, wi_ref, bi_ref, wo2_ref,
                   out_ref):
    x = x_ref[...]                       # (B*S, H) f32 activation, carried in-register
    mask = mask_ref[...]                 # (B*S, B*S) f32 block-diagonal additive mask
    scale = 1.0 / math.sqrt(HEAD_DIM)

    for l in range(NUM_LAYERS):          # static unroll; all weights VMEM-resident
        xb = x.astype(jnp.bfloat16)      # bf16 matmul inputs, f32 accumulation

        # Packed small vectors: rows = [bo, ln1_g, ln1_b, bo2, ln2_g, ln2_b]
        vecs = vecs_ref[l]               # (6, H) f32
        bo, g1, b1 = vecs[0:1, :], vecs[1:2, :], vecs[2:3, :]
        bo2, g2, b2 = vecs[3:4, :], vecs[4:5, :], vecs[5:6, :]

        # ---- multi-head self-attention (per-head weights; no lane slicing) ----
        attn = jnp.zeros((BS, H), jnp.float32)
        for h in range(NUM_HEADS):       # static unroll over 4 tiny heads
            qh = jnp.dot(xb, wq_ref[l, h],
                         preferred_element_type=jnp.float32) + bq_ref[l, h]
            kh = jnp.dot(xb, wk_ref[l, h],
                         preferred_element_type=jnp.float32) + bk_ref[l, h]
            vh = jnp.dot(xb, wv_ref[l, h],
                         preferred_element_type=jnp.float32) + bv_ref[l, h]

            # q @ k^T without an explicit transpose (contract the head dim).
            s = jax.lax.dot_general(qh, kh, (((1,), (1,)), ((), ())),
                                    preferred_element_type=jnp.float32)
            s = s * scale + mask                      # block-diag + extended mask
            s = s - jnp.max(s, axis=-1, keepdims=True)
            p = jnp.exp(s)
            # EUP approximate reciprocal instead of a VALU divide.
            p = p * pl.reciprocal(jnp.sum(p, axis=-1, keepdims=True), approx=True)

            ctx = jnp.dot(p.astype(jnp.bfloat16), vh.astype(jnp.bfloat16),
                          preferred_element_type=jnp.float32)     # (BS, D)
            # Output projection is row-split per head: attn = Σ_h ctx_h @ Wo_h.
            attn = attn + jnp.dot(ctx.astype(jnp.bfloat16), wo_ref[l, h],
                                  preferred_element_type=jnp.float32)

        h1 = _layernorm(attn + bo + x, g1, b1)

        # ---- feed-forward (tanh GELU) + residual + LayerNorm ----
        h1b = h1.astype(jnp.bfloat16)
        inter = _gelu_tanh(jnp.dot(h1b, wi_ref[l],
                                   preferred_element_type=jnp.float32) + bi_ref[l])
        ffn = jnp.dot(inter.astype(jnp.bfloat16), wo2_ref[l],
                      preferred_element_type=jnp.float32) + bo2
        x = _layernorm(ffn + h1, g2, b2)

    out_ref[...] = x.astype(out_ref.dtype)


def transformer_encoder_pallas(att_feats, ext_att_masks, packed_params):
    (wq, wk, wv, bq, bk, bv, wo, vecs, wi, bi, wo2) = packed_params

    # Fold batch into the row dimension: (B, S, H) -> (B*S, H).
    x2d = att_feats.reshape(BS, H)

    # Build the (B*S, B*S) additive mask: within-batch columns get the BERT
    # extended mask (0 / -10000), cross-batch columns get -1e9 so attention is
    # exactly block-diagonal (identical to per-batch attention).
    ext = ext_att_masks[:, 0, :]                                   # (B, S)
    same = jnp.eye(B, dtype=bool)                                  # (B, B)
    mask2d = jnp.where(same[:, None, :, None], ext[None, None, :, :],
                       jnp.float32(NEG_INF))                       # (B, 1, B, S)
    mask2d = jnp.broadcast_to(mask2d, (B, S, B, S)).reshape(BS, BS)

    vmem = pltpu.MemorySpace.VMEM
    in_specs = [pl.BlockSpec(memory_space=vmem) for _ in range(13)]

    out2d = pl.pallas_call(
        encoder_kernel,
        out_shape=jax.ShapeDtypeStruct((BS, H), att_feats.dtype),
        in_specs=in_specs,
        out_specs=pl.BlockSpec(memory_space=vmem),
        cost_estimate=pl.CostEstimate(flops=600_000, transcendentals=4_300,
                                      bytes_accessed=40_000),
    )(x2d, mask2d, wq, wk, wv, bq, bk, bv, wo, vecs, wi, bi, wo2)

    return out2d.reshape(B, S, H)


@jax.jit
def transformer_encoder(att_feats, ext_att_masks, packed_params):
    vfeats = transformer_encoder_pallas(att_feats, ext_att_masks, packed_params)
    # mirrors ret.update({kfg.ATT_FEATS: vfeats, kfg.EXT_ATT_MASKS: ext_vmasks})
    return {"ATT_FEATS": vfeats, "EXT_ATT_MASKS": ext_att_masks}


# ----- parameter construction (deterministic, synthetic) ----------------------
def init_layer_params(key):
    ks = jax.random.split(key, 6)

    def dense(k, din, dout):
        w = jax.random.normal(k, (din, dout), jnp.float32) * 0.02
        b = jnp.zeros((1, dout), jnp.float32)
        return w, b

    wq, bq = dense(ks[0], H, H)
    wk, bk = dense(ks[1], H, H)
    wv, bv = dense(ks[2], H, H)
    wo, bo = dense(ks[3], H, H)
    g1, b1 = jnp.ones((1, H), jnp.float32), jnp.zeros((1, H), jnp.float32)
    wi, bi = dense(ks[4], H, INTER)
    wo2, bo2 = dense(ks[5], INTER, H)
    g2, b2 = jnp.ones((1, H), jnp.float32), jnp.zeros((1, H), jnp.float32)
    return (wq, bq, wk, bk, wv, bv, wo, bo, g1, b1, wi, bi, wo2, bo2, g2, b2)


def pack_params(per_layer):
    """Stack per-layer params, split attention weights per head, cast matmul
    weights to bf16 (biases / LayerNorm params stay f32)."""
    stacked = [jnp.stack([layer[i] for layer in per_layer], axis=0) for i in range(16)]
    (wq, bq, wk, bk, wv, bv, wo, bo, g1, b1,
     wi, bi, wo2, bo2, g2, b2) = stacked

    def heads_w(w):   # (L, H, H) -> (L, NH, H, D): column-blocks of the projection
        return jnp.transpose(w.reshape(NUM_LAYERS, H, NUM_HEADS, HEAD_DIM), (0, 2, 1, 3))

    def heads_b(b):   # (L, 1, H) -> (L, NH, 1, D)
        return jnp.transpose(b.reshape(NUM_LAYERS, 1, NUM_HEADS, HEAD_DIM), (0, 2, 1, 3))

    bf16 = jnp.bfloat16
    wq_h = heads_w(wq).astype(bf16)
    wk_h = heads_w(wk).astype(bf16)
    wv_h = heads_w(wv).astype(bf16)
    bq_h, bk_h, bv_h = heads_b(bq), heads_b(bk), heads_b(bv)
    # Output projection split along its rows (rows index the concatenated head ctx).
    wo_h = wo.reshape(NUM_LAYERS, NUM_HEADS, HEAD_DIM, H).astype(bf16)
    vecs = jnp.concatenate([bo, g1, b1, bo2, g2, b2], axis=1)      # (L, 6, H) f32
    return (wq_h, wk_h, wv_h, bq_h, bk_h, bv_h, wo_h, vecs,
            wi.astype(bf16), bi, wo2.astype(bf16))


# ----- pure-JAX reference (for a sanity check) --------------------------------
def _reference_encoder(x, ext_mask, per_layer):
    def ln(t, g, b):
        m = jnp.mean(t, axis=-1, keepdims=True)
        v = jnp.mean((t - m) ** 2, axis=-1, keepdims=True)
        return (t - m) * jax.lax.rsqrt(v + LN_EPS) * g + b

    def gelu(t):
        return 0.5 * t * (1.0 + jax.scipy.special.erf(t / math.sqrt(2.0)))

    for (wq, bq, wk, bk, wv, bv, wo, bo, g1, b1,
         wi, bi, wo2, bo2, g2, b2) in per_layer:
        q = x @ wq + bq
        k = x @ wk + bk
        v = x @ wv + bv

        def split(t):
            return t.reshape(B, S, NUM_HEADS, HEAD_DIM).transpose(0, 2, 1, 3)

        qh, kh, vh = split(q), split(k), split(v)
        scores = (qh @ kh.transpose(0, 1, 3, 2)) / math.sqrt(HEAD_DIM)
        scores = scores + ext_mask[:, :, None, :]
        p = jax.nn.softmax(scores, axis=-1)
        ctx = (p @ vh).transpose(0, 2, 1, 3).reshape(B, S, H)
        h1 = ln(ctx @ wo + bo + x, g1, b1)
        ffn = gelu(h1 @ wi + bi) @ wo2 + bo2
        x = ln(ffn + h1, g2, b2)
    return x


if __name__ == "__main__":
    key = jax.random.PRNGKey(0)
    k_feat, k_params = jax.random.split(key, 2)

    att_feats = jax.random.normal(k_feat, (B, S, H), jnp.float32)
    # binary visual mask (1 = keep), last 2 tokens of batch 1 padded out;
    # extended additive mask = (1 - mask) * -10000, stored as [B, 1, S].
    masks = jnp.ones((B, S), jnp.float32).at[1, -2:].set(0.0)
    ext_att_masks = ((1.0 - masks) * -10000.0).reshape(B, 1, S)

    layer_keys = jax.random.split(k_params, NUM_LAYERS)
    per_layer = tuple(init_layer_params(k) for k in layer_keys)
    packed = pack_params(per_layer)

    out = transformer_encoder(att_feats, ext_att_masks, packed)
    jax.block_until_ready(out)

    assert out["ATT_FEATS"].shape == (B, S, H)
    assert out["ATT_FEATS"].dtype == jnp.float32
    assert bool(jnp.all(jnp.isfinite(out["ATT_FEATS"])))

    ref = _reference_encoder(att_feats, ext_att_masks, per_layer)
    max_err = float(jnp.max(jnp.abs(out["ATT_FEATS"] - ref)))
    assert max_err < 3e-2, f"mismatch vs reference: max abs err {max_err}"

    print("KERNEL_OK")
</pallas_src>

<mosaic_0001>
module attributes {stable_mosaic.version = 11 : i64} {
  func.func @encoder_kernel(%arg0: memref<16x32xf32, #tpu.memory_space<vmem>>, %arg1: memref<16x16xf32, #tpu.memory_space<vmem>>, %arg2: memref<2x4x32x8xbf16, #tpu.memory_space<vmem>>, %arg3: memref<2x4x32x8xbf16, #tpu.memory_space<vmem>>, %arg4: memref<2x4x32x8xbf16, #tpu.memory_space<vmem>>, %arg5: memref<2x4x1x8xf32, #tpu.memory_space<vmem>>, %arg6: memref<2x4x1x8xf32, #tpu.memory_space<vmem>>, %arg7: memref<2x4x1x8xf32, #tpu.memory_space<vmem>>, %arg8: memref<2x4x8x32xbf16, #tpu.memory_space<vmem>>, %arg9: memref<2x6x32xf32, #tpu.memory_space<vmem>>, %arg10: memref<2x32x64xbf16, #tpu.memory_space<vmem>>, %arg11: memref<2x1x64xf32, #tpu.memory_space<vmem>>, %arg12: memref<2x64x32xbf16, #tpu.memory_space<vmem>>, %arg13: memref<16x32xf32, #tpu.memory_space<vmem>>) attributes {dimension_semantics = [], scalar_prefetch = 0 : i64, scratch_operands = 0 : i64, tpu.core_type = #tpu.core_type<tc>} {
    %c0 = arith.constant 0 : index
    %c0_0 = arith.constant 0 : index
    %0 = vector.load %arg0[%c0, %c0_0] : memref<16x32xf32, #tpu.memory_space<vmem>>, vector<16x32xf32>
    %c0_1 = arith.constant 0 : index
    %c0_2 = arith.constant 0 : index
    %1 = vector.load %arg1[%c0_1, %c0_2] : memref<16x16xf32, #tpu.memory_space<vmem>>, vector<16x16xf32>
    %2 = arith.truncf %0 : vector<16x32xf32> to vector<16x32xbf16>
    %c0_3 = arith.constant 0 : index
    %c0_4 = arith.constant 0 : index
    %c0_5 = arith.constant 0 : index
    %3 = vector.load %arg9[%c0_3, %c0_4, %c0_5] : memref<2x6x32xf32, #tpu.memory_space<vmem>>, vector<1x6x32xf32>
    %4 = vector.shape_cast %3 : vector<1x6x32xf32> to vector<6x32xf32>
    %5 = vector.extract_strided_slice %4 {offsets = [0, 0], sizes = [1, 32], strides = [1, 1]} : vector<6x32xf32> to vector<1x32xf32>
    %6 = vector.extract_strided_slice %4 {offsets = [1, 0], sizes = [1, 32], strides = [1, 1]} : vector<6x32xf32> to vector<1x32xf32>
    %7 = vector.extract_strided_slice %4 {offsets = [2, 0], sizes = [1, 32], strides = [1, 1]} : vector<6x32xf32> to vector<1x32xf32>
    %8 = vector.extract_strided_slice %4 {offsets = [3, 0], sizes = [1, 32], strides = [1, 1]} : vector<6x32xf32> to vector<1x32xf32>
    %9 = vector.extract_strided_slice %4 {offsets = [4, 0], sizes = [1, 32], strides = [1, 1]} : vector<6x32xf32> to vector<1x32xf32>
    %10 = vector.extract_strided_slice %4 {offsets = [5, 0], sizes = [1, 32], strides = [1, 1]} : vector<6x32xf32> to vector<1x32xf32>
    %cst = arith.constant 0.000000e+00 : f32
    %11 = vector.broadcast %cst : f32 to vector<16x32xf32>
    %c0_6 = arith.constant 0 : index
    %c0_7 = arith.constant 0 : index
    %c0_8 = arith.constant 0 : index
    %c0_9 = arith.constant 0 : index
    %12 = vector.load %arg2[%c0_6, %c0_7, %c0_8, %c0_9] : memref<2x4x32x8xbf16, #tpu.memory_space<vmem>>, vector<1x1x32x8xbf16>
    %13 = vector.shape_cast %12 : vector<1x1x32x8xbf16> to vector<32x8xbf16>
    %cst_10 = arith.constant dense<0.000000e+00> : vector<16x8xf32>
    %14 = tpu.matmul %2, %13, %cst_10 {dimension_numbers = #tpu.dot_dimension_numbers<[1], [0], [0], [1], [0, 0, 1, 1], [], []>} : vector<16x32xbf16>, vector<32x8xbf16>, vector<16x8xf32> -> vector<16x8xf32>
    %c0_11 = arith.constant 0 : index
    %c0_12 = arith.constant 0 : index
    %c0_13 = arith.constant 0 : index
    %c0_14 = arith.constant 0 : index
    %15 = vector.load %arg5[%c0_11, %c0_12, %c0_13, %c0_14] : memref<2x4x1x8xf32, #tpu.memory_space<vmem>>, vector<1x1x1x8xf32>
    %16 = vector.shape_cast %15 : vector<1x1x1x8xf32> to vector<1x8xf32>
    %17 = vector.broadcast %16 : vector<1x8xf32> to vector<16x8xf32>
    %18 = arith.addf %14, %17 : vector<16x8xf32>
    %c0_15 = arith.constant 0 : index
    %c0_16 = arith.constant 0 : index
    %c0_17 = arith.constant 0 : index
    %c0_18 = arith.constant 0 : index
    %19 = vector.load %arg3[%c0_15, %c0_16, %c0_17, %c0_18] : memref<2x4x32x8xbf16, #tpu.memory_space<vmem>>, vector<1x1x32x8xbf16>
    %20 = vector.shape_cast %19 : vector<1x1x32x8xbf16> to vector<32x8xbf16>
    %cst_19 = arith.constant dense<0.000000e+00> : vector<16x8xf32>
    %21 = tpu.matmul %2, %20, %cst_19 {dimension_numbers = #tpu.dot_dimension_numbers<[1], [0], [0], [1], [0, 0, 1, 1], [], []>} : vector<16x32xbf16>, vector<32x8xbf16>, vector<16x8xf32> -> vector<16x8xf32>
    %c0_20 = arith.constant 0 : index
    %c0_21 = arith.constant 0 : index
    %c0_22 = arith.constant 0 : index
    %c0_23 = arith.constant 0 : index
    %22 = vector.load %arg6[%c0_20, %c0_21, %c0_22, %c0_23] : memref<2x4x1x8xf32, #tpu.memory_space<vmem>>, vector<1x1x1x8xf32>
    %23 = vector.shape_cast %22 : vector<1x1x1x8xf32> to vector<1x8xf32>
    %24 = vector.broadcast %23 : vector<1x8xf32> to vector<16x8xf32>
    %25 = arith.addf %21, %24 : vector<16x8xf32>
    %c0_24 = arith.constant 0 : index
    %c0_25 = arith.constant 0 : index
    %c0_26 = arith.constant 0 : index
    %c0_27 = arith.constant 0 : index
    %26 = vector.load %arg4[%c0_24, %c0_25, %c0_26, %c0_27] : memref<2x4x32x8xbf16, #tpu.memory_space<vmem>>, vector<1x1x32x8xbf16>
    %27 = vector.shape_cast %26 : vector<1x1x32x8xbf16> to vector<32x8xbf16>
    %cst_28 = arith.constant dense<0.000000e+00> : vector<16x8xf32>
    %28 = tpu.matmul %2, %27, %cst_28 {dimension_numbers = #tpu.dot_dimension_numbers<[1], [0], [0], [1], [0, 0, 1, 1], [], []>} : vector<16x32xbf16>, vector<32x8xbf16>, vector<16x8xf32> -> vector<16x8xf32>
    %c0_29 = arith.constant 0 : index
    %c0_30 = arith.constant 0 : index
    %c0_31 = arith.constant 0 : index
    %c0_32 = arith.constant 0 : index
    %29 = vector.load %arg7[%c0_29, %c0_30, %c0_31, %c0_32] : memref<2x4x1x8xf32, #tpu.memory_space<vmem>>, vector<1x1x1x8xf32>
    %30 = vector.shape_cast %29 : vector<1x1x1x8xf32> to vector<1x8xf32>
    %31 = vector.broadcast %30 : vector<1x8xf32> to vector<16x8xf32>
    %32 = arith.addf %28, %31 : vector<16x8xf32>
    %cst_33 = arith.constant dense<0.000000e+00> : vector<16x16xf32>
    %33 = tpu.matmul %18, %25, %cst_33 {dimension_numbers = #tpu.dot_dimension_numbers<[1], [1], [0], [0], [0, 0, 1, 0], [], []>} : vector<16x8xf32>, vector<16x8xf32>, vector<16x16xf32> -> vector<16x16xf32>
    %cst_34 = arith.constant 0.353553385 : f32
    %34 = vector.broadcast %cst_34 : f32 to vector<16x16xf32>
    %35 = arith.mulf %33, %34 : vector<16x16xf32>
    %36 = arith.addf %35, %1 : vector<16x16xf32>
    %cst_35 = arith.constant dense<0xFF800000> : vector<16xf32>
    %37 = vector.multi_reduction <maximumf>, %36, %cst_35 [1] : vector<16x16xf32> to vector<16xf32>
    %38 = vector.shape_cast %37 : vector<16xf32> to vector<16x1xf32>
    %39 = vector.broadcast %38 : vector<16x1xf32> to vector<16x16xf32>
    %40 = arith.subf %36, %39 : vector<16x16xf32>
    %41 = math.exp %40 : vector<16x16xf32>
    %cst_36 = arith.constant dense<0.000000e+00> : vector<16xf32>
    %42 = vector.multi_reduction <add>, %41, %cst_36 [1] : vector<16x16xf32> to vector<16xf32>
    %43 = vector.shape_cast %42 : vector<16xf32> to vector<16x1xf32>
    %44 = tpu.reciprocal %43 {approx = true} : vector<16x1xf32> -> vector<16x1xf32>
    %45 = vector.broadcast %44 : vector<16x1xf32> to vector<16x16xf32>
    %46 = arith.mulf %41, %45 : vector<16x16xf32>
    %47 = arith.truncf %46 : vector<16x16xf32> to vector<16x16xbf16>
    %48 = arith.truncf %32 : vector<16x8xf32> to vector<16x8xbf16>
    %cst_37 = arith.constant dense<0.000000e+00> : vector<16x8xf32>
    %49 = tpu.matmul %47, %48, %cst_37 {dimension_numbers = #tpu.dot_dimension_numbers<[1], [0], [0], [1], [0, 0, 1, 1], [], []>} : vector<16x16xbf16>, vector<16x8xbf16>, vector<16x8xf32> -> vector<16x8xf32>
    %50 = arith.truncf %49 : vector<16x8xf32> to vector<16x8xbf16>
    %c0_38 = arith.constant 0 : index
    %c0_39 = arith.constant 0 : index
    %c0_40 = arith.constant 0 : index
    %c0_41 = arith.constant 0 : index
    %51 = vector.load %arg8[%c0_38, %c0_39, %c0_40, %c0_41] : memref<2x4x8x32xbf16, #tpu.memory_space<vmem>>, vector<1x1x8x32xbf16>
    %52 = vector.shape_cast %51 : vector<1x1x8x32xbf16> to vector<8x32xbf16>
    %cst_42 = arith.constant dense<0.000000e+00> : vector<16x32xf32>
    %53 = tpu.matmul %50, %52, %cst_42 {dimension_numbers = #tpu.dot_dimension_numbers<[1], [0], [0], [1], [0, 0, 1, 1], [], []>} : vector<16x8xbf16>, vector<8x32xbf16>, vector<16x32xf32> -> vector<16x32xf32>
    %54 = arith.addf %11, %53 : vector<16x32xf32>
    %c0_43 = arith.constant 0 : index
    %c1 = arith.constant 1 : index
    %c0_44 = arith.constant 0 : index
    %c0_45 = arith.constant 0 : index
    %55 = vector.load %arg2[%c0_43, %c1, %c0_44, %c0_45] : memref<2x4x32x8xbf16, #tpu.memory_space<vmem>>, vector<1x1x32x8xbf16>
    %56 = vector.shape_cast %55 : vector<1x1x32x8xbf16> to vector<32x8xbf16>
    %cst_46 = arith.constant dense<0.000000e+00> : vector<16x8xf32>
    %57 = tpu.matmul %2, %56, %cst_46 {dimension_numbers = #tpu.dot_dimension_numbers<[1], [0], [0], [1], [0, 0, 1, 1], [], []>} : vector<16x32xbf16>, vector<32x8xbf16>, vector<16x8xf32> -> vector<16x8xf32>
    %c0_47 = arith.constant 0 : index
    %c1_48 = arith.constant 1 : index
    %c0_49 = arith.constant 0 : index
    %c0_50 = arith.constant 0 : index
    %58 = vector.load %arg5[%c0_47, %c1_48, %c0_49, %c0_50] : memref<2x4x1x8xf32, #tpu.memory_space<vmem>>, vector<1x1x1x8xf32>
    %59 = vector.shape_cast %58 : vector<1x1x1x8xf32> to vector<1x8xf32>
    %60 = vector.broadcast %59 : vector<1x8xf32> to vector<16x8xf32>
    %61 = arith.addf %57, %60 : vector<16x8xf32>
    %c0_51 = arith.constant 0 : index
    %c1_52 = arith.constant 1 : index
    %c0_53 = arith.constant 0 : index
    %c0_54 = arith.constant 0 : index
    %62 = vector.load %arg3[%c0_51, %c1_52, %c0_53, %c0_54] : memref<2x4x32x8xbf16, #tpu.memory_space<vmem>>, vector<1x1x32x8xbf16>
    %63 = vector.shape_cast %62 : vector<1x1x32x8xbf16> to vector<32x8xbf16>
    %cst_55 = arith.constant dense<0.000000e+00> : vector<16x8xf32>
    %64 = tpu.matmul %2, %63, %cst_55 {dimension_numbers = #tpu.dot_dimension_numbers<[1], [0], [0], [1], [0, 0, 1, 1], [], []>} : vector<16x32xbf16>, vector<32x8xbf16>, vector<16x8xf32> -> vector<16x8xf32>
    %c0_56 = arith.constant 0 : index
    %c1_57 = arith.constant 1 : index
    %c0_58 = arith.constant 0 : index
    %c0_59 = arith.constant 0 : index
    %65 = vector.load %arg6[%c0_56, %c1_57, %c0_58, %c0_59] : memref<2x4x1x8xf32, #tpu.memory_space<vmem>>, vector<1x1x1x8xf32>
    %66 = vector.shape_cast %65 : vector<1x1x1x8xf32> to vector<1x8xf32>
    %67 = vector.broadcast %66 : vector<1x8xf32> to vector<16x8xf32>
    %68 = arith.addf %64, %67 : vector<16x8xf32>
    %c0_60 = arith.constant 0 : index
    %c1_61 = arith.constant 1 : index
    %c0_62 = arith.constant 0 : index
    %c0_63 = arith.constant 0 : index
    %69 = vector.load %arg4[%c0_60, %c1_61, %c0_62, %c0_63] : memref<2x4x32x8xbf16, #tpu.memory_space<vmem>>, vector<1x1x32x8xbf16>
    %70 = vector.shape_cast %69 : vector<1x1x32x8xbf16> to vector<32x8xbf16>
    %cst_64 = arith.constant dense<0.000000e+00> : vector<16x8xf32>
    %71 = tpu.matmul %2, %70, %cst_64 {dimension_numbers = #tpu.dot_dimension_numbers<[1], [0], [0], [1], [0, 0, 1, 1], [], []>} : vector<16x32xbf16>, vector<32x8xbf16>, vector<16x8xf32> -> vector<16x8xf32>
    %c0_65 = arith.constant 0 : index
    %c1_66 = arith.constant 1 : index
    %c0_67 = arith.constant 0 : index
    %c0_68 = arith.constant 0 : index
    %72 = vector.load %arg7[%c0_65, %c1_66, %c0_67, %c0_68] : memref<2x4x1x8xf32, #tpu.memory_space<vmem>>, vector<1x1x1x8xf32>
    %73 = vector.shape_cast %72 : vector<1x1x1x8xf32> to vector<1x8xf32>
    %74 = vector.broadcast %73 : vector<1x8xf32> to vector<16x8xf32>
    %75 = arith.addf %71, %74 : vector<16x8xf32>
    %cst_69 = arith.constant dense<0.000000e+00> : vector<16x16xf32>
    %76 = tpu.matmul %61, %68, %cst_69 {dimension_numbers = #tpu.dot_dimension_numbers<[1], [1], [0], [0], [0, 0, 1, 0], [], []>} : vector<16x8xf32>, vector<16x8xf32>, vector<16x16xf32> -> vector<16x16xf32>
    %cst_70 = arith.constant 0.353553385 : f32
    %77 = vector.broadcast %cst_70 : f32 to vector<16x16xf32>
    %78 = arith.mulf %76, %77 : vector<16x16xf32>
    %79 = arith.addf %78, %1 : vector<16x16xf32>
    %cst_71 = arith.constant dense<0xFF800000> : vector<16xf32>
    %80 = vector.multi_reduction <maximumf>, %79, %cst_71 [1] : vector<16x16xf32> to vector<16xf32>
    %81 = vector.shape_cast %80 : vector<16xf32> to vector<16x1xf32>
    %82 = vector.broadcast %81 : vector<16x1xf32> to vector<16x16xf32>
    %83 = arith.subf %79, %82 : vector<16x16xf32>
    %84 = math.exp %83 : vector<16x16xf32>
    %cst_72 = arith.constant dense<0.000000e+00> : vector<16xf32>
    %85 = vector.multi_reduction <add>, %84, %cst_72 [1] : vector<16x16xf32> to vector<16xf32>
    %86 = vector.shape_cast %85 : vector<16xf32> to vector<16x1xf32>
    %87 = tpu.reciprocal %86 {approx = true} : vector<16x1xf32> -> vector<16x1xf32>
    %88 = vector.broadcast %87 : vector<16x1xf32> to vector<16x16xf32>
    %89 = arith.mulf %84, %88 : vector<16x16xf32>
    %90 = arith.truncf %89 : vector<16x16xf32> to vector<16x16xbf16>
    %91 = arith.truncf %75 : vector<16x8xf32> to vector<16x8xbf16>
    %cst_73 = arith.constant dense<0.000000e+00> : vector<16x8xf32>
    %92 = tpu.matmul %90, %91, %cst_73 {dimension_numbers = #tpu.dot_dimension_numbers<[1], [0], [0], [1], [0, 0, 1, 1], [], []>} : vector<16x16xbf16>, vector<16x8xbf16>, vector<16x8xf32> -> vector<16x8xf32>
    %93 = arith.truncf %92 : vector<16x8xf32> to vector<16x8xbf16>
    %c0_74 = arith.constant 0 : index
    %c1_75 = arith.constant 1 : index
    %c0_76 = arith.constant 0 : index
    %c0_77 = arith.constant 0 : index
    %94 = vector.load %arg8[%c0_74, %c1_75, %c0_76, %c0_77] : memref<2x4x8x32xbf16, #tpu.memory_space<vmem>>, vector<1x1x8x32xbf16>
    %95 = vector.shape_cast %94 : vector<1x1x8x32xbf16> to vector<8x32xbf16>
    %cst_78 = arith.constant dense<0.000000e+00> : vector<16x32xf32>
    %96 = tpu.matmul %93, %95, %cst_78 {dimension_numbers = #tpu.dot_dimension_numbers<[1], [0], [0], [1], [0, 0, 1, 1], [], []>} : vector<16x8xbf16>, vector<8x32xbf16>, vector<16x32xf32> -> vector<16x32xf32>
    %97 = arith.addf %54, %96 : vector<16x32xf32>
    %c0_79 = arith.constant 0 : index
    %c2 = arith.constant 2 : index
    %c0_80 = arith.constant 0 : index
    %c0_81 = arith.constant 0 : index
    %98 = vector.load %arg2[%c0_79, %c2, %c0_80, %c0_81] : memref<2x4x32x8xbf16, #tpu.memory_space<vmem>>, vector<1x1x32x8xbf16>
    %99 = vector.shape_cast %98 : vector<1x1x32x8xbf16> to vector<32x8xbf16>
    %cst_82 = arith.constant dense<0.000000e+00> : vector<16x8xf32>
    %100 = tpu.matmul %2, %99, %cst_82 {dimension_numbers = #tpu.dot_dimension_numbers<[1], [0], [0], [1], [0, 0, 1, 1], [], []>} : vector<16x32xbf16>, vector<32x8xbf16>, vector<16x8xf32> -> vector<16x8xf32>
    %c0_83 = arith.constant 0 : index
    %c2_84 = arith.constant 2 : index
    %c0_85 = arith.constant 0 : index
    %c0_86 = arith.constant 0 : index
    %101 = vector.load %arg5[%c0_83, %c2_84, %c0_85, %c0_86] : memref<2x4x1x8xf32, #tpu.memory_space<vmem>>, vector<1x1x1x8xf32>
    %102 = vector.shape_cast %101 : vector<1x1x1x8xf32> to vector<1x8xf32>
    %103 = vector.broadcast %102 : vector<1x8xf32> to vector<16x8xf32>
    %104 = arith.addf %100, %103 : vector<16x8xf32>
    %c0_87 = arith.constant 0 : index
    %c2_88 = arith.constant 2 : index
    %c0_89 = arith.constant 0 : index
    %c0_90 = arith.constant 0 : index
    %105 = vector.load %arg3[%c0_87, %c2_88, %c0_89, %c0_90] : memref<2x4x32x8xbf16, #tpu.memory_space<vmem>>, vector<1x1x32x8xbf16>
    %106 = vector.shape_cast %105 : vector<1x1x32x8xbf16> to vector<32x8xbf16>
    %cst_91 = arith.constant dense<0.000000e+00> : vector<16x8xf32>
    %107 = tpu.matmul %2, %106, %cst_91 {dimension_numbers = #tpu.dot_dimension_numbers<[1], [0], [0], [1], [0, 0, 1, 1], [], []>} : vector<16x32xbf16>, vector<32x8xbf16>, vector<16x8xf32> -> vector<16x8xf32>
    %c0_92 = arith.constant 0 : index
    %c2_93 = arith.constant 2 : index
    %c0_94 = arith.constant 0 : index
    %c0_95 = arith.constant 0 : index
    %108 = vector.load %arg6[%c0_92, %c2_93, %c0_94, %c0_95] : memref<2x4x1x8xf32, #tpu.memory_space<vmem>>, vector<1x1x1x8xf32>
    %109 = vector.shape_cast %108 : vector<1x1x1x8xf32> to vector<1x8xf32>
    %110 = vector.broadcast %109 : vector<1x8xf32> to vector<16x8xf32>
    %111 = arith.addf %107, %110 : vector<16x8xf32>
    %c0_96 = arith.constant 0 : index
    %c2_97 = arith.constant 2 : index
    %c0_98 = arith.constant 0 : index
    %c0_99 = arith.constant 0 : index
    %112 = vector.load %arg4[%c0_96, %c2_97, %c0_98, %c0_99] : memref<2x4x32x8xbf16, #tpu.memory_space<vmem>>, vector<1x1x32x8xbf16>
    %113 = vector.shape_cast %112 : vector<1x1x32x8xbf16> to vector<32x8xbf16>
    %cst_100 = arith.constant dense<0.000000e+00> : vector<16x8xf32>
    %114 = tpu.matmul %2, %113, %cst_100 {dimension_numbers = #tpu.dot_dimension_numbers<[1], [0], [0], [1], [0, 0, 1, 1], [], []>} : vector<16x32xbf16>, vector<32x8xbf16>, vector<16x8xf32> -> vector<16x8xf32>
    %c0_101 = arith.constant 0 : index
    %c2_102 = arith.constant 2 : index
    %c0_103 = arith.constant 0 : index
    %c0_104 = arith.constant 0 : index
    %115 = vector.load %arg7[%c0_101, %c2_102, %c0_103, %c0_104] : memref<2x4x1x8xf32, #tpu.memory_space<vmem>>, vector<1x1x1x8xf32>
    %116 = vector.shape_cast %115 : vector<1x1x1x8xf32> to vector<1x8xf32>
    %117 = vector.broadcast %116 : vector<1x8xf32> to vector<16x8xf32>
    %118 = arith.addf %114, %117 : vector<16x8xf32>
    %cst_105 = arith.constant dense<0.000000e+00> : vector<16x16xf32>
    %119 = tpu.matmul %104, %111, %cst_105 {dimension_numbers = #tpu.dot_dimension_numbers<[1], [1], [0], [0], [0, 0, 1, 0], [], []>} : vector<16x8xf32>, vector<16x8xf32>, vector<16x16xf32> -> vector<16x16xf32>
    %cst_106 = arith.constant 0.353553385 : f32
    %120 = vector.broadcast %cst_106 : f32 to vector<16x16xf32>
    %121 = arith.mulf %119, %120 : vector<16x16xf32>
    %122 = arith.addf %121, %1 : vector<16x16xf32>
    %cst_107 = arith.constant dense<0xFF800000> : vector<16xf32>
    %123 = vector.multi_reduction <maximumf>, %122, %cst_107 [1] : vector<16x16xf32> to vector<16xf32>
    %124 = vector.shape_cast %123 : vector<16xf32> to vector<16x1xf32>
    %125 = vector.broadcast %124 : vector<16x1xf32> to vector<16x16xf32>
    %126 = arith.subf %122, %125 : vector<16x16xf32>
    %127 = math.exp %126 : vector<16x16xf32>
    %cst_108 = arith.constant dense<0.000000e+00> : vector<16xf32>
    %128 = vector.multi_reduction <add>, %127, %cst_108 [1] : vector<16x16xf32> to vector<16xf32>
    %129 = vector.shape_cast %128 : vector<16xf32> to vector<16x1xf32>
    %130 = tpu.reciprocal %129 {approx = true} : vector<16x1xf32> -> vector<16x1xf32>
    %131 = vector.broadcast %130 : vector<16x1xf32> to vector<16x16xf32>
    %132 = arith.mulf %127, %131 : vector<16x16xf32>
    %133 = arith.truncf %132 : vector<16x16xf32> to vector<16x16xbf16>
    %134 = arith.truncf %118 : vector<16x8xf32> to vector<16x8xbf16>
    %cst_109 = arith.constant dense<0.000000e+00> : vector<16x8xf32>
    %135 = tpu.matmul %133, %134, %cst_109 {dimension_numbers = #tpu.dot_dimension_numbers<[1], [0], [0], [1], [0, 0, 1, 1], [], []>} : vector<16x16xbf16>, vector<16x8xbf16>, vector<16x8xf32> -> vector<16x8xf32>
    %136 = arith.truncf %135 : vector<16x8xf32> to vector<16x8xbf16>
    %c0_110 = arith.constant 0 : index
    %c2_111 = arith.constant 2 : index
    %c0_112 = arith.constant 0 : index
    %c0_113 = arith.constant 0 : index
    %137 = vector.load %arg8[%c0_110, %c2_111, %c0_112, %c0_113] : memref<2x4x8x32xbf16, #tpu.memory_space<vmem>>, vector<1x1x8x32xbf16>
    %138 = vector.shape_cast %137 : vector<1x1x8x32xbf16> to vector<8x32xbf16>
    %cst_114 = arith.constant dense<0.000000e+00> : vector<16x32xf32>
    %139 = tpu.matmul %136, %138, %cst_114 {dimension_numbers = #tpu.dot_dimension_numbers<[1], [0], [0], [1], [0, 0, 1, 1], [], []>} : vector<16x8xbf16>, vector<8x32xbf16>, vector<16x32xf32> -> vector<16x32xf32>
    %140 = arith.addf %97, %139 : vector<16x32xf32>
    %c0_115 = arith.constant 0 : index
    %c3 = arith.constant 3 : index
    %c0_116 = arith.constant 0 : index
    %c0_117 = arith.constant 0 : index
    %141 = vector.load %arg2[%c0_115, %c3, %c0_116, %c0_117] : memref<2x4x32x8xbf16, #tpu.memory_space<vmem>>, vector<1x1x32x8xbf16>
    %142 = vector.shape_cast %141 : vector<1x1x32x8xbf16> to vector<32x8xbf16>
    %cst_118 = arith.constant dense<0.000000e+00> : vector<16x8xf32>
    %143 = tpu.matmul %2, %142, %cst_118 {dimension_numbers = #tpu.dot_dimension_numbers<[1], [0], [0], [1], [0, 0, 1, 1], [], []>} : vector<16x32xbf16>, vector<32x8xbf16>, vector<16x8xf32> -> vector<16x8xf32>
    %c0_119 = arith.constant 0 : index
    %c3_120 = arith.constant 3 : index
    %c0_121 = arith.constant 0 : index
    %c0_122 = arith.constant 0 : index
    %144 = vector.load %arg5[%c0_119, %c3_120, %c0_121, %c0_122] : memref<2x4x1x8xf32, #tpu.memory_space<vmem>>, vector<1x1x1x8xf32>
    %145 = vector.shape_cast %144 : vector<1x1x1x8xf32> to vector<1x8xf32>
    %146 = vector.broadcast %145 : vector<1x8xf32> to vector<16x8xf32>
    %147 = arith.addf %143, %146 : vector<16x8xf32>
    %c0_123 = arith.constant 0 : index
    %c3_124 = arith.constant 3 : index
    %c0_125 = arith.constant 0 : index
    %c0_126 = arith.constant 0 : index
    %148 = vector.load %arg3[%c0_123, %c3_124, %c0_125, %c0_126] : memref<2x4x32x8xbf16, #tpu.memory_space<vmem>>, vector<1x1x32x8xbf16>
    %149 = vector.shape_cast %148 : vector<1x1x32x8xbf16> to vector<32x8xbf16>
    %cst_127 = arith.constant dense<0.000000e+00> : vector<16x8xf32>
    %150 = tpu.matmul %2, %149, %cst_127 {dimension_numbers = #tpu.dot_dimension_numbers<[1], [0], [0], [1], [0, 0, 1, 1], [], []>} : vector<16x32xbf16>, vector<32x8xbf16>, vector<16x8xf32> -> vector<16x8xf32>
    %c0_128 = arith.constant 0 : index
    %c3_129 = arith.constant 3 : index
    %c0_130 = arith.constant 0 : index
    %c0_131 = arith.constant 0 : index
    %151 = vector.load %arg6[%c0_128, %c3_129, %c0_130, %c0_131] : memref<2x4x1x8xf32, #tpu.memory_space<vmem>>, vector<1x1x1x8xf32>
    %152 = vector.shape_cast %151 : vector<1x1x1x8xf32> to vector<1x8xf32>
    %153 = vector.broadcast %152 : vector<1x8xf32> to vector<16x8xf32>
    %154 = arith.addf %150, %153 : vector<16x8xf32>
    %c0_132 = arith.constant 0 : index
    %c3_133 = arith.constant 3 : index
    %c0_134 = arith.constant 0 : index
    %c0_135 = arith.constant 0 : index
    %155 = vector.load %arg4[%c0_132, %c3_133, %c0_134, %c0_135] : memref<2x4x32x8xbf16, #tpu.memory_space<vmem>>, vector<1x1x32x8xbf16>
    %156 = vector.shape_cast %155 : vector<1x1x32x8xbf16> to vector<32x8xbf16>
    %cst_136 = arith.constant dense<0.000000e+00> : vector<16x8xf32>
    %157 = tpu.matmul %2, %156, %cst_136 {dimension_numbers = #tpu.dot_dimension_numbers<[1], [0], [0], [1], [0, 0, 1, 1], [], []>} : vector<16x32xbf16>, vector<32x8xbf16>, vector<16x8xf32> -> vector<16x8xf32>
    %c0_137 = arith.constant 0 : index
    %c3_138 = arith.constant 3 : index
    %c0_139 = arith.constant 0 : index
    %c0_140 = arith.constant 0 : index
    %158 = vector.load %arg7[%c0_137, %c3_138, %c0_139, %c0_140] : memref<2x4x1x8xf32, #tpu.memory_space<vmem>>, vector<1x1x1x8xf32>
    %159 = vector.shape_cast %158 : vector<1x1x1x8xf32> to vector<1x8xf32>
    %160 = vector.broadcast %159 : vector<1x8xf32> to vector<16x8xf32>
    %161 = arith.addf %157, %160 : vector<16x8xf32>
    %cst_141 = arith.constant dense<0.000000e+00> : vector<16x16xf32>
    %162 = tpu.matmul %147, %154, %cst_141 {dimension_numbers = #tpu.dot_dimension_numbers<[1], [1], [0], [0], [0, 0, 1, 0], [], []>} : vector<16x8xf32>, vector<16x8xf32>, vector<16x16xf32> -> vector<16x16xf32>
    %cst_142 = arith.constant 0.353553385 : f32
    %163 = vector.broadcast %cst_142 : f32 to vector<16x16xf32>
    %164 = arith.mulf %162, %163 : vector<16x16xf32>
    %165 = arith.addf %164, %1 : vector<16x16xf32>
    %cst_143 = arith.constant dense<0xFF800000> : vector<16xf32>
    %166 = vector.multi_reduction <maximumf>, %165, %cst_143 [1] : vector<16x16xf32> to vector<16xf32>
    %167 = vector.shape_cast %166 : vector<16xf32> to vector<16x1xf32>
    %168 = vector.broadcast %167 : vector<16x1xf32> to vector<16x16xf32>
    %169 = arith.subf %165, %168 : vector<16x16xf32>
    %170 = math.exp %169 : vector<16x16xf32>
    %cst_144 = arith.constant dense<0.000000e+00> : vector<16xf32>
    %171 = vector.multi_reduction <add>, %170, %cst_144 [1] : vector<16x16xf32> to vector<16xf32>
    %172 = vector.shape_cast %171 : vector<16xf32> to vector<16x1xf32>
    %173 = tpu.reciprocal %172 {approx = true} : vector<16x1xf32> -> vector<16x1xf32>
    %174 = vector.broadcast %173 : vector<16x1xf32> to vector<16x16xf32>
    %175 = arith.mulf %170, %174 : vector<16x16xf32>
    %176 = arith.truncf %175 : vector<16x16xf32> to vector<16x16xbf16>
    %177 = arith.truncf %161 : vector<16x8xf32> to vector<16x8xbf16>
    %cst_145 = arith.constant dense<0.000000e+00> : vector<16x8xf32>
    %178 = tpu.matmul %176, %177, %cst_145 {dimension_numbers = #tpu.dot_dimension_numbers<[1], [0], [0], [1], [0, 0, 1, 1], [], []>} : vector<16x16xbf16>, vector<16x8xbf16>, vector<16x8xf32> -> vector<16x8xf32>
    %179 = arith.truncf %178 : vector<16x8xf32> to vector<16x8xbf16>
    %c0_146 = arith.constant 0 : index
    %c3_147 = arith.constant 3 : index
    %c0_148 = arith.constant 0 : index
    %c0_149 = arith.constant 0 : index
    %180 = vector.load %arg8[%c0_146, %c3_147, %c0_148, %c0_149] : memref<2x4x8x32xbf16, #tpu.memory_space<vmem>>, vector<1x1x8x32xbf16>
    %181 = vector.shape_cast %180 : vector<1x1x8x32xbf16> to vector<8x32xbf16>
    %cst_150 = arith.constant dense<0.000000e+00> : vector<16x32xf32>
    %182 = tpu.matmul %179, %181, %cst_150 {dimension_numbers = #tpu.dot_dimension_numbers<[1], [0], [0], [1], [0, 0, 1, 1], [], []>} : vector<16x8xbf16>, vector<8x32xbf16>, vector<16x32xf32> -> vector<16x32xf32>
    %183 = arith.addf %140, %182 : vector<16x32xf32>
    %184 = vector.broadcast %5 : vector<1x32xf32> to vector<16x32xf32>
    %185 = arith.addf %183, %184 : vector<16x32xf32>
    %186 = arith.addf %185, %0 : vector<16x32xf32>
    %cst_151 = arith.constant dense<0.000000e+00> : vector<16xf32>
    %187 = vector.multi_reduction <add>, %186, %cst_151 [1] : vector<16x32xf32> to vector<16xf32>
    %188 = vector.shape_cast %187 : vector<16xf32> to vector<16x1xf32>
    %cst_152 = arith.constant 3.200000e+01 : f32
    %189 = vector.broadcast %cst_152 : f32 to vector<16x1xf32>
    %190 = arith.divf %188, %189 : vector<16x1xf32>
    %191 = vector.broadcast %190 : vector<16x1xf32> to vector<16x32xf32>
    %192 = arith.subf %186, %191 : vector<16x32xf32>
    %193 = arith.mulf %192, %192 : vector<16x32xf32>
    %cst_153 = arith.constant dense<0.000000e+00> : vector<16xf32>
    %194 = vector.multi_reduction <add>, %193, %cst_153 [1] : vector<16x32xf32> to vector<16xf32>
    %195 = vector.shape_cast %194 : vector<16xf32> to vector<16x1xf32>
    %cst_154 = arith.constant 3.200000e+01 : f32
    %196 = vector.broadcast %cst_154 : f32 to vector<16x1xf32>
    %197 = arith.divf %195, %196 : vector<16x1xf32>
    %198 = vector.broadcast %190 : vector<16x1xf32> to vector<16x32xf32>
    %199 = arith.subf %186, %198 : vector<16x32xf32>
    %cst_155 = arith.constant 9.99999996E-13 : f32
    %200 = vector.broadcast %cst_155 : f32 to vector<16x1xf32>
    %201 = arith.addf %197, %200 : vector<16x1xf32>
    %202 = math.rsqrt %201 : vector<16x1xf32>
    %203 = vector.broadcast %202 : vector<16x1xf32> to vector<16x32xf32>
    %204 = arith.mulf %199, %203 : vector<16x32xf32>
    %205 = vector.broadcast %6 : vector<1x32xf32> to vector<16x32xf32>
    %206 = arith.mulf %204, %205 : vector<16x32xf32>
    %207 = vector.broadcast %7 : vector<1x32xf32> to vector<16x32xf32>
    %208 = arith.addf %206, %207 : vector<16x32xf32>
    %209 = arith.truncf %208 : vector<16x32xf32> to vector<16x32xbf16>
    %c0_156 = arith.constant 0 : index
    %c0_157 = arith.constant 0 : index
    %c0_158 = arith.constant 0 : index
    %210 = vector.load %arg10[%c0_156, %c0_157, %c0_158] : memref<2x32x64xbf16, #tpu.memory_space<vmem>>, vector<1x32x64xbf16>
    %211 = vector.shape_cast %210 : vector<1x32x64xbf16> to vector<32x64xbf16>
    %cst_159 = arith.constant dense<0.000000e+00> : vector<16x64xf32>
    %212 = tpu.matmul %209, %211, %cst_159 {dimension_numbers = #tpu.dot_dimension_numbers<[1], [0], [0], [1], [0, 0, 1, 1], [], []>} : vector<16x32xbf16>, vector<32x64xbf16>, vector<16x64xf32> -> vector<16x64xf32>
    %c0_160 = arith.constant 0 : index
    %c0_161 = arith.constant 0 : index
    %c0_162 = arith.constant 0 : index
    %213 = vector.load %arg11[%c0_160, %c0_161, %c0_162] : memref<2x1x64xf32, #tpu.memory_space<vmem>>, vector<1x1x64xf32>
    %214 = vector.shape_cast %213 : vector<1x1x64xf32> to vector<1x64xf32>
    %215 = vector.broadcast %214 : vector<1x64xf32> to vector<16x64xf32>
    %216 = arith.addf %212, %215 : vector<16x64xf32>
    %cst_163 = arith.constant 5.000000e-01 : f32
    %217 = vector.broadcast %cst_163 : f32 to vector<16x64xf32>
    %218 = arith.mulf %217, %216 : vector<16x64xf32>
    %cst_164 = arith.constant 4.471500e-02 : f32
    %219 = vector.broadcast %cst_164 : f32 to vector<16x64xf32>
    %220 = arith.mulf %219, %216 : vector<16x64xf32>
    %221 = arith.mulf %220, %216 : vector<16x64xf32>
    %222 = arith.mulf %221, %216 : vector<16x64xf32>
    %223 = arith.addf %216, %222 : vector<16x64xf32>
    %cst_165 = arith.constant 0.797884583 : f32
    %224 = vector.broadcast %cst_165 : f32 to vector<16x64xf32>
    %225 = arith.mulf %224, %223 : vector<16x64xf32>
    %226 = math.tanh %225 : vector<16x64xf32>
    %cst_166 = arith.constant 1.000000e+00 : f32
    %227 = vector.broadcast %cst_166 : f32 to vector<16x64xf32>
    %228 = arith.addf %227, %226 : vector<16x64xf32>
    %229 = arith.mulf %218, %228 : vector<16x64xf32>
    %230 = arith.truncf %229 : vector<16x64xf32> to vector<16x64xbf16>
    %c0_167 = arith.constant 0 : index
    %c0_168 = arith.constant 0 : index
    %c0_169 = arith.constant 0 : index
    %231 = vector.load %arg12[%c0_167, %c0_168, %c0_169] : memref<2x64x32xbf16, #tpu.memory_space<vmem>>, vector<1x64x32xbf16>
    %232 = vector.shape_cast %231 : vector<1x64x32xbf16> to vector<64x32xbf16>
    %cst_170 = arith.constant dense<0.000000e+00> : vector<16x32xf32>
    %233 = tpu.matmul %230, %232, %cst_170 {dimension_numbers = #tpu.dot_dimension_numbers<[1], [0], [0], [1], [0, 0, 1, 1], [], []>} : vector<16x64xbf16>, vector<64x32xbf16>, vector<16x32xf32> -> vector<16x32xf32>
    %234 = vector.broadcast %8 : vector<1x32xf32> to vector<16x32xf32>
    %235 = arith.addf %233, %234 : vector<16x32xf32>
    %236 = arith.addf %235, %208 : vector<16x32xf32>
    %cst_171 = arith.constant dense<0.000000e+00> : vector<16xf32>
    %237 = vector.multi_reduction <add>, %236, %cst_171 [1] : vector<16x32xf32> to vector<16xf32>
    %238 = vector.shape_cast %237 : vector<16xf32> to vector<16x1xf32>
    %cst_172 = arith.constant 3.200000e+01 : f32
    %239 = vector.broadcast %cst_172 : f32 to vector<16x1xf32>
    %240 = arith.divf %238, %239 : vector<16x1xf32>
    %241 = vector.broadcast %240 : vector<16x1xf32> to vector<16x32xf32>
    %242 = arith.subf %236, %241 : vector<16x32xf32>
    %243 = arith.mulf %242, %242 : vector<16x32xf32>
    %cst_173 = arith.constant dense<0.000000e+00> : vector<16xf32>
    %244 = vector.multi_reduction <add>, %243, %cst_173 [1] : vector<16x32xf32> to vector<16xf32>
    %245 = vector.shape_cast %244 : vector<16xf32> to vector<16x1xf32>
    %cst_174 = arith.constant 3.200000e+01 : f32
    %246 = vector.broadcast %cst_174 : f32 to vector<16x1xf32>
    %247 = arith.divf %245, %246 : vector<16x1xf32>
    %248 = vector.broadcast %240 : vector<16x1xf32> to vector<16x32xf32>
    %249 = arith.subf %236, %248 : vector<16x32xf32>
    %cst_175 = arith.constant 9.99999996E-13 : f32
    %250 = vector.broadcast %cst_175 : f32 to vector<16x1xf32>
    %251 = arith.addf %247, %250 : vector<16x1xf32>
    %252 = math.rsqrt %251 : vector<16x1xf32>
    %253 = vector.broadcast %252 : vector<16x1xf32> to vector<16x32xf32>
    %254 = arith.mulf %249, %253 : vector<16x32xf32>
    %255 = vector.broadcast %9 : vector<1x32xf32> to vector<16x32xf32>
    %256 = arith.mulf %254, %255 : vector<16x32xf32>
    %257 = vector.broadcast %10 : vector<1x32xf32> to vector<16x32xf32>
    %258 = arith.addf %256, %257 : vector<16x32xf32>
    %259 = arith.truncf %258 : vector<16x32xf32> to vector<16x32xbf16>
    %c1_176 = arith.constant 1 : index
    %c0_177 = arith.constant 0 : index
    %c0_178 = arith.constant 0 : index
    %260 = vector.load %arg9[%c1_176, %c0_177, %c0_178] : memref<2x6x32xf32, #tpu.memory_space<vmem>>, vector<1x6x32xf32>
    %261 = vector.shape_cast %260 : vector<1x6x32xf32> to vector<6x32xf32>
    %262 = vector.extract_strided_slice %261 {offsets = [0, 0], sizes = [1, 32], strides = [1, 1]} : vector<6x32xf32> to vector<1x32xf32>
    %263 = vector.extract_strided_slice %261 {offsets = [1, 0], sizes = [1, 32], strides = [1, 1]} : vector<6x32xf32> to vector<1x32xf32>
    %264 = vector.extract_strided_slice %261 {offsets = [2, 0], sizes = [1, 32], strides = [1, 1]} : vector<6x32xf32> to vector<1x32xf32>
    %265 = vector.extract_strided_slice %261 {offsets = [3, 0], sizes = [1, 32], strides = [1, 1]} : vector<6x32xf32> to vector<1x32xf32>
    %266 = vector.extract_strided_slice %261 {offsets = [4, 0], sizes = [1, 32], strides = [1, 1]} : vector<6x32xf32> to vector<1x32xf32>
    %267 = vector.extract_strided_slice %261 {offsets = [5, 0], sizes = [1, 32], strides = [1, 1]} : vector<6x32xf32> to vector<1x32xf32>
    %cst_179 = arith.constant 0.000000e+00 : f32
    %268 = vector.broadcast %cst_179 : f32 to vector<16x32xf32>
    %c1_180 = arith.constant 1 : index
    %c0_181 = arith.constant 0 : index
    %c0_182 = arith.constant 0 : index
    %c0_183 = arith.constant 0 : index
    %269 = vector.load %arg2[%c1_180, %c0_181, %c0_182, %c0_183] : memref<2x4x32x8xbf16, #tpu.memory_space<vmem>>, vector<1x1x32x8xbf16>
    %270 = vector.shape_cast %269 : vector<1x1x32x8xbf16> to vector<32x8xbf16>
    %cst_184 = arith.constant dense<0.000000e+00> : vector<16x8xf32>
    %271 = tpu.matmul %259, %270, %cst_184 {dimension_numbers = #tpu.dot_dimension_numbers<[1], [0], [0], [1], [0, 0, 1, 1], [], []>} : vector<16x32xbf16>, vector<32x8xbf16>, vector<16x8xf32> -> vector<16x8xf32>
    %c1_185 = arith.constant 1 : index
    %c0_186 = arith.constant 0 : index
    %c0_187 = arith.constant 0 : index
    %c0_188 = arith.constant 0 : index
    %272 = vector.load %arg5[%c1_185, %c0_186, %c0_187, %c0_188] : memref<2x4x1x8xf32, #tpu.memory_space<vmem>>, vector<1x1x1x8xf32>
    %273 = vector.shape_cast %272 : vector<1x1x1x8xf32> to vector<1x8xf32>
    %274 = vector.broadcast %273 : vector<1x8xf32> to vector<16x8xf32>
    %275 = arith.addf %271, %274 : vector<16x8xf32>
    %c1_189 = arith.constant 1 : index
    %c0_190 = arith.constant 0 : index
    %c0_191 = arith.constant 0 : index
    %c0_192 = arith.constant 0 : index
    %276 = vector.load %arg3[%c1_189, %c0_190, %c0_191, %c0_192] : memref<2x4x32x8xbf16, #tpu.memory_space<vmem>>, vector<1x1x32x8xbf16>
    %277 = vector.shape_cast %276 : vector<1x1x32x8xbf16> to vector<32x8xbf16>
    %cst_193 = arith.constant dense<0.000000e+00> : vector<16x8xf32>
    %278 = tpu.matmul %259, %277, %cst_193 {dimension_numbers = #tpu.dot_dimension_numbers<[1], [0], [0], [1], [0, 0, 1, 1], [], []>} : vector<16x32xbf16>, vector<32x8xbf16>, vector<16x8xf32> -> vector<16x8xf32>
    %c1_194 = arith.constant 1 : index
    %c0_195 = arith.constant 0 : index
    %c0_196 = arith.constant 0 : index
    %c0_197 = arith.constant 0 : index
    %279 = vector.load %arg6[%c1_194, %c0_195, %c0_196, %c0_197] : memref<2x4x1x8xf32, #tpu.memory_space<vmem>>, vector<1x1x1x8xf32>
    %280 = vector.shape_cast %279 : vector<1x1x1x8xf32> to vector<1x8xf32>
    %281 = vector.broadcast %280 : vector<1x8xf32> to vector<16x8xf32>
    %282 = arith.addf %278, %281 : vector<16x8xf32>
    %c1_198 = arith.constant 1 : index
    %c0_199 = arith.constant 0 : index
    %c0_200 = arith.constant 0 : index
    %c0_201 = arith.constant 0 : index
    %283 = vector.load %arg4[%c1_198, %c0_199, %c0_200, %c0_201] : memref<2x4x32x8xbf16, #tpu.memory_space<vmem>>, vector<1x1x32x8xbf16>
    %284 = vector.shape_cast %283 : vector<1x1x32x8xbf16> to vector<32x8xbf16>
    %cst_202 = arith.constant dense<0.000000e+00> : vector<16x8xf32>
    %285 = tpu.matmul %259, %284, %cst_202 {dimension_numbers = #tpu.dot_dimension_numbers<[1], [0], [0], [1], [0, 0, 1, 1], [], []>} : vector<16x32xbf16>, vector<32x8xbf16>, vector<16x8xf32> -> vector<16x8xf32>
    %c1_203 = arith.constant 1 : index
    %c0_204 = arith.constant 0 : index
    %c0_205 = arith.constant 0 : index
    %c0_206 = arith.constant 0 : index
    %286 = vector.load %arg7[%c1_203, %c0_204, %c0_205, %c0_206] : memref<2x4x1x8xf32, #tpu.memory_space<vmem>>, vector<1x1x1x8xf32>
    %287 = vector.shape_cast %286 : vector<1x1x1x8xf32> to vector<1x8xf32>
    %288 = vector.broadcast %287 : vector<1x8xf32> to vector<16x8xf32>
    %289 = arith.addf %285, %288 : vector<16x8xf32>
    %cst_207 = arith.constant dense<0.000000e+00> : vector<16x16xf32>
    %290 = tpu.matmul %275, %282, %cst_207 {dimension_numbers = #tpu.dot_dimension_numbers<[1], [1], [0], [0], [0, 0, 1, 0], [], []>} : vector<16x8xf32>, vector<16x8xf32>, vector<16x16xf32> -> vector<16x16xf32>
    %cst_208 = arith.constant 0.353553385 : f32
    %291 = vector.broadcast %cst_208 : f32 to vector<16x16xf32>
    %292 = arith.mulf %290, %291 : vector<16x16xf32>
    %293 = arith.addf %292, %1 : vector<16x16xf32>
    %cst_209 = arith.constant dense<0xFF800000> : vector<16xf32>
    %294 = vector.multi_reduction <maximumf>, %293, %cst_209 [1] : vector<16x16xf32> to vector<16xf32>
    %295 = vector.shape_cast %294 : vector<16xf32> to vector<16x1xf32>
    %296 = vector.broadcast %295 : vector<16x1xf32> to vector<16x16xf32>
    %297 = arith.subf %293, %296 : vector<16x16xf32>
    %298 = math.exp %297 : vector<16x16xf32>
    %cst_210 = arith.constant dense<0.000000e+00> : vector<16xf32>
    %299 = vector.multi_reduction <add>, %298, %cst_210 [1] : vector<16x16xf32> to vector<16xf32>
    %300 = vector.shape_cast %299 : vector<16xf32> to vector<16x1xf32>
    %301 = tpu.reciprocal %300 {approx = true} : vector<16x1xf32> -> vector<16x1xf32>
    %302 = vector.broadcast %301 : vector<16x1xf32> to vector<16x16xf32>
    %303 = arith.mulf %298, %302 : vector<16x16xf32>
    %304 = arith.truncf %303 : vector<16x16xf32> to vector<16x16xbf16>
    %305 = arith.truncf %289 : vector<16x8xf32> to vector<16x8xbf16>
    %cst_211 = arith.constant dense<0.000000e+00> : vector<16x8xf32>
    %306 = tpu.matmul %304, %305, %cst_211 {dimension_numbers = #tpu.dot_dimension_numbers<[1], [0], [0], [1], [0, 0, 1, 1], [], []>} : vector<16x16xbf16>, vector<16x8xbf16>, vector<16x8xf32> -> vector<16x8xf32>
    %307 = arith.truncf %306 : vector<16x8xf32> to vector<16x8xbf16>
    %c1_212 = arith.constant 1 : index
    %c0_213 = arith.constant 0 : index
    %c0_214 = arith.constant 0 : index
    %c0_215 = arith.constant 0 : index
    %308 = vector.load %arg8[%c1_212, %c0_213, %c0_214, %c0_215] : memref<2x4x8x32xbf16, #tpu.memory_space<vmem>>, vector<1x1x8x32xbf16>
    %309 = vector.shape_cast %308 : vector<1x1x8x32xbf16> to vector<8x32xbf16>
    %cst_216 = arith.constant dense<0.000000e+00> : vector<16x32xf32>
    %310 = tpu.matmul %307, %309, %cst_216 {dimension_numbers = #tpu.dot_dimension_numbers<[1], [0], [0], [1], [0, 0, 1, 1], [], []>} : vector<16x8xbf16>, vector<8x32xbf16>, vector<16x32xf32> -> vector<16x32xf32>
    %311 = arith.addf %268, %310 : vector<16x32xf32>
    %c1_217 = arith.constant 1 : index
    %c1_218 = arith.constant 1 : index
    %c0_219 = arith.constant 0 : index
    %c0_220 = arith.constant 0 : index
    %312 = vector.load %arg2[%c1_217, %c1_218, %c0_219, %c0_220] : memref<2x4x32x8xbf16, #tpu.memory_space<vmem>>, vector<1x1x32x8xbf16>
    %313 = vector.shape_cast %312 : vector<1x1x32x8xbf16> to vector<32x8xbf16>
    %cst_221 = arith.constant dense<0.000000e+00> : vector<16x8xf32>
    %314 = tpu.matmul %259, %313, %cst_221 {dimension_numbers = #tpu.dot_dimension_numbers<[1], [0], [0], [1], [0, 0, 1, 1], [], []>} : vector<16x32xbf16>, vector<32x8xbf16>, vector<16x8xf32> -> vector<16x8xf32>
    %c1_222 = arith.constant 1 : index
    %c1_223 = arith.constant 1 : index
    %c0_224 = arith.constant 0 : index
    %c0_225 = arith.constant 0 : index
    %315 = vector.load %arg5[%c1_222, %c1_223, %c0_224, %c0_225] : memref<2x4x1x8xf32, #tpu.memory_space<vmem>>, vector<1x1x1x8xf32>
    %316 = vector.shape_cast %315 : vector<1x1x1x8xf32> to vector<1x8xf32>
    %317 = vector.broadcast %316 : vector<1x8xf32> to vector<16x8xf32>
    %318 = arith.addf %314, %317 : vector<16x8xf32>
    %c1_226 = arith.constant 1 : index
    %c1_227 = arith.constant 1 : index
    %c0_228 = arith.constant 0 : index
    %c0_229 = arith.constant 0 : index
    %319 = vector.load %arg3[%c1_226, %c1_227, %c0_228, %c0_229] : memref<2x4x32x8xbf16, #tpu.memory_space<vmem>>, vector<1x1x32x8xbf16>
    %320 = vector.shape_cast %319 : vector<1x1x32x8xbf16> to vector<32x8xbf16>
    %cst_230 = arith.constant dense<0.000000e+00> : vector<16x8xf32>
    %321 = tpu.matmul %259, %320, %cst_230 {dimension_numbers = #tpu.dot_dimension_numbers<[1], [0], [0], [1], [0, 0, 1, 1], [], []>} : vector<16x32xbf16>, vector<32x8xbf16>, vector<16x8xf32> -> vector<16x8xf32>
    %c1_231 = arith.constant 1 : index
    %c1_232 = arith.constant 1 : index
    %c0_233 = arith.constant 0 : index
    %c0_234 = arith.constant 0 : index
    %322 = vector.load %arg6[%c1_231, %c1_232, %c0_233, %c0_234] : memref<2x4x1x8xf32, #tpu.memory_space<vmem>>, vector<1x1x1x8xf32>
    %323 = vector.shape_cast %322 : vector<1x1x1x8xf32> to vector<1x8xf32>
    %324 = vector.broadcast %323 : vector<1x8xf32> to vector<16x8xf32>
    %325 = arith.addf %321, %324 : vector<16x8xf32>
    %c1_235 = arith.constant 1 : index
    %c1_236 = arith.constant 1 : index
    %c0_237 = arith.constant 0 : index
    %c0_238 = arith.constant 0 : index
    %326 = vector.load %arg4[%c1_235, %c1_236, %c0_237, %c0_238] : memref<2x4x32x8xbf16, #tpu.memory_space<vmem>>, vector<1x1x32x8xbf16>
    %327 = vector.shape_cast %326 : vector<1x1x32x8xbf16> to vector<32x8xbf16>
    %cst_239 = arith.constant dense<0.000000e+00> : vector<16x8xf32>
    %328 = tpu.matmul %259, %327, %cst_239 {dimension_numbers = #tpu.dot_dimension_numbers<[1], [0], [0], [1], [0, 0, 1, 1], [], []>} : vector<16x32xbf16>, vector<32x8xbf16>, vector<16x8xf32> -> vector<16x8xf32>
    %c1_240 = arith.constant 1 : index
    %c1_241 = arith.constant 1 : index
    %c0_242 = arith.constant 0 : index
    %c0_243 = arith.constant 0 : index
    %329 = vector.load %arg7[%c1_240, %c1_241, %c0_242, %c0_243] : memref<2x4x1x8xf32, #tpu.memory_space<vmem>>, vector<1x1x1x8xf32>
    %330 = vector.shape_cast %329 : vector<1x1x1x8xf32> to vector<1x8xf32>
    %331 = vector.broadcast %330 : vector<1x8xf32> to vector<16x8xf32>
    %332 = arith.addf %328, %331 : vector<16x8xf32>
    %cst_244 = arith.constant dense<0.000000e+00> : vector<16x16xf32>
    %333 = tpu.matmul %318, %325, %cst_244 {dimension_numbers = #tpu.dot_dimension_numbers<[1], [1], [0], [0], [0, 0, 1, 0], [], []>} : vector<16x8xf32>, vector<16x8xf32>, vector<16x16xf32> -> vector<16x16xf32>
    %cst_245 = arith.constant 0.353553385 : f32
    %334 = vector.broadcast %cst_245 : f32 to vector<16x16xf32>
    %335 = arith.mulf %333, %334 : vector<16x16xf32>
    %336 = arith.addf %335, %1 : vector<16x16xf32>
    %cst_246 = arith.constant dense<0xFF800000> : vector<16xf32>
    %337 = vector.multi_reduction <maximumf>, %336, %cst_246 [1] : vector<16x16xf32> to vector<16xf32>
    %338 = vector.shape_cast %337 : vector<16xf32> to vector<16x1xf32>
    %339 = vector.broadcast %338 : vector<16x1xf32> to vector<16x16xf32>
    %340 = arith.subf %336, %339 : vector<16x16xf32>
    %341 = math.exp %340 : vector<16x16xf32>
    %cst_247 = arith.constant dense<0.000000e+00> : vector<16xf32>
    %342 = vector.multi_reduction <add>, %341, %cst_247 [1] : vector<16x16xf32> to vector<16xf32>
    %343 = vector.shape_cast %342 : vector<16xf32> to vector<16x1xf32>
    %344 = tpu.reciprocal %343 {approx = true} : vector<16x1xf32> -> vector<16x1xf32>
    %345 = vector.broadcast %344 : vector<16x1xf32> to vector<16x16xf32>
    %346 = arith.mulf %341, %345 : vector<16x16xf32>
    %347 = arith.truncf %346 : vector<16x16xf32> to vector<16x16xbf16>
    %348 = arith.truncf %332 : vector<16x8xf32> to vector<16x8xbf16>
    %cst_248 = arith.constant dense<0.000000e+00> : vector<16x8xf32>
    %349 = tpu.matmul %347, %348, %cst_248 {dimension_numbers = #tpu.dot_dimension_numbers<[1], [0], [0], [1], [0, 0, 1, 1], [], []>} : vector<16x16xbf16>, vector<16x8xbf16>, vector<16x8xf32> -> vector<16x8xf32>
    %350 = arith.truncf %349 : vector<16x8xf32> to vector<16x8xbf16>
    %c1_249 = arith.constant 1 : index
    %c1_250 = arith.constant 1 : index
    %c0_251 = arith.constant 0 : index
    %c0_252 = arith.constant 0 : index
    %351 = vector.load %arg8[%c1_249, %c1_250, %c0_251, %c0_252] : memref<2x4x8x32xbf16, #tpu.memory_space<vmem>>, vector<1x1x8x32xbf16>
    %352 = vector.shape_cast %351 : vector<1x1x8x32xbf16> to vector<8x32xbf16>
    %cst_253 = arith.constant dense<0.000000e+00> : vector<16x32xf32>
    %353 = tpu.matmul %350, %352, %cst_253 {dimension_numbers = #tpu.dot_dimension_numbers<[1], [0], [0], [1], [0, 0, 1, 1], [], []>} : vector<16x8xbf16>, vector<8x32xbf16>, vector<16x32xf32> -> vector<16x32xf32>
    %354 = arith.addf %311, %353 : vector<16x32xf32>
    %c1_254 = arith.constant 1 : index
    %c2_255 = arith.constant 2 : index
    %c0_256 = arith.constant 0 : index
    %c0_257 = arith.constant 0 : index
    %355 = vector.load %arg2[%c1_254, %c2_255, %c0_256, %c0_257] : memref<2x4x32x8xbf16, #tpu.memory_space<vmem>>, vector<1x1x32x8xbf16>
    %356 = vector.shape_cast %355 : vector<1x1x32x8xbf16> to vector<32x8xbf16>
    %cst_258 = arith.constant dense<0.000000e+00> : vector<16x8xf32>
    %357 = tpu.matmul %259, %356, %cst_258 {dimension_numbers = #tpu.dot_dimension_numbers<[1], [0], [0], [1], [0, 0, 1, 1], [], []>} : vector<16x32xbf16>, vector<32x8xbf16>, vector<16x8xf32> -> vector<16x8xf32>
    %c1_259 = arith.constant 1 : index
    %c2_260 = arith.constant 2 : index
    %c0_261 = arith.constant 0 : index
    %c0_262 = arith.constant 0 : index
    %358 = vector.load %arg5[%c1_259, %c2_260, %c0_261, %c0_262] : memref<2x4x1x8xf32, #tpu.memory_space<vmem>>, vector<1x1x1x8xf32>
    %359 = vector.shape_cast %358 : vector<1x1x1x8xf32> to vector<1x8xf32>
    %360 = vector.broadcast %359 : vector<1x8xf32> to vector<16x8xf32>
    %361 = arith.addf %357, %360 : vector<16x8xf32>
    %c1_263 = arith.constant 1 : index
    %c2_264 = arith.constant 2 : index
    %c0_265 = arith.constant 0 : index
    %c0_266 = arith.constant 0 : index
    %362 = vector.load %arg3[%c1_263, %c2_264, %c0_265, %c0_266] : memref<2x4x32x8xbf16, #tpu.memory_space<vmem>>, vector<1x1x32x8xbf16>
    %363 = vector.shape_cast %362 : vector<1x1x32x8xbf16> to vector<32x8xbf16>
    %cst_267 = arith.constant dense<0.000000e+00> : vector<16x8xf32>
    %364 = tpu.matmul %259, %363, %cst_267 {dimension_numbers = #tpu.dot_dimension_numbers<[1], [0], [0], [1], [0, 0, 1, 1], [], []>} : vector<16x32xbf16>, vector<32x8xbf16>, vector<16x8xf32> -> vector<16x8xf32>
    %c1_268 = arith.constant 1 : index
    %c2_269 = arith.constant 2 : index
    %c0_270 = arith.constant 0 : index
    %c0_271 = arith.constant 0 : index
    %365 = vector.load %arg6[%c1_268, %c2_269, %c0_270, %c0_271] : memref<2x4x1x8xf32, #tpu.memory_space<vmem>>, vector<1x1x1x8xf32>
    %366 = vector.shape_cast %365 : vector<1x1x1x8xf32> to vector<1x8xf32>
    %367 = vector.broadcast %366 : vector<1x8xf32> to vector<16x8xf32>
    %368 = arith.addf %364, %367 : vector<16x8xf32>
    %c1_272 = arith.constant 1 : index
    %c2_273 = arith.constant 2 : index
    %c0_274 = arith.constant 0 : index
    %c0_275 = arith.constant 0 : index
    %369 = vector.load %arg4[%c1_272, %c2_273, %c0_274, %c0_275] : memref<2x4x32x8xbf16, #tpu.memory_space<vmem>>, vector<1x1x32x8xbf16>
    %370 = vector.shape_cast %369 : vector<1x1x32x8xbf16> to vector<32x8xbf16>
    %cst_276 = arith.constant dense<0.000000e+00> : vector<16x8xf32>
    %371 = tpu.matmul %259, %370, %cst_276 {dimension_numbers = #tpu.dot_dimension_numbers<[1], [0], [0], [1], [0, 0, 1, 1], [], []>} : vector<16x32xbf16>, vector<32x8xbf16>, vector<16x8xf32> -> vector<16x8xf32>
    %c1_277 = arith.constant 1 : index
    %c2_278 = arith.constant 2 : index
    %c0_279 = arith.constant 0 : index
    %c0_280 = arith.constant 0 : index
    %372 = vector.load %arg7[%c1_277, %c2_278, %c0_279, %c0_280] : memref<2x4x1x8xf32, #tpu.memory_space<vmem>>, vector<1x1x1x8xf32>
    %373 = vector.shape_cast %372 : vector<1x1x1x8xf32> to vector<1x8xf32>
    %374 = vector.broadcast %373 : vector<1x8xf32> to vector<16x8xf32>
    %375 = arith.addf %371, %374 : vector<16x8xf32>
    %cst_281 = arith.constant dense<0.000000e+00> : vector<16x16xf32>
    %376 = tpu.matmul %361, %368, %cst_281 {dimension_numbers = #tpu.dot_dimension_numbers<[1], [1], [0], [0], [0, 0, 1, 0], [], []>} : vector<16x8xf32>, vector<16x8xf32>, vector<16x16xf32> -> vector<16x16xf32>
    %cst_282 = arith.constant 0.353553385 : f32
    %377 = vector.broadcast %cst_282 : f32 to vector<16x16xf32>
    %378 = arith.mulf %376, %377 : vector<16x16xf32>
    %379 = arith.addf %378, %1 : vector<16x16xf32>
    %cst_283 = arith.constant dense<0xFF800000> : vector<16xf32>
    %380 = vector.multi_reduction <maximumf>, %379, %cst_283 [1] : vector<16x16xf32> to vector<16xf32>
    %381 = vector.shape_cast %380 : vector<16xf32> to vector<16x1xf32>
    %382 = vector.broadcast %381 : vector<16x1xf32> to vector<16x16xf32>
    %383 = arith.subf %379, %382 : vector<16x16xf32>
    %384 = math.exp %383 : vector<16x16xf32>
    %cst_284 = arith.constant dense<0.000000e+00> : vector<16xf32>
    %385 = vector.multi_reduction <add>, %384, %cst_284 [1] : vector<16x16xf32> to vector<16xf32>
    %386 = vector.shape_cast %385 : vector<16xf32> to vector<16x1xf32>
    %387 = tpu.reciprocal %386 {approx = true} : vector<16x1xf32> -> vector<16x1xf32>
    %388 = vector.broadcast %387 : vector<16x1xf32> to vector<16x16xf32>
    %389 = arith.mulf %384, %388 : vector<16x16xf32>
    %390 = arith.truncf %389 : vector<16x16xf32> to vector<16x16xbf16>
    %391 = arith.truncf %375 : vector<16x8xf32> to vector<16x8xbf16>
    %cst_285 = arith.constant dense<0.000000e+00> : vector<16x8xf32>
    %392 = tpu.matmul %390, %391, %cst_285 {dimension_numbers = #tpu.dot_dimension_numbers<[1], [0], [0], [1], [0, 0, 1, 1], [], []>} : vector<16x16xbf16>, vector<16x8xbf16>, vector<16x8xf32> -> vector<16x8xf32>
    %393 = arith.truncf %392 : vector<16x8xf32> to vector<16x8xbf16>
    %c1_286 = arith.constant 1 : index
    %c2_287 = arith.constant 2 : index
    %c0_288 = arith.constant 0 : index
    %c0_289 = arith.constant 0 : index
    %394 = vector.load %arg8[%c1_286, %c2_287, %c0_288, %c0_289] : memref<2x4x8x32xbf16, #tpu.memory_space<vmem>>, vector<1x1x8x32xbf16>
    %395 = vector.shape_cast %394 : vector<1x1x8x32xbf16> to vector<8x32xbf16>
    %cst_290 = arith.constant dense<0.000000e+00> : vector<16x32xf32>
    %396 = tpu.matmul %393, %395, %cst_290 {dimension_numbers = #tpu.dot_dimension_numbers<[1], [0], [0], [1], [0, 0, 1, 1], [], []>} : vector<16x8xbf16>, vector<8x32xbf16>, vector<16x32xf32> -> vector<16x32xf32>
    %397 = arith.addf %354, %396 : vector<16x32xf32>
    %c1_291 = arith.constant 1 : index
    %c3_292 = arith.constant 3 : index
    %c0_293 = arith.constant 0 : index
    %c0_294 = arith.constant 0 : index
    %398 = vector.load %arg2[%c1_291, %c3_292, %c0_293, %c0_294] : memref<2x4x32x8xbf16, #tpu.memory_space<vmem>>, vector<1x1x32x8xbf16>
    %399 = vector.shape_cast %398 : vector<1x1x32x8xbf16> to vector<32x8xbf16>
    %cst_295 = arith.constant dense<0.000000e+00> : vector<16x8xf32>
    %400 = tpu.matmul %259, %399, %cst_295 {dimension_numbers = #tpu.dot_dimension_numbers<[1], [0], [0], [1], [0, 0, 1, 1], [], []>} : vector<16x32xbf16>, vector<32x8xbf16>, vector<16x8xf32> -> vector<16x8xf32>
    %c1_296 = arith.constant 1 : index
    %c3_297 = arith.constant 3 : index
    %c0_298 = arith.constant 0 : index
    %c0_299 = arith.constant 0 : index
    %401 = vector.load %arg5[%c1_296, %c3_297, %c0_298, %c0_299] : memref<2x4x1x8xf32, #tpu.memory_space<vmem>>, vector<1x1x1x8xf32>
    %402 = vector.shape_cast %401 : vector<1x1x1x8xf32> to vector<1x8xf32>
    %403 = vector.broadcast %402 : vector<1x8xf32> to vector<16x8xf32>
    %404 = arith.addf %400, %403 : vector<16x8xf32>
    %c1_300 = arith.constant 1 : index
    %c3_301 = arith.constant 3 : index
    %c0_302 = arith.constant 0 : index
    %c0_303 = arith.constant 0 : index
    %405 = vector.load %arg3[%c1_300, %c3_301, %c0_302, %c0_303] : memref<2x4x32x8xbf16, #tpu.memory_space<vmem>>, vector<1x1x32x8xbf16>
    %406 = vector.shape_cast %405 : vector<1x1x32x8xbf16> to vector<32x8xbf16>
    %cst_304 = arith.constant dense<0.000000e+00> : vector<16x8xf32>
    %407 = tpu.matmul %259, %406, %cst_304 {dimension_numbers = #tpu.dot_dimension_numbers<[1], [0], [0], [1], [0, 0, 1, 1], [], []>} : vector<16x32xbf16>, vector<32x8xbf16>, vector<16x8xf32> -> vector<16x8xf32>
    %c1_305 = arith.constant 1 : index
    %c3_306 = arith.constant 3 : index
    %c0_307 = arith.constant 0 : index
    %c0_308 = arith.constant 0 : index
    %408 = vector.load %arg6[%c1_305, %c3_306, %c0_307, %c0_308] : memref<2x4x1x8xf32, #tpu.memory_space<vmem>>, vector<1x1x1x8xf32>
    %409 = vector.shape_cast %408 : vector<1x1x1x8xf32> to vector<1x8xf32>
    %410 = vector.broadcast %409 : vector<1x8xf32> to vector<16x8xf32>
    %411 = arith.addf %407, %410 : vector<16x8xf32>
    %c1_309 = arith.constant 1 : index
    %c3_310 = arith.constant 3 : index
    %c0_311 = arith.constant 0 : index
    %c0_312 = arith.constant 0 : index
    %412 = vector.load %arg4[%c1_309, %c3_310, %c0_311, %c0_312] : memref<2x4x32x8xbf16, #tpu.memory_space<vmem>>, vector<1x1x32x8xbf16>
    %413 = vector.shape_cast %412 : vector<1x1x32x8xbf16> to vector<32x8xbf16>
    %cst_313 = arith.constant dense<0.000000e+00> : vector<16x8xf32>
    %414 = tpu.matmul %259, %413, %cst_313 {dimension_numbers = #tpu.dot_dimension_numbers<[1], [0], [0], [1], [0, 0, 1, 1], [], []>} : vector<16x32xbf16>, vector<32x8xbf16>, vector<16x8xf32> -> vector<16x8xf32>
    %c1_314 = arith.constant 1 : index
    %c3_315 = arith.constant 3 : index
    %c0_316 = arith.constant 0 : index
    %c0_317 = arith.constant 0 : index
    %415 = vector.load %arg7[%c1_314, %c3_315, %c0_316, %c0_317] : memref<2x4x1x8xf32, #tpu.memory_space<vmem>>, vector<1x1x1x8xf32>
    %416 = vector.shape_cast %415 : vector<1x1x1x8xf32> to vector<1x8xf32>
    %417 = vector.broadcast %416 : vector<1x8xf32> to vector<16x8xf32>
    %418 = arith.addf %414, %417 : vector<16x8xf32>
    %cst_318 = arith.constant dense<0.000000e+00> : vector<16x16xf32>
    %419 = tpu.matmul %404, %411, %cst_318 {dimension_numbers = #tpu.dot_dimension_numbers<[1], [1], [0], [0], [0, 0, 1, 0], [], []>} : vector<16x8xf32>, vector<16x8xf32>, vector<16x16xf32> -> vector<16x16xf32>
    %cst_319 = arith.constant 0.353553385 : f32
    %420 = vector.broadcast %cst_319 : f32 to vector<16x16xf32>
    %421 = arith.mulf %419, %420 : vector<16x16xf32>
    %422 = arith.addf %421, %1 : vector<16x16xf32>
    %cst_320 = arith.constant dense<0xFF800000> : vector<16xf32>
    %423 = vector.multi_reduction <maximumf>, %422, %cst_320 [1] : vector<16x16xf32> to vector<16xf32>
    %424 = vector.shape_cast %423 : vector<16xf32> to vector<16x1xf32>
    %425 = vector.broadcast %424 : vector<16x1xf32> to vector<16x16xf32>
    %426 = arith.subf %422, %425 : vector<16x16xf32>
    %427 = math.exp %426 : vector<16x16xf32>
    %cst_321 = arith.constant dense<0.000000e+00> : vector<16xf32>
    %428 = vector.multi_reduction <add>, %427, %cst_321 [1] : vector<16x16xf32> to vector<16xf32>
    %429 = vector.shape_cast %428 : vector<16xf32> to vector<16x1xf32>
    %430 = tpu.reciprocal %429 {approx = true} : vector<16x1xf32> -> vector<16x1xf32>
    %431 = vector.broadcast %430 : vector<16x1xf32> to vector<16x16xf32>
    %432 = arith.mulf %427, %431 : vector<16x16xf32>
    %433 = arith.truncf %432 : vector<16x16xf32> to vector<16x16xbf16>
    %434 = arith.truncf %418 : vector<16x8xf32> to vector<16x8xbf16>
    %cst_322 = arith.constant dense<0.000000e+00> : vector<16x8xf32>
    %435 = tpu.matmul %433, %434, %cst_322 {dimension_numbers = #tpu.dot_dimension_numbers<[1], [0], [0], [1], [0, 0, 1, 1], [], []>} : vector<16x16xbf16>, vector<16x8xbf16>, vector<16x8xf32> -> vector<16x8xf32>
    %436 = arith.truncf %435 : vector<16x8xf32> to vector<16x8xbf16>
    %c1_323 = arith.constant 1 : index
    %c3_324 = arith.constant 3 : index
    %c0_325 = arith.constant 0 : index
    %c0_326 = arith.constant 0 : index
    %437 = vector.load %arg8[%c1_323, %c3_324, %c0_325, %c0_326] : memref<2x4x8x32xbf16, #tpu.memory_space<vmem>>, vector<1x1x8x32xbf16>
    %438 = vector.shape_cast %437 : vector<1x1x8x32xbf16> to vector<8x32xbf16>
    %cst_327 = arith.constant dense<0.000000e+00> : vector<16x32xf32>
    %439 = tpu.matmul %436, %438, %cst_327 {dimension_numbers = #tpu.dot_dimension_numbers<[1], [0], [0], [1], [0, 0, 1, 1], [], []>} : vector<16x8xbf16>, vector<8x32xbf16>, vector<16x32xf32> -> vector<16x32xf32>
    %440 = arith.addf %397, %439 : vector<16x32xf32>
    %441 = vector.broadcast %262 : vector<1x32xf32> to vector<16x32xf32>
    %442 = arith.addf %440, %441 : vector<16x32xf32>
    %443 = arith.addf %442, %258 : vector<16x32xf32>
    %cst_328 = arith.constant dense<0.000000e+00> : vector<16xf32>
    %444 = vector.multi_reduction <add>, %443, %cst_328 [1] : vector<16x32xf32> to vector<16xf32>
    %445 = vector.shape_cast %444 : vector<16xf32> to vector<16x1xf32>
    %cst_329 = arith.constant 3.200000e+01 : f32
    %446 = vector.broadcast %cst_329 : f32 to vector<16x1xf32>
    %447 = arith.divf %445, %446 : vector<16x1xf32>
    %448 = vector.broadcast %447 : vector<16x1xf32> to vector<16x32xf32>
    %449 = arith.subf %443, %448 : vector<16x32xf32>
    %450 = arith.mulf %449, %449 : vector<16x32xf32>
    %cst_330 = arith.constant dense<0.000000e+00> : vector<16xf32>
    %451 = vector.multi_reduction <add>, %450, %cst_330 [1] : vector<16x32xf32> to vector<16xf32>
    %452 = vector.shape_cast %451 : vector<16xf32> to vector<16x1xf32>
    %cst_331 = arith.constant 3.200000e+01 : f32
    %453 = vector.broadcast %cst_331 : f32 to vector<16x1xf32>
    %454 = arith.divf %452, %453 : vector<16x1xf32>
    %455 = vector.broadcast %447 : vector<16x1xf32> to vector<16x32xf32>
    %456 = arith.subf %443, %455 : vector<16x32xf32>
    %cst_332 = arith.constant 9.99999996E-13 : f32
    %457 = vector.broadcast %cst_332 : f32 to vector<16x1xf32>
    %458 = arith.addf %454, %457 : vector<16x1xf32>
    %459 = math.rsqrt %458 : vector<16x1xf32>
    %460 = vector.broadcast %459 : vector<16x1xf32> to vector<16x32xf32>
    %461 = arith.mulf %456, %460 : vector<16x32xf32>
    %462 = vector.broadcast %263 : vector<1x32xf32> to vector<16x32xf32>
    %463 = arith.mulf %461, %462 : vector<16x32xf32>
    %464 = vector.broadcast %264 : vector<1x32xf32> to vector<16x32xf32>
    %465 = arith.addf %463, %464 : vector<16x32xf32>
    %466 = arith.truncf %465 : vector<16x32xf32> to vector<16x32xbf16>
    %c1_333 = arith.constant 1 : index
    %c0_334 = arith.constant 0 : index
    %c0_335 = arith.constant 0 : index
    %467 = vector.load %arg10[%c1_333, %c0_334, %c0_335] : memref<2x32x64xbf16, #tpu.memory_space<vmem>>, vector<1x32x64xbf16>
    %468 = vector.shape_cast %467 : vector<1x32x64xbf16> to vector<32x64xbf16>
    %cst_336 = arith.constant dense<0.000000e+00> : vector<16x64xf32>
    %469 = tpu.matmul %466, %468, %cst_336 {dimension_numbers = #tpu.dot_dimension_numbers<[1], [0], [0], [1], [0, 0, 1, 1], [], []>} : vector<16x32xbf16>, vector<32x64xbf16>, vector<16x64xf32> -> vector<16x64xf32>
    %c1_337 = arith.constant 1 : index
    %c0_338 = arith.constant 0 : index
    %c0_339 = arith.constant 0 : index
    %470 = vector.load %arg11[%c1_337, %c0_338, %c0_339] : memref<2x1x64xf32, #tpu.memory_space<vmem>>, vector<1x1x64xf32>
    %471 = vector.shape_cast %470 : vector<1x1x64xf32> to vector<1x64xf32>
    %472 = vector.broadcast %471 : vector<1x64xf32> to vector<16x64xf32>
    %473 = arith.addf %469, %472 : vector<16x64xf32>
    %cst_340 = arith.constant 5.000000e-01 : f32
    %474 = vector.broadcast %cst_340 : f32 to vector<16x64xf32>
    %475 = arith.mulf %474, %473 : vector<16x64xf32>
    %cst_341 = arith.constant 4.471500e-02 : f32
    %476 = vector.broadcast %cst_341 : f32 to vector<16x64xf32>
    %477 = arith.mulf %476, %473 : vector<16x64xf32>
    %478 = arith.mulf %477, %473 : vector<16x64xf32>
    %479 = arith.mulf %478, %473 : vector<16x64xf32>
    %480 = arith.addf %473, %479 : vector<16x64xf32>
    %cst_342 = arith.constant 0.797884583 : f32
    %481 = vector.broadcast %cst_342 : f32 to vector<16x64xf32>
    %482 = arith.mulf %481, %480 : vector<16x64xf32>
    %483 = math.tanh %482 : vector<16x64xf32>
    %cst_343 = arith.constant 1.000000e+00 : f32
    %484 = vector.broadcast %cst_343 : f32 to vector<16x64xf32>
    %485 = arith.addf %484, %483 : vector<16x64xf32>
    %486 = arith.mulf %475, %485 : vector<16x64xf32>
    %487 = arith.truncf %486 : vector<16x64xf32> to vector<16x64xbf16>
    %c1_344 = arith.constant 1 : index
    %c0_345 = arith.constant 0 : index
    %c0_346 = arith.constant 0 : index
    %488 = vector.load %arg12[%c1_344, %c0_345, %c0_346] : memref<2x64x32xbf16, #tpu.memory_space<vmem>>, vector<1x64x32xbf16>
    %489 = vector.shape_cast %488 : vector<1x64x32xbf16> to vector<64x32xbf16>
    %cst_347 = arith.constant dense<0.000000e+00> : vector<16x32xf32>
    %490 = tpu.matmul %487, %489, %cst_347 {dimension_numbers = #tpu.dot_dimension_numbers<[1], [0], [0], [1], [0, 0, 1, 1], [], []>} : vector<16x64xbf16>, vector<64x32xbf16>, vector<16x32xf32> -> vector<16x32xf32>
    %491 = vector.broadcast %265 : vector<1x32xf32> to vector<16x32xf32>
    %492 = arith.addf %490, %491 : vector<16x32xf32>
    %493 = arith.addf %492, %465 : vector<16x32xf32>
    %cst_348 = arith.constant dense<0.000000e+00> : vector<16xf32>
    %494 = vector.multi_reduction <add>, %493, %cst_348 [1] : vector<16x32xf32> to vector<16xf32>
    %495 = vector.shape_cast %494 : vector<16xf32> to vector<16x1xf32>
    %cst_349 = arith.constant 3.200000e+01 : f32
    %496 = vector.broadcast %cst_349 : f32 to vector<16x1xf32>
    %497 = arith.divf %495, %496 : vector<16x1xf32>
    %498 = vector.broadcast %497 : vector<16x1xf32> to vector<16x32xf32>
    %499 = arith.subf %493, %498 : vector<16x32xf32>
    %500 = arith.mulf %499, %499 : vector<16x32xf32>
    %cst_350 = arith.constant dense<0.000000e+00> : vector<16xf32>
    %501 = vector.multi_reduction <add>, %500, %cst_350 [1] : vector<16x32xf32> to vector<16xf32>
    %502 = vector.shape_cast %501 : vector<16xf32> to vector<16x1xf32>
    %cst_351 = arith.constant 3.200000e+01 : f32
    %503 = vector.broadcast %cst_351 : f32 to vector<16x1xf32>
    %504 = arith.divf %502, %503 : vector<16x1xf32>
    %505 = vector.broadcast %497 : vector<16x1xf32> to vector<16x32xf32>
    %506 = arith.subf %493, %505 : vector<16x32xf32>
    %cst_352 = arith.constant 9.99999996E-13 : f32
    %507 = vector.broadcast %cst_352 : f32 to vector<16x1xf32>
    %508 = arith.addf %504, %507 : vector<16x1xf32>
    %509 = math.rsqrt %508 : vector<16x1xf32>
    %510 = vector.broadcast %509 : vector<16x1xf32> to vector<16x32xf32>
    %511 = arith.mulf %506, %510 : vector<16x32xf32>
    %512 = vector.broadcast %266 : vector<1x32xf32> to vector<16x32xf32>
    %513 = arith.mulf %511, %512 : vector<16x32xf32>
    %514 = vector.broadcast %267 : vector<1x32xf32> to vector<16x32xf32>
    %515 = arith.addf %513, %514 : vector<16x32xf32>
    %c0_353 = arith.constant 0 : index
    %c0_354 = arith.constant 0 : index
    %516 = vector.load %arg13[%c0_353, %c0_354] : memref<16x32xf32, #tpu.memory_space<vmem>>, vector<16x32xf32>
    tpu.vector_store %arg13[%c0_353, %c0_354], %515 {strides = array<i32>} : memref<16x32xf32, #tpu.memory_space<vmem>>, vector<16x32xf32>,
    return
  }
}

</mosaic_0001>

<bundles_post_ra>
// kernel: transformer_encoder.1
= control target key start
LH: loop header
LB: loop body
LE: loop exit
PB: predicated region body
PF: predicated region fallthrough
CT: control target
= control target key end

     0   :  { %v4904_v1 = vmov 0.0   ;;  %vm4905_vm0 = vmmov 0   ;;  %vm75_vm1 = vcmask 261120   ;;  %s5782_s0 = inlined_call_operand.vmem [shape: f32[16,32], index: 0, kind: input, shape index: {}]   ;;  %s5783_s1 = inlined_call_operand.vmem [shape: f32[16,16], index: 1, kind: input, shape index: {}]   ;;  %s5784_s2 = inlined_call_operand.vmem [shape: bf16[2,4,32,8], index: 2, kind: input, shape index: {}]   ;;  %s5785_s3 = inlined_call_operand.vmem [shape: bf16[2,4,32,8], index: 3, kind: input, shape index: {}]   ;;  %s5786_s4 = inlined_call_operand.vmem [shape: bf16[2,4,32,8], index: 4, kind: input, shape index: {}]   ;;  %s5787_s5 = inlined_call_operand.vmem [shape: f32[2,4,1,8], index: 5, kind: input, shape index: {}]   ;;  %s5788_s6 = inlined_call_operand.vmem [shape: f32[2,4,1,8], index: 6, kind: input, shape index: {}]   ;;  %s5789_s7 = inlined_call_operand.vmem [shape: f32[2,4,1,8], index: 7, kind: input, shape index: {}]   ;;  %s5790_s8 = inlined_call_operand.vmem [shape: bf16[2,4,8,32], index: 8, kind: input, shape index: {}]   ;;  %s5791_s9 = inlined_call_operand.vmem [shape: f32[2,6,32], index: 9, kind: input, shape index: {}]   ;;  %s5792_s10 = inlined_call_operand.vmem [shape: bf16[2,32,64], index: 10, kind: input, shape index: {}]   ;;  %s5793_s11 = inlined_call_operand.vmem [shape: f32[2,1,64], index: 11, kind: input, shape index: {}]   ;;  %s5794_s12 = inlined_call_operand.vmem [shape: bf16[2,64,32], index: 12, kind: input, shape index: {}]   ;;  %s5795_s13 = inlined_call_operand.hbm [shape: f32[16,32], index: 13, kind: output, shape index: {}]  }
   0x1   :  { %v4728_v0 = vld [vmem:[%s5785_s3] sm:$0xff]   ;;  %4299 = vmatprep.subr.bf16.mxu1 %v4904_v1  ;;  %v4729_v2 = vld [vmem:[%s5785_s3 + $0x8] sm:$0xff]   ;;  %4291 = vmatprep.subr.bf16.mxu0 %v4904_v1 }
   0x2   :  { %4300 = vmatpush3.bf16.msra.mxu1 %v4728_v0  ;;  %4303 = vmatprep.mubr.msk.bf16.mxu1 %vm4905_vm0, %v4904_v1  ;;  %v4730_v3 = vld [vmem:[%s5784_s2] sm:$0xff]   ;;  %v47_v5 = vld [vmem:[%s5782_s0 + $0x8] sm:$0xff] }
   0x3   :  { %4301 = vmatprep.subr.bf16.mxu1 %v4904_v1  ;;  %v46_v4 = vld [vmem:[%s5782_s0] sm:$0xff]  ;;  %4295 = vmatprep.mubr.msk.bf16.mxu0 %vm4905_vm0, %v4904_v1  ;;  %v4731_v6 = vld [vmem:[%s5784_s2 + $0x8] sm:$0xff]  }
   0x4   :  { %4292 = vmatpush3.bf16.msra.mxu0 %v4730_v3  ;;  %v5004_v7 = vpack.c.bf16 %v47_v5, %v46_v4 }
   0x5   :  { %4293 = vmatprep.subr.bf16.mxu0 %v4904_v1 }
   0x6   :  { %4302 = vmatpush3.bf16.msra.mxu1 %v4729_v2 }
   0x8   :  { %4294 = vmatpush3.bf16.msra.mxu0 %v4731_v6 }
   0x9   :  { %4304 = vmatmul.mubr.msk.bf16.vlgmr.msra.gmra.mrb[0].mxu1 %vm75_vm1, %v5004_v7  ;;  %4307 = vmatprep.subr.bf16.mxu0 %v4904_v1 }
   0xb   :  { %4296 = vmatmul.mubr.msk.bf16.vlgmr.msra.gmra.mrb[0].mxu0 %vm75_vm1, %v5004_v7 }
   0xc   :  { %4311 = vmatprep.mubr.msk.bf16.mxu0 %vm4905_vm0, %v4904_v1 }
   0xd   :  { %18 = vsyncpa [#allocation3], 0  ;;  %v3855_v8 = vld [vmem:[%s5788_s6] ss:$0 sm:$0xff]  ;;  %vm248_vm2 = vcmask 64512   ;;  %v4733_v25 = vld [vmem:[%s5786_s4 + $0x8] sm:$0xff]  }
   0xe   :  { %v3851_v10 = vld [vmem:[%s5787_s5] ss:$0 sm:$0xff]  ;;  %vm5022_vm3 = vmpackc.low %vm248_vm2, %vm248_vm2  ;;  %vm340_vm4 = vcmask 130048   ;;  %v5055_v31 = vld [vmem:[%s5783_s1 + $0x8] sm:$0xff]  ;;  %vm774_vm5 = vcmask 1043456   ;;  %vm1854_vm6 = vcmask 523264  }
   0xf   :  { %v4732_v24 = vld [vmem:[%s5786_s4] sm:$0xff]   ;;  %v4736_v54 = vld [vmem:[%s5784_s2 + $0x10] sm:$0xff]   ;;  %v4737_v55 = vld [vmem:[%s5784_s2 + $0x18] sm:$0xff]  }
  0x10   :  { %4308 = vmatpush3.bf16.msra.mxu0 %v4732_v24  ;;  %v5050_v28 = vld [vmem:[%s5783_s1] sm:$0xff]  ;;  %v4734_v62 = vld [vmem:[%s5785_s3 + $0x10] sm:$0xff]   ;;  %v4735_v0 = vld [vmem:[%s5785_s3 + $0x18] sm:$0xff]  }
  0x11   :  { %4309 = vmatprep.subr.bf16.mxu0 %v4904_v1  ;;  %v3859_v49 = vld [vmem:[%s5789_s7] ss:$0 sm:$0xff]  ;;  %v3873_v2 = vld [vmem:[%s5787_s5 + $0x1] ss:$0 sm:$0xff]  ;;  %v4738_v24 = vld [vmem:[%s5786_s4 + $0x10] sm:$0xff]  }
  0x14   :  { %4310 = vmatpush3.bf16.msra.mxu0 %v4733_v25  ;;  %v4739_v25 = vld [vmem:[%s5786_s4 + $0x18] sm:$0xff]  }
  0x15   :  { %4328 = vmatprep.subr.bf16.mxu0 %v4904_v1 }
  0x17   :  { %4312 = vmatmul.mubr.msk.bf16.vlgmr.msra.gmra.mrb[4].mxu0 %vm75_vm1, %v5004_v7 }
  0x18   :  { %4332 = vmatprep.mubr.msk.bf16.mxu0 %vm4905_vm0, %v4904_v1  ;;  %4329 = vmatpush3.bf16.msra.mxu0 %v4736_v54 }
  0x19   :  { %4330 = vmatprep.subr.bf16.mxu0 %v4904_v1 }
  0x1c   :  { %4331 = vmatpush3.bf16.msra.mxu0 %v4737_v55 }
  0x1d   :  { %4344 = vmatprep.subr.bf16.mxu0 %v4904_v1 }
  0x1f   :  { %4333 = vmatmul.mubr.msk.bf16.vlgmr.msra.gmra.mrb[8].mxu0 %vm75_vm1, %v5004_v7 }
  0x20   :  { %4348 = vmatprep.mubr.msk.bf16.mxu0 %vm4905_vm0, %v4904_v1  ;;  %4345 = vmatpush3.bf16.msra.mxu0 %v4738_v24 }
  0x21   :  { %4346 = vmatprep.subr.bf16.mxu0 %v4904_v1 }
  0x24   :  { %4347 = vmatpush3.bf16.msra.mxu0 %v4739_v25 }
  0x25   :  { %4359 = vmatprep.subr.bf16.mxu0 %v4904_v1 }
  0x27   :  { %4349 = vmatmul.mubr.msk.bf16.vlgmr.msra.gmra.mrb[12].mxu0 %vm75_vm1, %v5004_v7 }
  0x28   :  { %4361 = vmatprep.mubr.msk.bf16.mxu0 %vm4905_vm0, %v4904_v1 }
  0xdc   :  { %v177_v9 = vpop.f32.mrb[0].mxu1 }
  0xdd   :  { %v4305_v11 = vpop.f32.mrb[1].mxu1  ;;  %v178_v14 = vadd.f32 %v3855_v8, %v177_v9 }
  0xde   :  { %v180_v12 = vpop.f32.mrb[2].mxu1  ;;  %v113_v13 = vpop.f32.mrb[0].mxu0 }
  0xdf   :  { %v181_v15 = vadd.f32 %v3855_v8, %v180_v12  ;;  %v4306_v16 = vpop.f32.mrb[3].mxu1  ;;  %v114_v17 = vadd.f32 %v3851_v10, %v113_v13  ;;  %v4297_v18 = vpop.f32.mrb[1].mxu0 }
  0xe0   :  { %v116_v20 = vpop.f32.mrb[2].mxu0 }
  0xe1   :  { %v4675_v21 = vpack.c.bf16 %v181_v15, %v178_v14  ;;  %v4298_v22 = vpop.f32.mrb[3].mxu0  ;;  %4319 = vmatprep.mubr.msk.f32.mxu1 %vm248_vm2, %v114_v17  ;;  %v117_v23 = vadd.f32 %v3851_v10, %v116_v20  ;;  %v3882_v15 = vld [vmem:[%s5788_s6 + $0x1] ss:$0 sm:$0xff] }
  0xe3   :  { %4677 = vmatprep.subr.msk.bf16.mxu1 %vm5022_vm3, %v4675_v21 }
  0xe4   :  { %4680 = vmatpush3.bf16.xpose.msk.msra.mxu1 %vm5022_vm3, %v4675_v21 }
  0xe5   :  { %4322 = vmatprep.subr.bf16.mxu1 %v4904_v1 }
  0xea   :  { %v241_v46 = vpop.f32.mrb[4].mxu0 }
  0xeb   :  { %4320 = vmatmul.mubr.msk.f32.vlgmr.msra.gmra.mrb[4].mxu1 %vm248_vm2, %v117_v23  ;;  %v4313_v47 = vpop.f32.mrb[5].mxu0  ;;  %v242_v51 = vadd.f32 %v3859_v49, %v241_v46 }
  0xec   :  { %4324 = vmatprep.mubr.msk.bf16.mxu1 %vm4905_vm0, %v4904_v1  ;;  %v244_v48 = vpop.f32.mrb[6].mxu0 }
  0xed   :  { %v4314_v50 = vpop.f32.mrb[7].mxu0  ;;  %v245_v52 = vadd.f32 %v3859_v49, %v244_v48  ;;  %v3891_v49 = vld [vmem:[%s5789_s7 + $0x1] ss:$0 sm:$0xff] }
  0xef   :  { %v364_v53 = vpack.c.bf16 %v245_v52, %v242_v51 }
  0xf1   :  { %4323 = vmatpush3.bf16.msra.mxu1 %v364_v53 }
  0xf2   :  { %4336 = vmatprep.subr.bf16.mxu1 %v4904_v1  ;;  %v470_v3 = vpop.f32.mrb[8].mxu0 }
  0xf3   :  { %v471_v4 = vadd.f32 %v3873_v2, %v470_v3  ;;  %v4334_v5 = vpop.f32.mrb[9].mxu0 }
  0xf4   :  { %v473_v6 = vpop.f32.mrb[10].mxu0 }
  0xf5   :  { %v474_v8 = vadd.f32 %v3873_v2, %v473_v6  ;;  %v4335_v9 = vpop.f32.mrb[11].mxu0  ;;  %v3900_v2 = vld [vmem:[%s5790_s8 + $0x4] sm:$0xf] }
  0xf6   :  { %v776_v3 = vsel %vm774_vm5, %v3900_v2, 0 }
  0xfa   :  { %v602_v46 = vpop.f32.mrb[12].mxu0 }
  0xfb   :  { %v4350_v47 = vpop.f32.mrb[13].mxu0  ;;  %v603_v51 = vadd.f32 %v3891_v49, %v602_v46 }
  0xfc   :  { %v605_v48 = vpop.f32.mrb[14].mxu0 }
  0xfd   :  { %v4351_v50 = vpop.f32.mrb[15].mxu0  ;;  %v606_v52 = vadd.f32 %v3891_v49, %v605_v48 }
  0xff   :  { %v723_v53 = vpack.c.bf16 %v606_v52, %v603_v51 }
 0x101   :  { %4360 = vmatpush3.bf16.msra.mxu0 %v723_v53 }
 0x102   :  { %4371 = vmatprep.subr.bf16.mxu0 %v4904_v1 }
 0x1be   :  { %v4321_v26 = vpop.f32.mrb[4].mxu1 }
 0x1bf   :  { %v327_v27 = vpop.f32.mrb[5].mxu1  ;;  %v337_v29 = vmul.f32 0.35355338, %v4321_v26 }
 0x1c0   :  { %v336_v30 = vmul.f32 0.35355338, %v327_v27 }
 0x1c1   :  { %v339_v34 = vadd.f32 %v337_v29, %v5055_v31 }
 0x1c2   :  { %v338_v32 = vadd.f32 %v336_v30, %v5050_v28 }
 0x1c3   :  { %v344_v35 = vsel %vm340_vm4, %v339_v34, -inf }
 0x1c4   :  { %v341_v33 = vsel %vm340_vm4, %v338_v32, -inf }
 0x1c5   :  { %342 = vmax.xlane.f32.xlu0 %v341_v33 }
 0x1c9   :  { %345 = vmax.xlane.f32.xlu0 %v344_v35 }
 0x252   :  { %v343_v36 = vpop.xlane.xlu0 %342 }
 0x253   :  { %v347_v37 = vsub.f32 %v338_v32, %v343_v36 }
 0x255   :  { %v349_v38 = vmul.f32 1.442695, %v347_v37 }
 0x256   :  { %v346_v39 = vpop.xlane.xlu0 %345 }
 0x257   :  { %4788 = vpow2.f32 %v349_v38  ;;  %v348_v40 = vsub.f32 %v339_v34, %v346_v39 }
 0x259   :  { %v351_v41 = vmul.f32 1.442695, %v348_v40 }
 0x25b   :  { %4790 = vpow2.f32 %v351_v41 }
 0x261   :  { %v4789_v42 = vpop.eup %4788 }
 0x262   :  { %v353_v43 = vsel %vm340_vm4, %v4789_v42, 0.0 }
 0x263   :  { %354 = vadd.xlane.f32.xlu1 %v353_v43 }
 0x265   :  { %v4791_v44 = vpop.eup %4790 }
 0x266   :  { %v356_v45 = vsel %vm340_vm4, %v4791_v44, 0.0 }
 0x267   :  { %357 = vadd.xlane.f32.xlu1 %v356_v45 }
 0x2f0   :  { %v355_v56 = vpop.xlane.xlu1 %354 }
 0x2f1   :  { %4792 = vrcp.f32 %v355_v56 }
 0x2f4   :  { %v358_v57 = vpop.xlane.xlu1 %357 }
 0x2f5   :  { %4794 = vrcp.f32 %v358_v57 }
 0x2fb   :  { %v4793_v58 = vpop.eup %4792 }
 0x2fc   :  { %v361_v60 = vmul.f32 %v4793_v58, %v4789_v42 }
 0x2ff   :  { %v4795_v59 = vpop.eup %4794 }
 0x300   :  { %v362_v61 = vmul.f32 %v4795_v59, %v4791_v44  ;;  %v410_v59 = vld [vmem:[%s5790_s8] sm:$0xf] }
 0x302   :  { %v363_v63 = vpack.c.bf16 %v362_v61, %v361_v60 }
 0x304   :  { %4325 = vmatmul.mubr.msk.bf16.vlgmr.msra.gmra.mrb[8].mxu1 %vm340_vm4, %v363_v63  ;;  %v4740_v63 = vld [vmem:[%s5785_s3 + $0x20] sm:$0xff]  }
 0x305   :  { %4337 = vmatpush3.bf16.msra.mxu1 %v4734_v62  ;;  %4340 = vmatprep.mubr.msk.bf16.mxu1 %vm4905_vm0, %v4904_v1  ;;  %v823_v62 = vsel %vm774_vm5, %v410_v59, 0 }
 0x306   :  { %4338 = vmatprep.subr.bf16.mxu1 %v4904_v1 }
 0x309   :  { %4339 = vmatpush3.bf16.msra.mxu1 %v4735_v0  ;;  %v4741_v0 = vld [vmem:[%s5785_s3 + $0x28] sm:$0xff]  }
 0x30c   :  { %4341 = vmatmul.mubr.msk.bf16.vlgmr.msra.gmra.mrb[12].mxu1 %vm75_vm1, %v5004_v7 }
 0x30d   :  { %4356 = vmatprep.mubr.msk.f32.mxu1 %vm248_vm2, %v471_v4 }
 0x3d7   :  { %v5095_v10 = vpop.f32.mrb[8].mxu1 }
 0x3d8   :  { %v4326_v11 = vpop.f32.mrb[9].mxu1 }
 0x3d9   :  { %v5097_v12 = vpop.f32.mrb[10].mxu1  ;;  %v4743_v11 = vld [vmem:[%s5784_s2 + $0x28] sm:$0xff]  }
 0x3da   :  { %v409_v13 = vpack.c.bf16 %v5097_v12, %v5095_v10  ;;  %v4327_v14 = vpop.f32.mrb[11].mxu1 }
 0x3df   :  { %v536_v16 = vpop.f32.mrb[12].mxu1 }
 0x3e0   :  { %v4342_v17 = vpop.f32.mrb[13].mxu1  ;;  %v537_v20 = vadd.f32 %v3882_v15, %v536_v16  ;;  %v3917_v16 = vld [vmem:[%s5788_s6 + $0x2] ss:$0 sm:$0xff] }
 0x3e1   :  { %v539_v18 = vpop.f32.mrb[14].mxu1 }
 0x3e2   :  { %v540_v21 = vadd.f32 %v3882_v15, %v539_v18  ;;  %v4343_v22 = vpop.f32.mrb[15].mxu1 }
 0x3e4   :  { %v4681_v23 = vpack.c.bf16 %v540_v21, %v537_v20 }
 0x3e6   :  { %4683 = vmatprep.subr.msk.bf16.mxu1 %vm5022_vm3, %v4681_v23 }
 0x3e7   :  { %4686 = vmatpush3.bf16.xpose.msk.msra.mxu1 %vm5022_vm3, %v4681_v23 }
 0x3e8   :  { %4365 = vmatprep.subr.bf16.mxu1 %v4904_v1 }
 0x3ee   :  { %4357 = vmatmul.mubr.msk.f32.vlgmr.msra.gmra.mrb[6].mxu1 %vm248_vm2, %v474_v8  ;;  %v4742_v8 = vld [vmem:[%s5784_s2 + $0x20] sm:$0xff]  }
 0x3ef   :  { %4367 = vmatprep.mubr.msk.bf16.mxu1 %vm4905_vm0, %v4904_v1  ;;  %4366 = vmatpush3.bf16.msra.mxu1 %v776_v3 }
 0x3f0   :  { %4377 = vmatprep.subr.bf16.mxu1 %v4904_v1 }
 0x4c1   :  { %v4358_v26 = vpop.f32.mrb[6].mxu1 }
 0x4c2   :  { %v697_v27 = vmul.f32 0.35355338, %v4358_v26  ;;  %v687_v29 = vpop.f32.mrb[7].mxu1 }
 0x4c3   :  { %v696_v30 = vmul.f32 0.35355338, %v687_v29 }
 0x4c4   :  { %v699_v32 = vadd.f32 %v697_v27, %v5055_v31 }
 0x4c5   :  { %v698_v33 = vadd.f32 %v696_v30, %v5050_v28 }
 0x4c6   :  { %v703_v34 = vsel %vm340_vm4, %v699_v32, -inf }
 0x4c7   :  { %704 = vmax.xlane.f32.xlu1 %v703_v34  ;;  %v700_v35 = vsel %vm340_vm4, %v698_v33, -inf }
 0x4c8   :  { %701 = vmax.xlane.f32.xlu0 %v700_v35 }
 0x554   :  { %v705_v36 = vpop.xlane.xlu1 %704 }
 0x555   :  { %v707_v37 = vsub.f32 %v699_v32, %v705_v36  ;;  %v702_v38 = vpop.xlane.xlu0 %701 }
 0x556   :  { %v706_v39 = vsub.f32 %v698_v33, %v702_v38  ;;  %v3908_v33 = vld [vmem:[%s5787_s5 + $0x2] ss:$0 sm:$0xff] }
 0x557   :  { %v710_v40 = vmul.f32 1.442695, %v707_v37 }
 0x558   :  { %v708_v41 = vmul.f32 1.442695, %v706_v39 }
 0x559   :  { %4796 = vpow2.f32 %v710_v40  ;;  %v4744_v40 = vld [vmem:[%s5786_s4 + $0x20] sm:$0xff]  }
 0x55a   :  { %4798 = vpow2.f32 %v708_v41  ;;  %v4745_v41 = vld [vmem:[%s5786_s4 + $0x28] sm:$0xff]  }
 0x563   :  { %v4797_v42 = vpop.eup %4796 }
 0x564   :  { %v4799_v43 = vpop.eup %4798  ;;  %v715_v44 = vsel %vm340_vm4, %v4797_v42, 0.0 }
 0x565   :  { %716 = vadd.xlane.f32.xlu1 %v715_v44  ;;  %v712_v45 = vsel %vm340_vm4, %v4799_v43, 0.0 }
 0x566   :  { %713 = vadd.xlane.f32.xlu0 %v712_v45 }
 0x5f2   :  { %v717_v54 = vpop.xlane.xlu1 %716 }
 0x5f3   :  { %4800 = vrcp.f32 %v717_v54  ;;  %v714_v55 = vpop.xlane.xlu0 %713 }
 0x5f4   :  { %4802 = vrcp.f32 %v714_v55 }
 0x5fd   :  { %v4801_v56 = vpop.eup %4800 }
 0x5fe   :  { %v4803_v57 = vpop.eup %4802  ;;  %v721_v58 = vmul.f32 %v4801_v56, %v4797_v42 }
 0x5ff   :  { %v720_v60 = vmul.f32 %v4803_v57, %v4799_v43 }
 0x601   :  { %v722_v61 = vpack.c.bf16 %v721_v58, %v720_v60 }
 0x603   :  { %4362 = vmatmul.mubr.msk.bf16.vlgmr.msra.gmra.mrb[16].mxu0 %vm340_vm4, %v722_v61 }
 0x604   :  { %4372 = vmatpush3.bf16.msra.mxu0 %v823_v62  ;;  %4373 = vmatprep.mubr.msk.bf16.mxu0 %vm4905_vm0, %v4904_v1  ;;  %v3926_v62 = vld [vmem:[%s5789_s7 + $0x2] ss:$0 sm:$0xff] }
 0x605   :  { %4385 = vmatprep.subr.bf16.mxu0 %v4904_v1 }
 0x60b   :  { %4374 = vmatmul.mubr.msk.bf16.vlgmr.msra.gmra.mrb[20].mxu0 %vm248_vm2, %v409_v13 }
 0x60c   :  { %4386 = vmatpush3.bf16.msra.mxu0 %v4740_v63  ;;  %4389 = vmatprep.mubr.msk.bf16.mxu0 %vm4905_vm0, %v4904_v1 }
 0x60d   :  { %4387 = vmatprep.subr.bf16.mxu0 %v4904_v1 }
 0x610   :  { %4388 = vmatpush3.bf16.msra.mxu0 %v4741_v0 }
 0x613   :  { %4390 = vmatmul.mubr.msk.bf16.vlgmr.msra.gmra.mrb[24].mxu0 %vm75_vm1, %v5004_v7 }
 0x6d6   :  { %v761_v4 = vpop.f32.mrb[16].mxu0 }
 0x6d7   :  { %v4363_v5 = vpop.f32.mrb[17].mxu0 }
 0x6d8   :  { %v764_v6 = vpop.f32.mrb[18].mxu0 }
 0x6d9   :  { %v768_v9 = vpack.c.bf16 %v764_v6, %v761_v4  ;;  %v4364_v10 = vpop.f32.mrb[19].mxu0 }
 0x6db   :  { %4368 = vmatmul.mubr.msk.bf16.vlgmr.msra.gmra.mrb[16].mxu1 %vm248_vm2, %v768_v9 }
 0x6dc   :  { %4378 = vmatpush3.bf16.msra.mxu1 %v4742_v8  ;;  %4381 = vmatprep.mubr.msk.bf16.mxu1 %vm4905_vm0, %v4904_v1 }
 0x6dd   :  { %4379 = vmatprep.subr.bf16.mxu1 %v4904_v1 }
 0x6de   :  { %v859_v12 = vpop.f32.mrb[20].mxu0 }
 0x6df   :  { %v4375_v13 = vpop.f32.mrb[21].mxu0 }
 0x6e0   :  { %v862_v14 = vpop.f32.mrb[22].mxu0  ;;  %4380 = vmatpush3.bf16.msra.mxu1 %v4743_v11  ;;  %v3935_v13 = vld [vmem:[%s5790_s8 + $0x8] sm:$0xf] }
 0x6e1   :  { %v4376_v15 = vpop.f32.mrb[23].mxu0  ;;  %4393 = vmatprep.subr.bf16.mxu1 %v4904_v1 }
 0x6e2   :  { %v4748_v15 = vld [vmem:[%s5784_s2 + $0x30] sm:$0xff]  }
 0x6e3   :  { %4382 = vmatmul.mubr.msk.bf16.vlgmr.msra.gmra.mrb[20].mxu1 %vm75_vm1, %v5004_v7 }
 0x6e4   :  { %4397 = vmatprep.mubr.msk.bf16.mxu1 %vm4905_vm0, %v4904_v1  ;;  %4394 = vmatpush3.bf16.msra.mxu1 %v4744_v40 }
 0x6e5   :  { %4395 = vmatprep.subr.bf16.mxu1 %v4904_v1 }
 0x6e6   :  { %v991_v17 = vpop.f32.mrb[24].mxu0 }
 0x6e7   :  { %v992_v18 = vadd.f32 %v3917_v16, %v991_v17  ;;  %v4391_v20 = vpop.f32.mrb[25].mxu0 }
 0x6e8   :  { %v994_v21 = vpop.f32.mrb[26].mxu0  ;;  %4396 = vmatpush3.bf16.msra.mxu1 %v4745_v41 }
 0x6e9   :  { %v995_v22 = vadd.f32 %v3917_v16, %v994_v21  ;;  %v4392_v23 = vpop.f32.mrb[27].mxu0  ;;  %4408 = vmatprep.subr.bf16.mxu1 %v4904_v1  ;;  %v4749_v16 = vld [vmem:[%s5784_s2 + $0x38] sm:$0xff]   ;;  %v4746_v21 = vld [vmem:[%s5785_s3 + $0x30] sm:$0xff]  }
 0x6eb   :  { %v4687_v24 = vpack.c.bf16 %v995_v22, %v992_v18  ;;  %4398 = vmatmul.mubr.msk.bf16.vlgmr.msra.gmra.mrb[24].mxu1 %vm75_vm1, %v5004_v7 }
 0x6ec   :  { %4410 = vmatprep.mubr.msk.bf16.mxu1 %vm4905_vm0, %v4904_v1 }
 0x6ed   :  { %4689 = vmatprep.subr.msk.bf16.mxu0 %vm5022_vm3, %v4687_v24 }
 0x6ee   :  { %4692 = vmatpush3.bf16.xpose.msk.msra.mxu0 %vm5022_vm3, %v4687_v24  ;;  %v4747_v24 = vld [vmem:[%s5785_s3 + $0x38] sm:$0xff]  }
 0x6ef   :  { %4414 = vmatprep.subr.bf16.mxu0 %v4904_v1 }
 0x7ae   :  { %v812_v25 = vpop.f32.mrb[16].mxu1 }
 0x7af   :  { %v5185_v26 = vadd.f32 %v859_v12, %v812_v25  ;;  %v4369_v27 = vpop.f32.mrb[17].mxu1  ;;  %v3942_v25 = vld [vmem:[%s5787_s5 + $0x3] ss:$0 sm:$0xff] }
 0x7b0   :  { %v815_v29 = vpop.f32.mrb[18].mxu1 }
 0x7b1   :  { %v5187_v30 = vadd.f32 %v862_v14, %v815_v29  ;;  %v4370_v32 = vpop.f32.mrb[19].mxu1  ;;  %v1230_v14 = vsel %vm774_vm5, %v3935_v13, 0 }
 0x7b6   :  { %v925_v34 = vpop.f32.mrb[20].mxu1 }
 0x7b7   :  { %v926_v35 = vadd.f32 %v3908_v33, %v925_v34  ;;  %v4383_v36 = vpop.f32.mrb[21].mxu1 }
 0x7b8   :  { %v928_v37 = vpop.f32.mrb[22].mxu1 }
 0x7b9   :  { %v929_v38 = vadd.f32 %v3908_v33, %v928_v37  ;;  %v4384_v39 = vpop.f32.mrb[23].mxu1  ;;  %4405 = vmatprep.mubr.msk.f32.mxu0 %vm248_vm2, %v926_v35 }
 0x7bb   :  { %4406 = vmatmul.mubr.msk.f32.vlgmr.msra.gmra.mrb[28].mxu0 %vm248_vm2, %v929_v38 }
 0x7bc   :  { %4416 = vmatprep.mubr.msk.bf16.mxu0 %vm4905_vm0, %v4904_v1  ;;  %4415 = vmatpush3.bf16.msra.mxu0 %v1230_v14 }
 0x7bd   :  { %4428 = vmatprep.subr.bf16.mxu0 %v4904_v1 }
 0x7be   :  { %v1057_v50 = vpop.f32.mrb[24].mxu1 }
 0x7bf   :  { %v4399_v51 = vpop.f32.mrb[25].mxu1  ;;  %v1058_v63 = vadd.f32 %v3926_v62, %v1057_v50 }
 0x7c0   :  { %v1060_v0 = vpop.f32.mrb[26].mxu1 }
 0x7c1   :  { %v4400_v2 = vpop.f32.mrb[27].mxu1  ;;  %v1061_v3 = vadd.f32 %v3926_v62, %v1060_v0 }
 0x7c3   :  { %v1178_v4 = vpack.c.bf16 %v1061_v3, %v1058_v63 }
 0x7c5   :  { %4409 = vmatpush3.bf16.msra.mxu1 %v1178_v4 }
 0x7c6   :  { %4420 = vmatprep.subr.bf16.mxu1 %v4904_v1 }
 0x88e   :  { %v4407_v42 = vpop.f32.mrb[28].mxu0 }
 0x88f   :  { %v1152_v43 = vmul.f32 0.35355338, %v4407_v42  ;;  %v1142_v44 = vpop.f32.mrb[29].mxu0  ;;  %v3951_v42 = vld [vmem:[%s5788_s6 + $0x3] ss:$0 sm:$0xff] }
 0x890   :  { %v1151_v45 = vmul.f32 0.35355338, %v1142_v44 }
 0x891   :  { %v1154_v46 = vadd.f32 %v1152_v43, %v5055_v31 }
 0x892   :  { %v1153_v47 = vadd.f32 %v1151_v45, %v5050_v28 }
 0x893   :  { %v1158_v48 = vsel %vm340_vm4, %v1154_v46, -inf }
 0x894   :  { %1159 = vmax.xlane.f32.xlu1 %v1158_v48  ;;  %v1155_v49 = vsel %vm340_vm4, %v1153_v47, -inf }
 0x895   :  { %1156 = vmax.xlane.f32.xlu0 %v1155_v49 }
 0x921   :  { %v1160_v52 = vpop.xlane.xlu1 %1159 }
 0x922   :  { %v1162_v53 = vsub.f32 %v1154_v46, %v1160_v52  ;;  %v1157_v54 = vpop.xlane.xlu0 %1156 }
 0x923   :  { %v1161_v55 = vsub.f32 %v1153_v47, %v1157_v54 }
 0x924   :  { %v1165_v56 = vmul.f32 1.442695, %v1162_v53 }
 0x925   :  { %v1163_v57 = vmul.f32 1.442695, %v1161_v55 }
 0x926   :  { %4804 = vpow2.f32 %v1165_v56 }
 0x927   :  { %4806 = vpow2.f32 %v1163_v57 }
 0x930   :  { %v4805_v58 = vpop.eup %4804 }
 0x931   :  { %v4807_v59 = vpop.eup %4806  ;;  %v1170_v60 = vsel %vm340_vm4, %v4805_v58, 0.0 }
 0x932   :  { %1171 = vadd.xlane.f32.xlu1 %v1170_v60  ;;  %v1167_v61 = vsel %vm340_vm4, %v4807_v59, 0.0 }
 0x933   :  { %1168 = vadd.xlane.f32.xlu0 %v1167_v61 }
 0x9bf   :  { %v1172_v5 = vpop.xlane.xlu1 %1171 }
 0x9c0   :  { %4808 = vrcp.f32 %v1172_v5  ;;  %v1169_v6 = vpop.xlane.xlu0 %1168  ;;  %v3960_v5 = vld [vmem:[%s5789_s7 + $0x3] ss:$0 sm:$0xff] }
 0x9c1   :  { %4810 = vrcp.f32 %v1169_v6 }
 0x9ca   :  { %v4809_v8 = vpop.eup %4808 }
 0x9cb   :  { %v4811_v9 = vpop.eup %4810  ;;  %v1176_v10 = vmul.f32 %v4809_v8, %v4805_v58 }
 0x9cc   :  { %v1175_v11 = vmul.f32 %v4811_v9, %v4807_v59 }
 0x9ce   :  { %v1177_v12 = vpack.c.bf16 %v1176_v10, %v1175_v11  ;;  %v3969_v11 = vld [vmem:[%s5790_s8 + $0xc] sm:$0xf] }
 0x9d0   :  { %4411 = vmatmul.mubr.msk.bf16.vlgmr.msra.gmra.mrb[28].mxu1 %vm340_vm4, %v1177_v12  ;;  %v1639_v12 = vsel %vm774_vm5, %v3969_v11, 0 }
 0x9d1   :  { %4424 = vmatprep.mubr.msk.bf16.mxu1 %vm4905_vm0, %v4904_v1  ;;  %4421 = vmatpush3.bf16.msra.mxu1 %v4748_v15 }
 0x9d2   :  { %4422 = vmatprep.subr.bf16.mxu1 %v4904_v1 }
 0x9d5   :  { %4423 = vmatpush3.bf16.msra.mxu1 %v4749_v16 }
 0x9d6   :  { %4436 = vmatprep.subr.bf16.mxu1 %v4904_v1 }
 0x9d8   :  { %4425 = vmatmul.mubr.msk.bf16.vlgmr.msra.gmra.mrb[32].mxu1 %vm75_vm1, %v5004_v7 }
 0x9d9   :  { %4440 = vmatprep.mubr.msk.bf16.mxu1 %vm4905_vm0, %v4904_v1 }
 0xaa3   :  { %v1216_v17 = vpop.f32.mrb[28].mxu1 }
 0xaa4   :  { %v4412_v18 = vpop.f32.mrb[29].mxu1 }
 0xaa5   :  { %v1219_v20 = vpop.f32.mrb[30].mxu1 }
 0xaa6   :  { %v1223_v22 = vpack.c.bf16 %v1219_v20, %v1216_v17  ;;  %v4413_v23 = vpop.f32.mrb[31].mxu1 }
 0xaa8   :  { %4417 = vmatmul.mubr.msk.bf16.vlgmr.msra.gmra.mrb[32].mxu0 %vm248_vm2, %v1223_v22 }
 0xaa9   :  { %4429 = vmatpush3.bf16.msra.mxu0 %v4746_v21  ;;  %4432 = vmatprep.mubr.msk.bf16.mxu0 %vm4905_vm0, %v4904_v1 }
 0xaaa   :  { %4430 = vmatprep.subr.bf16.mxu0 %v4904_v1 }
 0xaab   :  { %v1334_v27 = vpop.f32.mrb[32].mxu1 }
 0xaac   :  { %v1335_v29 = vadd.f32 %v3942_v25, %v1334_v27  ;;  %v4426_v32 = vpop.f32.mrb[33].mxu1  ;;  %v1684_v27 = vlaneseq }
 0xaad   :  { %4431 = vmatpush3.bf16.msra.mxu0 %v4747_v24  ;;  %v1337_v33 = vpop.f32.mrb[34].mxu1 }
 0xaae   :  { %v1338_v34 = vadd.f32 %v3942_v25, %v1337_v33  ;;  %v4427_v35 = vpop.f32.mrb[35].mxu1  ;;  %v5310_v33 = vld [vmem:[%s5791_s9] sm:$0x3f] }
 0xab0   :  { %4433 = vmatmul.mubr.msk.bf16.vlgmr.msra.gmra.mrb[36].mxu0 %vm75_vm1, %v5004_v7 }
 0xab1   :  { %4448 = vmatprep.mubr.msk.f32.mxu0 %vm248_vm2, %v1335_v29  ;;  %v5304_v29 = vshrl.u32 %v1684_v27, 7 }
 0xab3   :  { %v1686_v32 = vsub.s32 0, %v5304_v29 }
 0xb7b   :  { %v1266_v36 = vpop.f32.mrb[32].mxu0 }
 0xb7c   :  { %v5255_v37 = vadd.f32 %v1266_v36, %v5185_v26  ;;  %v4418_v38 = vpop.f32.mrb[33].mxu0  ;;  %v4750_v26 = vld [vmem:[%s5786_s4 + $0x30] sm:$0xff]  }
 0xb7d   :  { %v1269_v39 = vpop.f32.mrb[34].mxu0  ;;  %4437 = vmatpush3.bf16.msra.mxu1 %v4750_v26 }
 0xb7e   :  { %v5258_v40 = vadd.f32 %v1269_v39, %v5187_v30  ;;  %v4419_v41 = vpop.f32.mrb[35].mxu0  ;;  %v4751_v30 = vld [vmem:[%s5786_s4 + $0x38] sm:$0xff]   ;;  %4438 = vmatprep.subr.bf16.mxu1 %v4904_v1 }
 0xb81   :  { %4439 = vmatpush3.bf16.msra.mxu1 %v4751_v30 }
 0xb82   :  { %4457 = vmatprep.subr.bf16.mxu1 %v4904_v1 }
 0xb83   :  { %v1400_v43 = vpop.f32.mrb[36].mxu0 }
 0xb84   :  { %v4434_v44 = vpop.f32.mrb[37].mxu0  ;;  %v1401_v46 = vadd.f32 %v3951_v42, %v1400_v43  ;;  %4441 = vmatmul.mubr.msk.bf16.vlgmr.msra.gmra.mrb[36].mxu1 %vm75_vm1, %v5004_v7 }
 0xb85   :  { %v1403_v45 = vpop.f32.mrb[38].mxu0  ;;  %4459 = vmatprep.mubr.msk.bf16.mxu1 %vm4905_vm0, %v4904_v1  ;;  %4458 = vmatpush3.bf16.msra.mxu1 %v1639_v12 }
 0xb86   :  { %v1404_v47 = vadd.f32 %v3951_v42, %v1403_v45  ;;  %v4435_v48 = vpop.f32.mrb[39].mxu0  ;;  %4471 = vmatprep.subr.bf16.mxu1 %v4904_v1  ;;  %v4876_v45 = vld [vmem:[%s5782_s0] sm:$0xff] }
 0xb87   :  { %v4877_v48 = vld [vmem:[%s5782_s0 + $0x8] sm:$0xff] }
 0xb88   :  { %v4693_v49 = vpack.c.bf16 %v1404_v47, %v1401_v46 }
 0xb8a   :  { %4695 = vmatprep.subr.msk.bf16.mxu0 %vm5022_vm3, %v4693_v49 }
 0xb8b   :  { %4698 = vmatpush3.bf16.xpose.msk.msra.mxu0 %vm5022_vm3, %v4693_v49 }
 0xb8c   :  { %4451 = vmatprep.subr.bf16.mxu0 %v4904_v1 }
 0xb92   :  { %4449 = vmatmul.mubr.msk.f32.vlgmr.msra.gmra.mrb[30].mxu0 %vm248_vm2, %v1338_v34  ;;  %v1687_v34 = vrot.slane %v5310_v33, %v1686_v32 }
 0xb93   :  { %4453 = vmatprep.mubr.msk.bf16.mxu0 %vm4905_vm0, %v4904_v1 }
 0xc57   :  { %v1466_v2 = vpop.f32.mrb[36].mxu1 }
 0xc58   :  { %v4442_v3 = vpop.f32.mrb[37].mxu1  ;;  %v1467_v8 = vadd.f32 %v3960_v5, %v1466_v2 }
 0xc59   :  { %v1469_v4 = vpop.f32.mrb[38].mxu1 }
 0xc5a   :  { %v4443_v6 = vpop.f32.mrb[39].mxu1  ;;  %v1470_v9 = vadd.f32 %v3960_v5, %v1469_v4 }
 0xc5c   :  { %v1587_v10 = vpack.c.bf16 %v1470_v9, %v1467_v8 }
 0xc5e   :  { %4452 = vmatpush3.bf16.msra.mxu0 %v1587_v10 }
 0xc5f   :  { %4463 = vmatprep.subr.bf16.mxu0 %v4904_v1 }
 0xc65   :  { %v4450_v50 = vpop.f32.mrb[30].mxu0 }
 0xc66   :  { %v1561_v51 = vmul.f32 0.35355338, %v4450_v50  ;;  %v1551_v52 = vpop.f32.mrb[31].mxu0 }
 0xc67   :  { %v1560_v53 = vmul.f32 0.35355338, %v1551_v52 }
 0xc68   :  { %v1563_v54 = vadd.f32 %v1561_v51, %v5055_v31 }
 0xc69   :  { %v1562_v55 = vadd.f32 %v1560_v53, %v5050_v28 }
 0xc6a   :  { %v1567_v56 = vsel %vm340_vm4, %v1563_v54, -inf }
 0xc6b   :  { %1568 = vmax.xlane.f32.xlu1 %v1567_v56  ;;  %v1564_v57 = vsel %vm340_vm4, %v1562_v55, -inf }
 0xc6c   :  { %1565 = vmax.xlane.f32.xlu0 %v1564_v57  ;;  %v4752_v57 = vld [vmem:[%s5792_s10] sm:$0xff]  }
 0xcf8   :  { %v1569_v58 = vpop.xlane.xlu1 %1568 }
 0xcf9   :  { %v1571_v59 = vsub.f32 %v1563_v54, %v1569_v58  ;;  %v1566_v7 = vpop.xlane.xlu0 %1565  ;;  %v4753_v58 = vld [vmem:[%s5792_s10 + $0x8] sm:$0xff]  }
 0xcfa   :  { %v1570_v60 = vsub.f32 %v1562_v55, %v1566_v7 }
 0xcfb   :  { %v1574_v61 = vmul.f32 1.442695, %v1571_v59 }
 0xcfc   :  { %v1572_v62 = vmul.f32 1.442695, %v1570_v60 }
 0xcfd   :  { %4812 = vpow2.f32 %v1574_v61 }
 0xcfe   :  { %4814 = vpow2.f32 %v1572_v62 }
 0xd07   :  { %v4813_v63 = vpop.eup %4812 }
 0xd08   :  { %v4815_v0 = vpop.eup %4814  ;;  %v1579_v31 = vsel %vm340_vm4, %v4813_v63, 0.0 }
 0xd09   :  { %1580 = vadd.xlane.f32.xlu1 %v1579_v31  ;;  %v1576_v28 = vsel %vm340_vm4, %v4815_v0, 0.0 }
 0xd0a   :  { %1577 = vadd.xlane.f32.xlu0 %v1576_v28  ;;  %v1727_v28 = vsub.s32 2, %v5304_v29 }
 0xd0c   :  { %v1728_v8 = vrot.slane %v5310_v33, %v1727_v28 }
 0xd96   :  { %v1581_v13 = vpop.xlane.xlu1 %1580 }
 0xd97   :  { %4816 = vrcp.f32 %v1581_v13  ;;  %v1578_v14 = vpop.xlane.xlu0 %1577  ;;  %v4754_v13 = vld [vmem:[%s5794_s12] sm:$0xff]  }
 0xd98   :  { %4818 = vrcp.f32 %v1578_v14  ;;  %v4755_v14 = vld [vmem:[%s5794_s12 + $0x8] sm:$0xff]  }
 0xda1   :  { %v4817_v15 = vpop.eup %4816 }
 0xda2   :  { %v4819_v16 = vpop.eup %4818  ;;  %v1585_v17 = vmul.f32 %v4817_v15, %v4813_v63  ;;  %v4756_v15 = vld [vmem:[%s5794_s12 + $0x10] sm:$0xff]  }
 0xda3   :  { %v1584_v18 = vmul.f32 %v4819_v16, %v4815_v0  ;;  %v1721_v0 = vsub.s32 1, %v5304_v29  ;;  %v4757_v16 = vld [vmem:[%s5794_s12 + $0x18] sm:$0xff]  }
 0xda5   :  { %v1586_v20 = vpack.c.bf16 %v1585_v17, %v1584_v18  ;;  %v1722_v31 = vrot.slane %v5310_v33, %v1721_v0  ;;  %v3971_v17 = vld [vmem:[%s5793_s11] ss:$0 sm:$0xff] }
 0xda7   :  { %4454 = vmatmul.mubr.msk.bf16.vlgmr.msra.gmra.mrb[40].mxu0 %vm340_vm4, %v1586_v20 }
 0xda8   :  { %4467 = vmatprep.mubr.msk.bf16.mxu0 %vm4905_vm0, %v4904_v1  ;;  %4464 = vmatpush3.bf16.msra.mxu0 %v4752_v57 }
 0xda9   :  { %4465 = vmatprep.subr.bf16.mxu0 %v4904_v1 }
 0xdac   :  { %4466 = vmatpush3.bf16.msra.mxu0 %v4753_v58 }
 0xdad   :  { %4483 = vmatprep.subr.bf16.mxu0 %v4904_v1 }
 0xe7a   :  { %v1625_v21 = vpop.f32.mrb[40].mxu0 }
 0xe7b   :  { %v4455_v22 = vpop.f32.mrb[41].mxu0 }
 0xe7c   :  { %v1628_v23 = vpop.f32.mrb[42].mxu0 }
 0xe7d   :  { %v1632_v24 = vpack.c.bf16 %v1628_v23, %v1625_v21  ;;  %v4456_v25 = vpop.f32.mrb[43].mxu0 }
 0xe7f   :  { %4460 = vmatmul.mubr.msk.bf16.vlgmr.msra.gmra.mrb[40].mxu1 %vm248_vm2, %v1632_v24 }
 0xe80   :  { %4479 = vmatprep.mubr.msk.bf16.mxu1 %vm4905_vm0, %v4904_v1  ;;  %4472 = vmatpush3.bf16.msra.mxu1 %v4754_v13 }
 0xe81   :  { %4473 = vmatprep.subr.bf16.mxu1 %v4904_v1 }
 0xe84   :  { %4474 = vmatpush3.bf16.msra.mxu1 %v4755_v14 }
 0xe85   :  { %4475 = vmatprep.subr.bf16.mxu1 %v4904_v1 }
 0xe88   :  { %4476 = vmatpush3.bf16.msra.mxu1 %v4756_v15 }
 0xe89   :  { %4477 = vmatprep.subr.bf16.mxu1 %v4904_v1 }
 0xe8c   :  { %4478 = vmatpush3.bf16.msra.mxu1 %v4757_v16 }
 0xe8d   :  { %4499 = vmatprep.subr.bf16.mxu1 %v4904_v1 }
 0xf52   :  { %v1675_v35 = vpop.f32.mrb[40].mxu1 }
 0xf53   :  { %v1682_v36 = vadd.f32 %v1675_v35, %v5255_v37  ;;  %v4461_v38 = vpop.f32.mrb[41].mxu1 }
 0xf54   :  { %v1678_v39 = vpop.f32.mrb[42].mxu1 }
 0xf55   :  { %v1688_v41 = vadd.f32 %v1687_v34, %v1682_v36  ;;  %v1683_v42 = vadd.f32 %v1678_v39, %v5258_v40  ;;  %v4462_v43 = vpop.f32.mrb[43].mxu1 }
 0xf57   :  { %v1689_v44 = vadd.f32 %v1687_v34, %v1683_v42  ;;  %v1690_v46 = vadd.f32 %v4876_v45, %v1688_v41 }
 0xf59   :  { %v1692_v47 = vsel %vm75_vm1, %v1690_v46, 0.0  ;;  %v1691_v49 = vadd.f32 %v4877_v48, %v1689_v44 }
 0xf5a   :  { %1693 = vadd.xlane.f32.xlu0 %v1692_v47 }
 0xf5b   :  { %v1695_v37 = vsel %vm75_vm1, %v1691_v49, 0.0 }
 0xf5c   :  { %1696 = vadd.xlane.f32.xlu1 %v1695_v37 }
 0xfe7   :  { %v1694_v26 = vpop.xlane.xlu0 %1693 }
 0xfe8   :  { %v1699_v40 = vmul.f32 0.03125, %v1694_v26 }
 0xfe9   :  { %v1697_v30 = vpop.xlane.xlu1 %1696 }
 0xfea   :  { %v1701_v50 = vsub.f32 %v1690_v46, %v1699_v40  ;;  %v1700_v51 = vmul.f32 0.03125, %v1697_v30  ;;  %v1828_v30 = vsub.s32 3, %v5304_v29 }
 0xfec   :  { %v1702_v52 = vsub.f32 %v1691_v49, %v1700_v51  ;;  %v1703_v53 = vmul.f32 %v1701_v50, %v1701_v50 }
 0xfee   :  { %v1705_v54 = vsel %vm75_vm1, %v1703_v53, 0.0  ;;  %v1704_v55 = vmul.f32 %v1702_v52, %v1702_v52 }
 0xfef   :  { %1706 = vadd.xlane.f32.xlu0 %v1705_v54 }
 0xff0   :  { %v1708_v56 = vsel %vm75_vm1, %v1704_v55, 0.0 }
 0xff1   :  { %1709 = vadd.xlane.f32.xlu1 %v1708_v56 }
0x107c   :  { %v1707_v59 = vpop.xlane.xlu0 %1706 }
0x107d   :  { %v1711_v7 = vmul.f32 0.03125, %v1707_v59 }
0x107e   :  { %v1710_v60 = vpop.xlane.xlu1 %1709 }
0x107f   :  { %v1713_v61 = vadd.f32 1e-12, %v1711_v7  ;;  %v1712_v62 = vmul.f32 0.03125, %v1710_v60 }
0x1081   :  { %4820 = vrsqrt.f32 %v1713_v61  ;;  %v1714_v63 = vadd.f32 1e-12, %v1712_v62 }
0x1083   :  { %4822 = vrsqrt.f32 %v1714_v63 }
0x108b   :  { %v4821_v2 = vpop.eup %4820 }
0x108c   :  { %v1717_v3 = vmul.f32 %v4821_v2, %v1701_v50  ;;  %v1829_v50 = vrot.slane %v5310_v33, %v1828_v30 }
0x108d   :  { %v4823_v4 = vpop.eup %4822 }
0x108e   :  { %v1723_v5 = vmul.f32 %v1722_v31, %v1717_v3  ;;  %v1718_v6 = vmul.f32 %v4823_v4, %v1702_v52 }
0x1090   :  { %v1724_v9 = vmul.f32 %v1722_v31, %v1718_v6  ;;  %v1729_v10 = vadd.f32 %v1728_v8, %v1723_v5 }
0x1092   :  { %v1730_v11 = vadd.f32 %v1728_v8, %v1724_v9  ;;  %v4758_v8 = vld [vmem:[%s5784_s2 + $0x40] sm:$0xff]  }
0x1093   :  { %v4759_v9 = vld [vmem:[%s5786_s4 + $0x40] sm:$0xff]  }
0x1094   :  { %v1731_v12 = vpack.c.bf16 %v1730_v11, %v1729_v10 }
0x1096   :  { %4468 = vmatmul.mubr.msk.bf16.vlgmr.msra.gmra.mrb[44].mxu0 %vm75_vm1, %v1731_v12 }
0x1097   :  { %4487 = vmatprep.mubr.msk.bf16.mxu0 %vm4905_vm0, %v4904_v1  ;;  %4484 = vmatpush3.bf16.msra.mxu0 %v4758_v8 }
0x1098   :  { %4485 = vmatprep.subr.bf16.mxu0 %v4904_v1 }
0x1169   :  { %v1792_v18 = vpop.f32.mrb[44].mxu0 }
0x116a   :  { %v1793_v20 = vadd.f32 %v3971_v17, %v1792_v18  ;;  %v4469_v21 = vpop.f32.mrb[45].mxu0  ;;  %v1929_v18 = vsub.s32 4, %v5304_v29 }
0x116b   :  { %v1795_v22 = vpop.f32.mrb[46].mxu0  ;;  %v1935_v21 = vsub.s32 5, %v5304_v29 }
0x116c   :  { %v1801_v23 = vmul.f32 0.044715, %v1793_v20  ;;  %v1796_v24 = vadd.f32 %v3971_v17, %v1795_v22  ;;  %v4470_v25 = vpop.f32.mrb[47].mxu0  ;;  %v1799_v47 = vmul.f32 0.5, %v1793_v20 }
0x116d   :  { %v1936_v25 = vrot.slane %v5310_v33, %v1935_v21 }
0x116e   :  { %v1803_v27 = vmul.f32 %v1801_v23, %v1793_v20  ;;  %v1802_v34 = vmul.f32 0.044715, %v1796_v24  ;;  %v1800_v48 = vmul.f32 0.5, %v1796_v24 }
0x1170   :  { %v1805_v35 = vmul.f32 %v1803_v27, %v1793_v20  ;;  %v1804_v36 = vmul.f32 %v1802_v34, %v1796_v24 }
0x1172   :  { %v1807_v38 = vadd.f32 %v1805_v35, %v1793_v20  ;;  %v1806_v39 = vmul.f32 %v1804_v36, %v1796_v24  ;;  %v1930_v20 = vrot.slane %v5310_v33, %v1929_v18  ;;  %v4763_v33 = vld [vmem:[%s5785_s3 + $0x48] sm:$0xff]  }
0x1174   :  { %v1809_v41 = vmul.f32 0.7978846, %v1807_v38  ;;  %v1808_v42 = vadd.f32 %v1806_v39, %v1796_v24  ;;  %v4762_v39 = vld [vmem:[%s5785_s3 + $0x40] sm:$0xff]  }
0x1176   :  { %4824 = vtanh.f32 %v1809_v41  ;;  %v1810_v43 = vmul.f32 0.7978846, %v1808_v42  ;;  %v4764_v42 = vld [vmem:[%s5784_s2 + $0x50] sm:$0xff]  }
0x1178   :  { %4826 = vtanh.f32 %v1810_v43  ;;  %v4765_v43 = vld [vmem:[%s5784_s2 + $0x58] sm:$0xff]  }
0x1180   :  { %v4825_v44 = vpop.eup %4824 }
0x1181   :  { %v1813_v45 = vadd.f32 1.0, %v4825_v44  ;;  %v4766_v44 = vld [vmem:[%s5786_s4 + $0x50] sm:$0xff]  }
0x1182   :  { %v4827_v46 = vpop.eup %4826 }
0x1183   :  { %v1814_v49 = vadd.f32 1.0, %v4827_v46  ;;  %v1815_v37 = vmul.f32 %v1813_v45, %v1799_v47  ;;  %v4767_v45 = vld [vmem:[%s5786_s4 + $0x58] sm:$0xff]   ;;  %v3986_v46 = vld [vmem:[%s5787_s5 + $0x4] ss:$0 sm:$0xff] }
0x1185   :  { %v1816_v26 = vmul.f32 %v1814_v49, %v1800_v48  ;;  %v4004_v48 = vld [vmem:[%s5789_s7 + $0x4] ss:$0 sm:$0xff] }
0x1187   :  { %v1817_v40 = vpack.c.bf16 %v1816_v26, %v1815_v37 }
0x1189   :  { %4480 = vmatmul.mubr.msk.bf16.vlgmr.msra.gmra.mrb[44].mxu1 %vm1854_vm6, %v1817_v40 }
0x118a   :  { %4503 = vmatprep.mubr.msk.bf16.mxu1 %vm4905_vm0, %v4904_v1  ;;  %4500 = vmatpush3.bf16.msra.mxu1 %v4759_v9  ;;  %v4037_v9 = vld [vmem:[%s5789_s7 + $0x5] ss:$0 sm:$0xff] }
0x118b   :  { %4501 = vmatprep.subr.bf16.mxu1 %v4904_v1 }
0x125c   :  { %v1892_v51 = vpop.f32.mrb[44].mxu1 }
0x125d   :  { %v1893_v52 = vadd.f32 %v1892_v51, %v1829_v50  ;;  %v4481_v53 = vpop.f32.mrb[45].mxu1 }
0x125e   :  { %v1895_v54 = vpop.f32.mrb[46].mxu1 }
0x125f   :  { %v1896_v55 = vadd.f32 %v1895_v54, %v1829_v50  ;;  %v4482_v56 = vpop.f32.mrb[47].mxu1  ;;  %v1899_v57 = vadd.f32 %v1893_v52, %v1729_v10  ;;  %v4760_v10 = vld [vmem:[%s5784_s2 + $0x48] sm:$0xff]  }
0x1260   :  { %4486 = vmatpush3.bf16.msra.mxu0 %v4760_v10 }
0x1261   :  { %v1901_v58 = vsel %vm75_vm1, %v1899_v57, 0.0  ;;  %v1900_v59 = vadd.f32 %v1896_v55, %v1730_v11  ;;  %v4761_v11 = vld [vmem:[%s5786_s4 + $0x48] sm:$0xff]   ;;  %4491 = vmatprep.subr.bf16.mxu0 %v4904_v1 }
0x1262   :  { %1902 = vadd.xlane.f32.xlu0 %v1901_v58  ;;  %4502 = vmatpush3.bf16.msra.mxu1 %v4761_v11 }
0x1263   :  { %v1904_v7 = vsel %vm75_vm1, %v1900_v59, 0.0 }
0x1264   :  { %1905 = vadd.xlane.f32.xlu1 %v1904_v7 }
0x12ef   :  { %v1903_v60 = vpop.xlane.xlu0 %1902 }
0x12f0   :  { %v1907_v61 = vmul.f32 0.03125, %v1903_v60 }
0x12f1   :  { %v1906_v62 = vpop.xlane.xlu1 %1905 }
0x12f2   :  { %v1909_v63 = vsub.f32 %v1899_v57, %v1907_v61  ;;  %v1908_v31 = vmul.f32 0.03125, %v1906_v62  ;;  %v3995_v57 = vld [vmem:[%s5788_s6 + $0x4] ss:$0 sm:$0xff] }
0x12f4   :  { %v1910_v2 = vsub.f32 %v1900_v59, %v1908_v31  ;;  %v1911_v3 = vmul.f32 %v1909_v63, %v1909_v63 }
0x12f6   :  { %v1913_v4 = vsel %vm75_vm1, %v1911_v3, 0.0  ;;  %v1912_v5 = vmul.f32 %v1910_v2, %v1910_v2  ;;  %v4019_v3 = vld [vmem:[%s5787_s5 + $0x5] ss:$0 sm:$0xff] }
0x12f7   :  { %1914 = vadd.xlane.f32.xlu0 %v1913_v4 }
0x12f8   :  { %v1916_v6 = vsel %vm75_vm1, %v1912_v5, 0.0 }
0x12f9   :  { %1917 = vadd.xlane.f32.xlu1 %v1916_v6 }
0x1384   :  { %v1915_v12 = vpop.xlane.xlu0 %1914 }
0x1385   :  { %v1919_v13 = vmul.f32 0.03125, %v1915_v12 }
0x1386   :  { %v1918_v14 = vpop.xlane.xlu1 %1917 }
0x1387   :  { %v1921_v15 = vadd.f32 1e-12, %v1919_v13  ;;  %v1920_v16 = vmul.f32 0.03125, %v1918_v14 }
0x1389   :  { %4828 = vrsqrt.f32 %v1921_v15  ;;  %v1922_v17 = vadd.f32 1e-12, %v1920_v16 }
0x138b   :  { %4830 = vrsqrt.f32 %v1922_v17 }
0x1393   :  { %v4829_v22 = vpop.eup %4828 }
0x1394   :  { %v1925_v23 = vmul.f32 %v4829_v22, %v1909_v63 }
0x1395   :  { %v4831_v24 = vpop.eup %4830 }
0x1396   :  { %v1931_v27 = vmul.f32 %v1930_v20, %v1925_v23  ;;  %v1926_v34 = vmul.f32 %v4831_v24, %v1910_v2  ;;  %v5485_v24 = vld [vmem:[%s5783_s1 + $0x8] sm:$0xff] }
0x1398   :  { %v1932_v35 = vmul.f32 %v1930_v20, %v1926_v34  ;;  %v5399_v36 = vadd.f32 %v1936_v25, %v1931_v27  ;;  %v5491_v27 = vld [vmem:[%s5783_s1] sm:$0xff] }
0x139a   :  { %v5401_v38 = vadd.f32 %v1936_v25, %v1932_v35 }
0x139c   :  { %v5408_v41 = vpack.c.bf16 %v5401_v38, %v5399_v36 }
0x139e   :  { %4488 = vmatmul.mubr.msk.bf16.vlgmr.msra.gmra.mrb[48].mxu0 %vm75_vm1, %v5408_v41  ;;  %4504 = vmatmul.mubr.msk.bf16.vlgmr.msra.gmra.mrb[48].mxu1 %vm75_vm1, %v5408_v41 }
0x139f   :  { %4492 = vmatpush3.bf16.msra.mxu0 %v4762_v39  ;;  %4495 = vmatprep.mubr.msk.bf16.mxu0 %vm4905_vm0, %v4904_v1 }
0x13a0   :  { %4493 = vmatprep.subr.bf16.mxu0 %v4904_v1 }
0x13a3   :  { %4494 = vmatpush3.bf16.msra.mxu0 %v4763_v33 }
0x13a4   :  { %4520 = vmatprep.subr.bf16.mxu0 %v4904_v1 }
0x13a6   :  { %4496 = vmatmul.mubr.msk.bf16.vlgmr.msra.gmra.mrb[52].mxu0 %vm75_vm1, %v5408_v41 }
0x13a7   :  { %4521 = vmatpush3.bf16.msra.mxu0 %v4764_v42  ;;  %4524 = vmatprep.mubr.msk.bf16.mxu0 %vm4905_vm0, %v4904_v1 }
0x13a8   :  { %4522 = vmatprep.subr.bf16.mxu0 %v4904_v1 }
0x13ab   :  { %4523 = vmatpush3.bf16.msra.mxu0 %v4765_v43 }
0x13ac   :  { %4536 = vmatprep.subr.bf16.mxu0 %v4904_v1 }
0x13ae   :  { %4525 = vmatmul.mubr.msk.bf16.vlgmr.msra.gmra.mrb[56].mxu0 %vm75_vm1, %v5408_v41 }
0x13af   :  { %4537 = vmatpush3.bf16.msra.mxu0 %v4766_v44  ;;  %4540 = vmatprep.mubr.msk.bf16.mxu0 %vm4905_vm0, %v4904_v1 }
0x13b0   :  { %4538 = vmatprep.subr.bf16.mxu0 %v4904_v1 }
0x13b3   :  { %4539 = vmatpush3.bf16.msra.mxu0 %v4767_v45 }
0x13b4   :  { %4557 = vmatprep.subr.bf16.mxu0 %v4904_v1 }
0x13b6   :  { %4541 = vmatmul.mubr.msk.bf16.vlgmr.msra.gmra.mrb[60].mxu0 %vm75_vm1, %v5408_v41 }
0x13b7   :  { %4559 = vmatprep.mubr.msk.bf16.mxu0 %vm4905_vm0, %v4904_v1 }
0x1471   :  { %v2004_v47 = vpop.f32.mrb[48].mxu0  ;;  %v2136_v49 = vpop.f32.mrb[48].mxu1 }
0x1472   :  { %v2005_v37 = vadd.f32 %v3986_v46, %v2004_v47  ;;  %v4489_v26 = vpop.f32.mrb[49].mxu0  ;;  %v4505_v40 = vpop.f32.mrb[49].mxu1  ;;  %v2137_v52 = vadd.f32 %v4004_v48, %v2136_v49 }
0x1473   :  { %v2007_v50 = vpop.f32.mrb[50].mxu0  ;;  %v2139_v51 = vpop.f32.mrb[50].mxu1 }
0x1474   :  { %v2140_v53 = vadd.f32 %v4004_v48, %v2139_v51  ;;  %v4490_v54 = vpop.f32.mrb[51].mxu0  ;;  %v4506_v55 = vpop.f32.mrb[51].mxu1  ;;  %4511 = vmatprep.mubr.msk.f32.mxu1 %vm248_vm2, %v2005_v37  ;;  %v2008_v8 = vadd.f32 %v3986_v46, %v2007_v50 }
0x1475   :  { %v4768_v54 = vld [vmem:[%s5785_s3 + $0x50] sm:$0xff]  }
0x1476   :  { %v2257_v56 = vpack.c.bf16 %v2140_v53, %v2137_v52 }
0x1479   :  { %v2070_v58 = vpop.f32.mrb[52].mxu0 }
0x147a   :  { %v4497_v59 = vpop.f32.mrb[53].mxu0  ;;  %v2071_v60 = vadd.f32 %v3995_v57, %v2070_v58 }
0x147b   :  { %v2073_v7 = vpop.f32.mrb[54].mxu0 }
0x147c   :  { %v2074_v61 = vadd.f32 %v3995_v57, %v2073_v7  ;;  %v4498_v62 = vpop.f32.mrb[55].mxu0 }
0x147d   :  { %v4028_v62 = vld [vmem:[%s5788_s6 + $0x5] ss:$0 sm:$0xff] }
0x147e   :  { %v4699_v63 = vpack.c.bf16 %v2074_v61, %v2071_v60 }
0x1480   :  { %4701 = vmatprep.subr.msk.bf16.mxu1 %vm5022_vm3, %v4699_v63 }
0x1481   :  { %4704 = vmatpush3.bf16.xpose.msk.msra.mxu1 %vm5022_vm3, %v4699_v63  ;;  %v2364_v31 = vpop.f32.mrb[56].mxu0 }
0x1482   :  { %v4526_v2 = vpop.f32.mrb[57].mxu0  ;;  %4514 = vmatprep.subr.bf16.mxu1 %v4904_v1  ;;  %v2365_v57 = vadd.f32 %v4019_v3, %v2364_v31 }
0x1483   :  { %v2367_v4 = vpop.f32.mrb[58].mxu0 }
0x1484   :  { %v5467_v5 = vadd.f32 %v4019_v3, %v2367_v4  ;;  %v4527_v6 = vpop.f32.mrb[59].mxu0 }
0x1488   :  { %4512 = vmatmul.mubr.msk.f32.vlgmr.msra.gmra.mrb[52].mxu1 %vm248_vm2, %v2008_v8 }
0x1489   :  { %4515 = vmatpush3.bf16.msra.mxu1 %v2257_v56  ;;  %v2496_v10 = vpop.f32.mrb[60].mxu0  ;;  %4516 = vmatprep.mubr.msk.bf16.mxu1 %vm4905_vm0, %v4904_v1  ;;  %v4769_v56 = vld [vmem:[%s5785_s3 + $0x58] sm:$0xff]  }
0x148a   :  { %v4542_v11 = vpop.f32.mrb[61].mxu0  ;;  %4528 = vmatprep.subr.bf16.mxu1 %v4904_v1  ;;  %v5476_v13 = vadd.f32 %v4037_v9, %v2496_v10 }
0x148b   :  { %v2499_v12 = vpop.f32.mrb[62].mxu0 }
0x148c   :  { %v5478_v14 = vadd.f32 %v4037_v9, %v2499_v12  ;;  %v4543_v15 = vpop.f32.mrb[63].mxu0 }
0x148e   :  { %v2617_v16 = vpack.c.bf16 %v5478_v14, %v5476_v13 }
0x155b   :  { %v4513_v17 = vpop.f32.mrb[52].mxu1 }
0x155c   :  { %v2231_v20 = vmul.f32 0.35355338, %v4513_v17  ;;  %v2221_v22 = vpop.f32.mrb[53].mxu1 }
0x155d   :  { %v2230_v23 = vmul.f32 0.35355338, %v2221_v22 }
0x155e   :  { %v2233_v25 = vadd.f32 %v5485_v24, %v2231_v20 }
0x155f   :  { %v2232_v34 = vadd.f32 %v5491_v27, %v2230_v23 }
0x1560   :  { %v2237_v35 = vsel %vm340_vm4, %v2233_v25, -inf }
0x1561   :  { %2238 = vmax.xlane.f32.xlu1 %v2237_v35  ;;  %v2234_v39 = vsel %vm340_vm4, %v2232_v34, -inf }
0x1562   :  { %2235 = vmax.xlane.f32.xlu0 %v2234_v39 }
0x15ee   :  { %v2239_v33 = vpop.xlane.xlu1 %2238 }
0x15ef   :  { %v2241_v42 = vsub.f32 %v2233_v25, %v2239_v33  ;;  %v2236_v43 = vpop.xlane.xlu0 %2235 }
0x15f0   :  { %v2240_v44 = vsub.f32 %v2232_v34, %v2236_v43 }
0x15f1   :  { %v2244_v45 = vmul.f32 1.442695, %v2241_v42  ;;  %v4046_v42 = vld [vmem:[%s5790_s8 + $0x14] sm:$0xf] }
0x15f2   :  { %v2242_v46 = vmul.f32 1.442695, %v2240_v44  ;;  %v2669_v43 = vsel %vm774_vm5, %v4046_v42, 0 }
0x15f3   :  { %4832 = vpow2.f32 %v2244_v45  ;;  %4558 = vmatpush3.bf16.msra.mxu0 %v2669_v43 }
0x15f4   :  { %4834 = vpow2.f32 %v2242_v46  ;;  %4569 = vmatprep.subr.bf16.mxu0 %v4904_v1 }
0x15fd   :  { %v4833_v47 = vpop.eup %4832 }
0x15fe   :  { %v4835_v48 = vpop.eup %4834  ;;  %v2249_v49 = vsel %vm340_vm4, %v4833_v47, 0.0 }
0x15ff   :  { %2250 = vadd.xlane.f32.xlu1 %v2249_v49  ;;  %v2246_v37 = vsel %vm340_vm4, %v4835_v48, 0.0  ;;  %v4013_v49 = vld [vmem:[%s5790_s8 + $0x10] sm:$0xf] }
0x1600   :  { %2247 = vadd.xlane.f32.xlu0 %v2246_v37 }
0x168c   :  { %v2251_v26 = vpop.xlane.xlu1 %2250 }
0x168d   :  { %4836 = vrcp.f32 %v2251_v26  ;;  %v2248_v40 = vpop.xlane.xlu0 %2247 }
0x168e   :  { %4838 = vrcp.f32 %v2248_v40  ;;  %v2716_v40 = vsel %vm774_vm5, %v4013_v49, 0 }
0x1697   :  { %v4837_v50 = vpop.eup %4836 }
0x1698   :  { %v4839_v51 = vpop.eup %4838  ;;  %v2255_v52 = vmul.f32 %v4837_v50, %v4833_v47  ;;  %v4770_v50 = vld [vmem:[%s5785_s3 + $0x60] sm:$0xff]  }
0x1699   :  { %v2254_v53 = vmul.f32 %v4839_v51, %v4835_v48  ;;  %v4771_v51 = vld [vmem:[%s5785_s3 + $0x68] sm:$0xff]  }
0x169b   :  { %v2256_v55 = vpack.c.bf16 %v2255_v52, %v2254_v53 }
0x169d   :  { %4517 = vmatmul.mubr.msk.bf16.vlgmr.msra.gmra.mrb[56].mxu1 %vm340_vm4, %v2256_v55  ;;  %v4772_v55 = vld [vmem:[%s5784_s2 + $0x60] sm:$0xff]  }
0x169e   :  { %4529 = vmatpush3.bf16.msra.mxu1 %v4768_v54  ;;  %4532 = vmatprep.mubr.msk.bf16.mxu1 %vm4905_vm0, %v4904_v1 }
0x169f   :  { %4530 = vmatprep.subr.bf16.mxu1 %v4904_v1 }
0x16a2   :  { %4531 = vmatpush3.bf16.msra.mxu1 %v4769_v56 }
0x16a5   :  { %4533 = vmatmul.mubr.msk.bf16.vlgmr.msra.gmra.mrb[60].mxu1 %vm75_vm1, %v5408_v41 }
0x16a6   :  { %4548 = vmatprep.mubr.msk.f32.mxu1 %vm248_vm2, %v2365_v57 }
0x1770   :  { %v5511_v58 = vpop.f32.mrb[56].mxu1 }
0x1771   :  { %v4518_v59 = vpop.f32.mrb[57].mxu1 }
0x1772   :  { %v5513_v7 = vpop.f32.mrb[58].mxu1 }
0x1773   :  { %v2302_v60 = vpack.c.bf16 %v5513_v7, %v5511_v58  ;;  %v4519_v61 = vpop.f32.mrb[59].mxu1  ;;  %v4773_v58 = vld [vmem:[%s5784_s2 + $0x68] sm:$0xff]  }
0x1774   :  { %v4774_v61 = vld [vmem:[%s5786_s4 + $0x60] sm:$0xff]  }
0x1778   :  { %v2430_v63 = vpop.f32.mrb[60].mxu1 }
0x1779   :  { %v4534_v31 = vpop.f32.mrb[61].mxu1  ;;  %v2431_v3 = vadd.f32 %v4028_v62, %v2430_v63  ;;  %v4775_v63 = vld [vmem:[%s5786_s4 + $0x68] sm:$0xff]  }
0x177a   :  { %v2433_v2 = vpop.f32.mrb[62].mxu1  ;;  %v4063_v31 = vld [vmem:[%s5788_s6 + $0x6] ss:$0 sm:$0xff] }
0x177b   :  { %v2434_v4 = vadd.f32 %v4028_v62, %v2433_v2  ;;  %v4535_v6 = vpop.f32.mrb[63].mxu1 }
0x177d   :  { %v4705_v8 = vpack.c.bf16 %v2434_v4, %v2431_v3 }
0x177f   :  { %4707 = vmatprep.subr.msk.bf16.mxu1 %vm5022_vm3, %v4705_v8 }
0x1780   :  { %4710 = vmatpush3.bf16.xpose.msk.msra.mxu1 %vm5022_vm3, %v4705_v8 }
0x1781   :  { %4551 = vmatprep.subr.bf16.mxu1 %v4904_v1 }
0x1787   :  { %4549 = vmatmul.mubr.msk.f32.vlgmr.msra.gmra.mrb[54].mxu1 %vm248_vm2, %v5467_v5 }
0x1788   :  { %4552 = vmatpush3.bf16.msra.mxu1 %v2617_v16  ;;  %4553 = vmatprep.mubr.msk.bf16.mxu1 %vm4905_vm0, %v4904_v1 }
0x1789   :  { %4563 = vmatprep.subr.bf16.mxu1 %v4904_v1 }
0x185a   :  { %v4550_v9 = vpop.f32.mrb[54].mxu1 }
0x185b   :  { %v2591_v10 = vmul.f32 0.35355338, %v4550_v9  ;;  %v2581_v11 = vpop.f32.mrb[55].mxu1 }
0x185c   :  { %v2590_v12 = vmul.f32 0.35355338, %v2581_v11 }
0x185d   :  { %v2593_v15 = vadd.f32 %v5485_v24, %v2591_v10 }
0x185e   :  { %v2592_v17 = vadd.f32 %v5491_v27, %v2590_v12 }
0x185f   :  { %v2597_v20 = vsel %vm340_vm4, %v2593_v15, -inf }
0x1860   :  { %2598 = vmax.xlane.f32.xlu1 %v2597_v20  ;;  %v2594_v5 = vsel %vm340_vm4, %v2592_v17, -inf }
0x1861   :  { %2595 = vmax.xlane.f32.xlu0 %v2594_v5 }
0x18ed   :  { %v2599_v13 = vpop.xlane.xlu1 %2598 }
0x18ee   :  { %v2601_v14 = vsub.f32 %v2593_v15, %v2599_v13  ;;  %v2596_v16 = vpop.xlane.xlu0 %2595  ;;  %v4054_v13 = vld [vmem:[%s5787_s5 + $0x6] ss:$0 sm:$0xff] }
0x18ef   :  { %v2600_v22 = vsub.f32 %v2592_v17, %v2596_v16 }
0x18f0   :  { %v2604_v23 = vmul.f32 1.442695, %v2601_v14 }
0x18f1   :  { %v2602_v25 = vmul.f32 1.442695, %v2600_v22 }
0x18f2   :  { %4840 = vpow2.f32 %v2604_v23 }
0x18f3   :  { %4842 = vpow2.f32 %v2602_v25 }
0x18fc   :  { %v4841_v34 = vpop.eup %4840 }
0x18fd   :  { %v4843_v35 = vpop.eup %4842  ;;  %v2609_v39 = vsel %vm340_vm4, %v4841_v34, 0.0 }
0x18fe   :  { %2610 = vadd.xlane.f32.xlu1 %v2609_v39  ;;  %v2606_v33 = vsel %vm340_vm4, %v4843_v35, 0.0 }
0x18ff   :  { %2607 = vadd.xlane.f32.xlu0 %v2606_v33 }
0x198b   :  { %v2611_v44 = vpop.xlane.xlu1 %2610 }
0x198c   :  { %4844 = vrcp.f32 %v2611_v44  ;;  %v2608_v45 = vpop.xlane.xlu0 %2607 }
0x198d   :  { %4846 = vrcp.f32 %v2608_v45 }
0x1996   :  { %v4845_v46 = vpop.eup %4844 }
0x1997   :  { %v4847_v47 = vpop.eup %4846  ;;  %v2615_v48 = vmul.f32 %v4845_v46, %v4841_v34 }
0x1998   :  { %v2614_v37 = vmul.f32 %v4847_v47, %v4843_v35  ;;  %v4072_v35 = vld [vmem:[%s5789_s7 + $0x6] ss:$0 sm:$0xff] }
0x199a   :  { %v2616_v26 = vpack.c.bf16 %v2615_v48, %v2614_v37 }
0x199c   :  { %4554 = vmatmul.mubr.msk.bf16.vlgmr.msra.gmra.mrb[64].mxu1 %vm340_vm4, %v2616_v26 }
0x199d   :  { %4564 = vmatpush3.bf16.msra.mxu1 %v2716_v40  ;;  %4565 = vmatprep.mubr.msk.bf16.mxu1 %vm4905_vm0, %v4904_v1 }
0x199e   :  { %4577 = vmatprep.subr.bf16.mxu1 %v4904_v1 }
0x19a4   :  { %4566 = vmatmul.mubr.msk.bf16.vlgmr.msra.gmra.mrb[68].mxu1 %vm248_vm2, %v2302_v60 }
0x19a5   :  { %4578 = vmatpush3.bf16.msra.mxu1 %v4770_v50  ;;  %4581 = vmatprep.mubr.msk.bf16.mxu1 %vm4905_vm0, %v4904_v1 }
0x19a6   :  { %4579 = vmatprep.subr.bf16.mxu1 %v4904_v1 }
0x19a9   :  { %4580 = vmatpush3.bf16.msra.mxu1 %v4771_v51 }
0x19ac   :  { %4582 = vmatmul.mubr.msk.bf16.vlgmr.msra.gmra.mrb[72].mxu1 %vm75_vm1, %v5408_v41 }
0x1a6f   :  { %v2655_v52 = vpop.f32.mrb[64].mxu1 }
0x1a70   :  { %v4555_v53 = vpop.f32.mrb[65].mxu1 }
0x1a71   :  { %v2658_v54 = vpop.f32.mrb[66].mxu1 }
0x1a72   :  { %v2662_v56 = vpack.c.bf16 %v2658_v54, %v2655_v52  ;;  %v4556_v57 = vpop.f32.mrb[67].mxu1 }
0x1a74   :  { %4560 = vmatmul.mubr.msk.bf16.vlgmr.msra.gmra.mrb[64].mxu0 %vm248_vm2, %v2662_v56 }
0x1a75   :  { %4570 = vmatpush3.bf16.msra.mxu0 %v4772_v55  ;;  %4573 = vmatprep.mubr.msk.bf16.mxu0 %vm4905_vm0, %v4904_v1 }
0x1a76   :  { %4571 = vmatprep.subr.bf16.mxu0 %v4904_v1 }
0x1a77   :  { %v2752_v59 = vpop.f32.mrb[68].mxu1 }
0x1a78   :  { %v4567_v7 = vpop.f32.mrb[69].mxu1 }
0x1a79   :  { %v2755_v60 = vpop.f32.mrb[70].mxu1  ;;  %4572 = vmatpush3.bf16.msra.mxu0 %v4773_v58 }
0x1a7a   :  { %v4568_v62 = vpop.f32.mrb[71].mxu1  ;;  %4585 = vmatprep.subr.bf16.mxu0 %v4904_v1 }
0x1a7c   :  { %4574 = vmatmul.mubr.msk.bf16.vlgmr.msra.gmra.mrb[68].mxu0 %vm75_vm1, %v5408_v41 }
0x1a7d   :  { %4586 = vmatpush3.bf16.msra.mxu0 %v4774_v61  ;;  %4589 = vmatprep.mubr.msk.bf16.mxu0 %vm4905_vm0, %v4904_v1 }
0x1a7e   :  { %4587 = vmatprep.subr.bf16.mxu0 %v4904_v1 }
0x1a7f   :  { %v2884_v2 = vpop.f32.mrb[72].mxu1 }
0x1a80   :  { %v4583_v3 = vpop.f32.mrb[73].mxu1  ;;  %v2885_v6 = vadd.f32 %v4063_v31, %v2884_v2 }
0x1a81   :  { %v2887_v4 = vpop.f32.mrb[74].mxu1  ;;  %4588 = vmatpush3.bf16.msra.mxu0 %v4775_v63 }
0x1a82   :  { %v2888_v8 = vadd.f32 %v4063_v31, %v2887_v4  ;;  %v4584_v9 = vpop.f32.mrb[75].mxu1  ;;  %4600 = vmatprep.subr.bf16.mxu0 %v4904_v1  ;;  %v4776_v4 = vld [vmem:[%s5784_s2 + $0x70] sm:$0xff]  }
0x1a83   :  { %v4778_v9 = vld [vmem:[%s5786_s4 + $0x70] sm:$0xff]  }
0x1a84   :  { %v4711_v10 = vpack.c.bf16 %v2888_v8, %v2885_v6  ;;  %4590 = vmatmul.mubr.msk.bf16.vlgmr.msra.gmra.mrb[72].mxu0 %vm75_vm1, %v5408_v41  ;;  %v4777_v8 = vld [vmem:[%s5784_s2 + $0x78] sm:$0xff]  }
0x1a85   :  { %4602 = vmatprep.mubr.msk.bf16.mxu0 %vm4905_vm0, %v4904_v1 }
0x1a86   :  { %4713 = vmatprep.subr.msk.bf16.mxu1 %vm5022_vm3, %v4711_v10 }
0x1a87   :  { %4716 = vmatpush3.bf16.xpose.msk.msra.mxu1 %vm5022_vm3, %v4711_v10  ;;  %v4779_v10 = vld [vmem:[%s5786_s4 + $0x78] sm:$0xff]  }
0x1a88   :  { %4606 = vmatprep.subr.bf16.mxu1 %v4904_v1 }
0x1b47   :  { %v2705_v11 = vpop.f32.mrb[64].mxu0 }
0x1b48   :  { %v5599_v12 = vadd.f32 %v2752_v59, %v2705_v11  ;;  %v4561_v15 = vpop.f32.mrb[65].mxu0  ;;  %v4081_v11 = vld [vmem:[%s5790_s8 + $0x18] sm:$0xf] }
0x1b49   :  { %v2708_v17 = vpop.f32.mrb[66].mxu0  ;;  %v3123_v15 = vsel %vm774_vm5, %v4081_v11, 0 }
0x1b4a   :  { %v5601_v20 = vadd.f32 %v2755_v60, %v2708_v17  ;;  %v4562_v5 = vpop.f32.mrb[67].mxu0 }
0x1b4f   :  { %v2818_v14 = vpop.f32.mrb[68].mxu0 }
0x1b50   :  { %v2819_v16 = vadd.f32 %v4054_v13, %v2818_v14  ;;  %v4575_v22 = vpop.f32.mrb[69].mxu0  ;;  %v4780_v14 = vld [vmem:[%s5785_s3 + $0x70] sm:$0xff]  }
0x1b51   :  { %v2821_v23 = vpop.f32.mrb[70].mxu0 }
0x1b52   :  { %v2822_v25 = vadd.f32 %v4054_v13, %v2821_v23  ;;  %v4576_v34 = vpop.f32.mrb[71].mxu0  ;;  %4597 = vmatprep.mubr.msk.f32.mxu1 %vm248_vm2, %v2819_v16  ;;  %v4781_v23 = vld [vmem:[%s5785_s3 + $0x78] sm:$0xff]  }
0x1b53   :  { %v4088_v34 = vld [vmem:[%s5787_s5 + $0x7] ss:$0 sm:$0xff] }
0x1b54   :  { %4598 = vmatmul.mubr.msk.f32.vlgmr.msra.gmra.mrb[76].mxu1 %vm248_vm2, %v2822_v25 }
0x1b55   :  { %4608 = vmatprep.mubr.msk.bf16.mxu1 %vm4905_vm0, %v4904_v1  ;;  %4607 = vmatpush3.bf16.msra.mxu1 %v3123_v15 }
0x1b56   :  { %4620 = vmatprep.subr.bf16.mxu1 %v4904_v1 }
0x1b57   :  { %v2950_v39 = vpop.f32.mrb[72].mxu0 }
0x1b58   :  { %v4591_v33 = vpop.f32.mrb[73].mxu0  ;;  %v2951_v43 = vadd.f32 %v4072_v35, %v2950_v39 }
0x1b59   :  { %v2953_v42 = vpop.f32.mrb[74].mxu0 }
0x1b5a   :  { %v2954_v44 = vadd.f32 %v4072_v35, %v2953_v42  ;;  %v4592_v45 = vpop.f32.mrb[75].mxu0 }
0x1b5c   :  { %v3071_v46 = vpack.c.bf16 %v2954_v44, %v2951_v43  ;;  %v4106_v44 = vld [vmem:[%s5789_s7 + $0x7] ss:$0 sm:$0xff] }
0x1b5e   :  { %4601 = vmatpush3.bf16.msra.mxu0 %v3071_v46 }
0x1b5f   :  { %4612 = vmatprep.subr.bf16.mxu0 %v4904_v1 }
0x1c27   :  { %v4599_v47 = vpop.f32.mrb[76].mxu1 }
0x1c28   :  { %v3045_v48 = vmul.f32 0.35355338, %v4599_v47  ;;  %v3035_v49 = vpop.f32.mrb[77].mxu1 }
0x1c29   :  { %v3044_v37 = vmul.f32 0.35355338, %v3035_v49 }
0x1c2a   :  { %v3047_v26 = vadd.f32 %v5485_v24, %v3045_v48 }
0x1c2b   :  { %v3046_v40 = vadd.f32 %v5491_v27, %v3044_v37 }
0x1c2c   :  { %v3051_v50 = vsel %vm340_vm4, %v3047_v26, -inf }
0x1c2d   :  { %3052 = vmax.xlane.f32.xlu1 %v3051_v50  ;;  %v3048_v51 = vsel %vm340_vm4, %v3046_v40, -inf }
0x1c2e   :  { %3049 = vmax.xlane.f32.xlu0 %v3048_v51 }
0x1cba   :  { %v3053_v52 = vpop.xlane.xlu1 %3052 }
0x1cbb   :  { %v3055_v53 = vsub.f32 %v3047_v26, %v3053_v52  ;;  %v3050_v54 = vpop.xlane.xlu0 %3049 }
0x1cbc   :  { %v3054_v55 = vsub.f32 %v3046_v40, %v3050_v54  ;;  %v4097_v54 = vld [vmem:[%s5788_s6 + $0x7] ss:$0 sm:$0xff] }
0x1cbd   :  { %v3058_v56 = vmul.f32 1.442695, %v3055_v53 }
0x1cbe   :  { %v3056_v57 = vmul.f32 1.442695, %v3054_v55 }
0x1cbf   :  { %4848 = vpow2.f32 %v3058_v56 }
0x1cc0   :  { %4850 = vpow2.f32 %v3056_v57 }
0x1cc9   :  { %v4849_v58 = vpop.eup %4848 }
0x1cca   :  { %v4851_v59 = vpop.eup %4850  ;;  %v3063_v7 = vsel %vm340_vm4, %v4849_v58, 0.0 }
0x1ccb   :  { %3064 = vadd.xlane.f32.xlu1 %v3063_v7  ;;  %v3060_v60 = vsel %vm340_vm4, %v4851_v59, 0.0 }
0x1ccc   :  { %3061 = vadd.xlane.f32.xlu0 %v3060_v60 }
0x1d58   :  { %v3065_v61 = vpop.xlane.xlu1 %3064 }
0x1d59   :  { %4852 = vrcp.f32 %v3065_v61  ;;  %v3062_v62 = vpop.xlane.xlu0 %3061 }
0x1d5a   :  { %4854 = vrcp.f32 %v3062_v62 }
0x1d63   :  { %v4853_v63 = vpop.eup %4852 }
0x1d64   :  { %v4855_v31 = vpop.eup %4854  ;;  %v3069_v2 = vmul.f32 %v4853_v63, %v4849_v58 }
0x1d65   :  { %v3068_v3 = vmul.f32 %v4855_v31, %v4851_v59 }
0x1d67   :  { %v3070_v6 = vpack.c.bf16 %v3069_v2, %v3068_v3 }
0x1d69   :  { %4603 = vmatmul.mubr.msk.bf16.vlgmr.msra.gmra.mrb[76].mxu0 %vm340_vm4, %v3070_v6 }
0x1d6a   :  { %4613 = vmatpush3.bf16.msra.mxu0 %v4776_v4  ;;  %4616 = vmatprep.mubr.msk.bf16.mxu0 %vm4905_vm0, %v4904_v1 }
0x1d6b   :  { %4614 = vmatprep.subr.bf16.mxu0 %v4904_v1 }
0x1d6e   :  { %4615 = vmatpush3.bf16.msra.mxu0 %v4777_v8 }
0x1d6f   :  { %4628 = vmatprep.subr.bf16.mxu0 %v4904_v1 }
0x1d71   :  { %4617 = vmatmul.mubr.msk.bf16.vlgmr.msra.gmra.mrb[80].mxu0 %vm75_vm1, %v5408_v41 }
0x1d72   :  { %4629 = vmatpush3.bf16.msra.mxu0 %v4778_v9  ;;  %4632 = vmatprep.mubr.msk.bf16.mxu0 %vm4905_vm0, %v4904_v1 }
0x1d73   :  { %4630 = vmatprep.subr.bf16.mxu0 %v4904_v1 }
0x1d76   :  { %4631 = vmatpush3.bf16.msra.mxu0 %v4779_v10 }
0x1d77   :  { %4649 = vmatprep.subr.bf16.mxu0 %v4904_v1 }
0x1d79   :  { %4633 = vmatmul.mubr.msk.bf16.vlgmr.msra.gmra.mrb[84].mxu0 %vm75_vm1, %v5408_v41 }
0x1d7a   :  { %4651 = vmatprep.mubr.msk.bf16.mxu0 %vm4905_vm0, %v4904_v1 }
0x1e3c   :  { %v3109_v17 = vpop.f32.mrb[76].mxu0 }
0x1e3d   :  { %v4604_v5 = vpop.f32.mrb[77].mxu0 }
0x1e3e   :  { %v3112_v13 = vpop.f32.mrb[78].mxu0 }
0x1e3f   :  { %v3116_v16 = vpack.c.bf16 %v3112_v13, %v3109_v17  ;;  %v4605_v22 = vpop.f32.mrb[79].mxu0  ;;  %v4115_v17 = vld [vmem:[%s5790_s8 + $0x1c] sm:$0xf] }
0x1e40   :  { %v3532_v5 = vsel %vm774_vm5, %v4115_v17, 0  ;;  %v4784_v17 = vld [vmem:[%s5794_s12 + $0x20] sm:$0xff]  }
0x1e41   :  { %4609 = vmatmul.mubr.msk.bf16.vlgmr.msra.gmra.mrb[80].mxu1 %vm248_vm2, %v3116_v16  ;;  %4650 = vmatpush3.bf16.msra.mxu0 %v3532_v5  ;;  %v4787_v5 = vld [vmem:[%s5794_s12 + $0x38] sm:$0xff]  }
0x1e42   :  { %4621 = vmatpush3.bf16.msra.mxu1 %v4780_v14  ;;  %4624 = vmatprep.mubr.msk.bf16.mxu1 %vm4905_vm0, %v4904_v1 }
0x1e43   :  { %4622 = vmatprep.subr.bf16.mxu1 %v4904_v1  ;;  %4663 = vmatprep.subr.bf16.mxu0 %v4904_v1 }
0x1e44   :  { %v3227_v25 = vpop.f32.mrb[80].mxu0 }
0x1e45   :  { %v4618_v35 = vpop.f32.mrb[81].mxu0  ;;  %v3228_v43 = vadd.f32 %v4088_v34, %v3227_v25 }
0x1e46   :  { %v3230_v39 = vpop.f32.mrb[82].mxu0  ;;  %4623 = vmatpush3.bf16.msra.mxu1 %v4781_v23 }
0x1e47   :  { %v3231_v33 = vadd.f32 %v4088_v34, %v3230_v39  ;;  %v4619_v42 = vpop.f32.mrb[83].mxu0 }
0x1e49   :  { %4625 = vmatmul.mubr.msk.bf16.vlgmr.msra.gmra.mrb[84].mxu1 %vm75_vm1, %v5408_v41 }
0x1e4a   :  { %4640 = vmatprep.mubr.msk.f32.mxu1 %vm248_vm2, %v3228_v43 }
0x1e4c   :  { %v3359_v45 = vpop.f32.mrb[84].mxu0 }
0x1e4d   :  { %v4634_v46 = vpop.f32.mrb[85].mxu0  ;;  %v3360_v48 = vadd.f32 %v4106_v44, %v3359_v45 }
0x1e4e   :  { %v3362_v47 = vpop.f32.mrb[86].mxu0 }
0x1e4f   :  { %v3363_v49 = vadd.f32 %v4106_v44, %v3362_v47  ;;  %v4635_v37 = vpop.f32.mrb[87].mxu0  ;;  %v5709_v44 = vld [vmem:[%s5791_s9 + $0x8] sm:$0x3f] }
0x1e50   :  { %v3580_v45 = vrot.slane %v5709_v44, %v1686_v32 }
0x1e51   :  { %v3480_v26 = vpack.c.bf16 %v3363_v49, %v3360_v48 }
0x1f14   :  { %v3159_v40 = vpop.f32.mrb[80].mxu1 }
0x1f15   :  { %v5672_v50 = vadd.f32 %v3159_v40, %v5599_v12  ;;  %v4610_v51 = vpop.f32.mrb[81].mxu1 }
0x1f16   :  { %v3162_v52 = vpop.f32.mrb[82].mxu1 }
0x1f17   :  { %v5675_v41 = vadd.f32 %v3162_v52, %v5601_v20  ;;  %v4611_v53 = vpop.f32.mrb[83].mxu1 }
0x1f1c   :  { %v3293_v55 = vpop.f32.mrb[84].mxu1 }
0x1f1d   :  { %v4626_v56 = vpop.f32.mrb[85].mxu1  ;;  %v3294_v58 = vadd.f32 %v4097_v54, %v3293_v55 }
0x1f1e   :  { %v3296_v57 = vpop.f32.mrb[86].mxu1 }
0x1f1f   :  { %v3297_v59 = vadd.f32 %v4097_v54, %v3296_v57  ;;  %v4627_v7 = vpop.f32.mrb[87].mxu1 }
0x1f21   :  { %v4717_v60 = vpack.c.bf16 %v3297_v59, %v3294_v58 }
0x1f23   :  { %4719 = vmatprep.subr.msk.bf16.mxu1 %vm5022_vm3, %v4717_v60 }
0x1f24   :  { %4722 = vmatpush3.bf16.xpose.msk.msra.mxu1 %vm5022_vm3, %v4717_v60 }
0x1f25   :  { %4643 = vmatprep.subr.bf16.mxu1 %v4904_v1 }
0x1f2b   :  { %4641 = vmatmul.mubr.msk.f32.vlgmr.msra.gmra.mrb[78].mxu1 %vm248_vm2, %v3231_v33 }
0x1f2c   :  { %4644 = vmatpush3.bf16.msra.mxu1 %v3480_v26  ;;  %4645 = vmatprep.mubr.msk.bf16.mxu1 %vm4905_vm0, %v4904_v1 }
0x1f2d   :  { %4655 = vmatprep.subr.bf16.mxu1 %v4904_v1 }
0x1ffe   :  { %v4642_v12 = vpop.f32.mrb[78].mxu1 }
0x1fff   :  { %v3454_v20 = vmul.f32 0.35355338, %v4642_v12  ;;  %v3444_v61 = vpop.f32.mrb[79].mxu1  ;;  %v4783_v12 = vld [vmem:[%s5792_s10 + $0x18] sm:$0xff]  }
0x2000   :  { %v3453_v62 = vmul.f32 0.35355338, %v3444_v61 }
0x2001   :  { %v3456_v63 = vadd.f32 %v5485_v24, %v3454_v20 }
0x2002   :  { %v3455_v31 = vadd.f32 %v5491_v27, %v3453_v62 }
0x2003   :  { %v3460_v19 = vsel %vm340_vm4, %v3456_v63, -inf }
0x2004   :  { %3461 = vmax.xlane.f32.xlu1 %v3460_v19  ;;  %v3457_v2 = vsel %vm340_vm4, %v3455_v31, -inf }
0x2005   :  { %3458 = vmax.xlane.f32.xlu0 %v3457_v2  ;;  %v3614_v2 = vrot.slane %v5709_v44, %v1721_v0  ;;  %v4785_v0 = vld [vmem:[%s5794_s12 + $0x28] sm:$0xff]  }
0x2091   :  { %v3462_v3 = vpop.xlane.xlu1 %3461 }
0x2092   :  { %v3464_v4 = vsub.f32 %v3456_v63, %v3462_v3  ;;  %v3459_v6 = vpop.xlane.xlu0 %3458 }
0x2093   :  { %v3463_v8 = vsub.f32 %v3455_v31, %v3459_v6 }
0x2094   :  { %v3467_v9 = vmul.f32 1.442695, %v3464_v4 }
0x2095   :  { %v3465_v10 = vmul.f32 1.442695, %v3463_v8 }
0x2096   :  { %4856 = vpow2.f32 %v3467_v9 }
0x2097   :  { %4858 = vpow2.f32 %v3465_v10  ;;  %v3620_v10 = vrot.slane %v5709_v44, %v1727_v28  ;;  %v4786_v28 = vld [vmem:[%s5794_s12 + $0x30] sm:$0xff]  }
0x20a0   :  { %v4857_v11 = vpop.eup %4856 }
0x20a1   :  { %v4859_v15 = vpop.eup %4858  ;;  %v3472_v24 = vsel %vm340_vm4, %v4857_v11, 0.0 }
0x20a2   :  { %3473 = vadd.xlane.f32.xlu1 %v3472_v24  ;;  %v3469_v27 = vsel %vm340_vm4, %v4859_v15, 0.0 }
0x20a3   :  { %3470 = vadd.xlane.f32.xlu0 %v3469_v27 }
0x212f   :  { %v3474_v13 = vpop.xlane.xlu1 %3473 }
0x2130   :  { %4860 = vrcp.f32 %v3474_v13  ;;  %v3471_v14 = vpop.xlane.xlu0 %3470  ;;  %v4122_v13 = vld [vmem:[%s5793_s11 + $0x1] ss:$0 sm:$0xff]  ;;  %s4906_s11 = smov [#allocation2]  }
0x2131   :  { %4862 = vrcp.f32 %v3471_v14  ;;  %s3840_s12 = sshll.u32 %s4906_s11, 4  ;;  %s3841_s12 = int_to_ptr.vmem [resolvable:$true] %s3840_s12 }
0x2132   :  { %s4880_s4 = scalar_lea.vmem %s3841_s12, 256  ;;  %p4885_p1 = scmp.lt.s32.totalorder %s3841_s12, %s3841_s12 }
0x2133   :  { %p4881_p0 = scmp.ne.s32.totalorder %s3841_s12, %s4880_s4  ;;  %p4886_p2 = scmp.lt.s32.totalorder %s4880_s4, %s4880_s4 }
0x2135   :  { %p4887_p3 = por %p4886_p2, %p4885_p1 }
0x2137   :  { %p4888_p4 = pnand %p4887_p3, %p4881_p0 }
0x213a   :  { %v4861_v16 = vpop.eup %4860 }
0x213b   :  { %v4863_v22 = vpop.eup %4862  ;;  %v3478_v23 = vmul.f32 %v4861_v16, %v4857_v11 }
0x213c   :  { %v3477_v25 = vmul.f32 %v4863_v22, %v4859_v15 }
0x213e   :  { %v3479_v34 = vpack.c.bf16 %v3478_v23, %v3477_v25 }
0x2140   :  { %4646 = vmatmul.mubr.msk.bf16.vlgmr.msra.gmra.mrb[88].mxu1 %vm340_vm4, %v3479_v34 }
0x2141   :  { %4659 = vmatprep.mubr.msk.bf16.mxu1 %vm4905_vm0, %v4904_v1 }
0x2213   :  { %v3518_v35 = vpop.f32.mrb[88].mxu1 }
0x2214   :  { %v4647_v39 = vpop.f32.mrb[89].mxu1 }
0x2215   :  { %v3521_v33 = vpop.f32.mrb[90].mxu1 }
0x2216   :  { %v3525_v42 = vpack.c.bf16 %v3521_v33, %v3518_v35  ;;  %v4648_v43 = vpop.f32.mrb[91].mxu1 }
0x2218   :  { %4652 = vmatmul.mubr.msk.bf16.vlgmr.msra.gmra.mrb[88].mxu0 %vm248_vm2, %v3525_v42 }
0x2219   :  { %4671 = vmatprep.mubr.msk.bf16.mxu0 %vm4905_vm0, %v4904_v1  ;;  %4664 = vmatpush3.bf16.msra.mxu0 %v4784_v17  ;;  %v3830_v17 = vrot.slane %v5709_v44, %v1935_v21 }
0x221a   :  { %4665 = vmatprep.subr.bf16.mxu0 %v4904_v1 }
0x221d   :  { %4666 = vmatpush3.bf16.msra.mxu0 %v4785_v0 }
0x221e   :  { %4667 = vmatprep.subr.bf16.mxu0 %v4904_v1 }
0x2221   :  { %4668 = vmatpush3.bf16.msra.mxu0 %v4786_v28 }
0x2222   :  { %4669 = vmatprep.subr.bf16.mxu0 %v4904_v1 }
0x2225   :  { %4670 = vmatpush3.bf16.msra.mxu0 %v4787_v5 }
0x22eb   :  { %v3568_v46 = vpop.f32.mrb[88].mxu0 }
0x22ec   :  { %v3575_v47 = vadd.f32 %v3568_v46, %v5672_v50  ;;  %v4653_v48 = vpop.f32.mrb[89].mxu0 }
0x22ed   :  { %v3571_v49 = vpop.f32.mrb[90].mxu0 }
0x22ee   :  { %v3581_v37 = vadd.f32 %v3580_v45, %v3575_v47  ;;  %v3576_v26 = vadd.f32 %v3571_v49, %v5675_v41  ;;  %v4654_v40 = vpop.f32.mrb[91].mxu0 }
0x22f0   :  { %v3582_v51 = vadd.f32 %v3580_v45, %v3576_v26  ;;  %v3583_v52 = vadd.f32 %v3581_v37, %v5399_v36 }
0x22f2   :  { %v3585_v53 = vsel %vm75_vm1, %v3583_v52, 0.0  ;;  %v3584_v54 = vadd.f32 %v3582_v51, %v5401_v38  ;;  %v4782_v38 = vld [vmem:[%s5792_s10 + $0x10] sm:$0xff]  }
0x22f3   :  { %3586 = vadd.xlane.f32.xlu0 %v3585_v53  ;;  %4656 = vmatpush3.bf16.msra.mxu1 %v4782_v38 }
0x22f4   :  { %v3588_v55 = vsel %vm75_vm1, %v3584_v54, 0.0  ;;  %4657 = vmatprep.subr.bf16.mxu1 %v4904_v1 }
0x22f5   :  { %3589 = vadd.xlane.f32.xlu1 %v3588_v55 }
0x22f7   :  { %4658 = vmatpush3.bf16.msra.mxu1 %v4783_v12 }
0x2380   :  { %v3587_v32 = vpop.xlane.xlu0 %3586 }
0x2381   :  { %v3591_v56 = vmul.f32 0.03125, %v3587_v32  ;;  %v3724_v32 = vrot.slane %v5709_v44, %v1828_v30 }
0x2382   :  { %v3590_v50 = vpop.xlane.xlu1 %3589 }
0x2383   :  { %v3593_v57 = vsub.f32 %v3583_v52, %v3591_v56  ;;  %v3592_v58 = vmul.f32 0.03125, %v3590_v50 }
0x2385   :  { %v3594_v59 = vsub.f32 %v3584_v54, %v3592_v58  ;;  %v3595_v7 = vmul.f32 %v3593_v57, %v3593_v57 }
0x2387   :  { %v3597_v41 = vsel %vm75_vm1, %v3595_v7, 0.0  ;;  %v3596_v60 = vmul.f32 %v3594_v59, %v3594_v59 }
0x2388   :  { %3598 = vadd.xlane.f32.xlu0 %v3597_v41 }
0x2389   :  { %v3600_v36 = vsel %vm75_vm1, %v3596_v60, 0.0 }
0x238a   :  { %3601 = vadd.xlane.f32.xlu1 %v3600_v36 }
0x2415   :  { %v3599_v20 = vpop.xlane.xlu0 %3598 }
0x2416   :  { %v3603_v61 = vmul.f32 0.03125, %v3599_v20 }
0x2417   :  { %v3602_v62 = vpop.xlane.xlu1 %3601 }
0x2418   :  { %v3605_v63 = vadd.f32 1e-12, %v3603_v61  ;;  %v3604_v31 = vmul.f32 0.03125, %v3602_v62 }
0x241a   :  { %4864 = vrsqrt.f32 %v3605_v63  ;;  %v3606_v19 = vadd.f32 1e-12, %v3604_v31 }
0x241c   :  { %4866 = vrsqrt.f32 %v3606_v19 }
0x2424   :  { %v4865_v3 = vpop.eup %4864 }
0x2425   :  { %v3609_v4 = vmul.f32 %v4865_v3, %v3593_v57 }
0x2426   :  { %v4867_v6 = vpop.eup %4866 }
0x2427   :  { %v3615_v8 = vmul.f32 %v3614_v2, %v3609_v4  ;;  %v3610_v9 = vmul.f32 %v4867_v6, %v3594_v59 }
0x2429   :  { %v3616_v11 = vmul.f32 %v3614_v2, %v3610_v9  ;;  %v3621_v15 = vadd.f32 %v3620_v10, %v3615_v8 }
0x242b   :  { %v3622_v24 = vadd.f32 %v3620_v10, %v3616_v11 }
0x242d   :  { %v3623_v27 = vpack.c.bf16 %v3622_v24, %v3621_v15 }
0x242f   :  { %4660 = vmatmul.mubr.msk.bf16.vlgmr.msra.gmra.mrb[92].mxu1 %vm75_vm1, %v3623_v27 }
0x2502   :  { %v3686_v14 = vpop.f32.mrb[92].mxu1 }
0x2503   :  { %v3687_v16 = vadd.f32 %v4122_v13, %v3686_v14  ;;  %v4661_v22 = vpop.f32.mrb[93].mxu1 }
0x2504   :  { %v3689_v23 = vpop.f32.mrb[94].mxu1 }
0x2505   :  { %v3695_v25 = vmul.f32 0.044715, %v3687_v16  ;;  %v3690_v34 = vadd.f32 %v4122_v13, %v3689_v23  ;;  %v4662_v35 = vpop.f32.mrb[95].mxu1  ;;  %v3693_v40 = vmul.f32 0.5, %v3687_v16 }
0x2507   :  { %v3697_v39 = vmul.f32 %v3695_v25, %v3687_v16  ;;  %v3696_v33 = vmul.f32 0.044715, %v3690_v34  ;;  %v3694_v51 = vmul.f32 0.5, %v3690_v34 }
0x2509   :  { %v3699_v42 = vmul.f32 %v3697_v39, %v3687_v16  ;;  %v3698_v43 = vmul.f32 %v3696_v33, %v3690_v34 }
0x250b   :  { %v3701_v45 = vadd.f32 %v3699_v42, %v3687_v16  ;;  %v3700_v46 = vmul.f32 %v3698_v43, %v3690_v34 }
0x250d   :  { %v3703_v47 = vmul.f32 0.7978846, %v3701_v45  ;;  %v3702_v1 = vadd.f32 %v3700_v46, %v3690_v34 }
0x250f   :  { %4868 = vtanh.f32 %v3703_v47  ;;  %v3704_v48 = vmul.f32 0.7978846, %v3702_v1 }
0x2511   :  { %4870 = vtanh.f32 %v3704_v48 }
0x2519   :  { %v4869_v49 = vpop.eup %4868 }
0x251a   :  { %v3707_v37 = vadd.f32 1.0, %v4869_v49 }
0x251b   :  { %v4871_v26 = vpop.eup %4870 }
0x251c   :  { %v3708_v52 = vadd.f32 1.0, %v4871_v26  ;;  %v3709_v53 = vmul.f32 %v3707_v37, %v3693_v40 }
0x251e   :  { %v3710_v54 = vmul.f32 %v3708_v52, %v3694_v51 }
0x2520   :  { %v3711_v55 = vpack.c.bf16 %v3710_v54, %v3709_v53 }
0x2522   :  { %4672 = vmatmul.mubr.msk.bf16.vlgmr.msra.gmra.mrb[92].mxu0 %vm1854_vm6, %v3711_v55 }
0x25f5   :  { %v3786_v56 = vpop.f32.mrb[92].mxu0 }
0x25f6   :  { %v3787_v50 = vadd.f32 %v3786_v56, %v3724_v32  ;;  %v4673_v57 = vpop.f32.mrb[93].mxu0 }
0x25f7   :  { %v3789_v58 = vpop.f32.mrb[94].mxu0 }
0x25f8   :  { %v3790_v59 = vadd.f32 %v3789_v58, %v3724_v32  ;;  %v4674_v7 = vpop.f32.mrb[95].mxu0  ;;  %v3793_v41 = vadd.f32 %v3787_v50, %v3621_v15  ;;  %v3824_v15 = vrot.slane %v5709_v44, %v1929_v18 }
0x25fa   :  { %v3795_v60 = vsel %vm75_vm1, %v3793_v41, 0.0  ;;  %v3794_v36 = vadd.f32 %v3790_v59, %v3622_v24 }
0x25fb   :  { %3796 = vadd.xlane.f32.xlu0 %v3795_v60 }
0x25fc   :  { %v3798_v38 = vsel %vm75_vm1, %v3794_v36, 0.0 }
0x25fd   :  { %3799 = vadd.xlane.f32.xlu1 %v3798_v38 }
0x2688   :  { %v3797_v12 = vpop.xlane.xlu0 %3796 }
0x2689   :  { %v3801_v20 = vmul.f32 0.03125, %v3797_v12 }
0x268a   :  { %v3800_v61 = vpop.xlane.xlu1 %3799 }
0x268b   :  { %v3803_v62 = vsub.f32 %v3793_v41, %v3801_v20  ;;  %v3802_v63 = vmul.f32 0.03125, %v3800_v61 }
0x268d   :  { %v3804_v30 = vsub.f32 %v3794_v36, %v3802_v63  ;;  %v3805_v31 = vmul.f32 %v3803_v62, %v3803_v62 }
0x268f   :  { %v3807_v19 = vsel %vm75_vm1, %v3805_v31, 0.0  ;;  %v3806_v2 = vmul.f32 %v3804_v30, %v3804_v30 }
0x2690   :  { %3808 = vadd.xlane.f32.xlu0 %v3807_v19 }
0x2691   :  { %v3810_v3 = vsel %vm75_vm1, %v3806_v2, 0.0 }
0x2692   :  { %3811 = vadd.xlane.f32.xlu1 %v3810_v3 }
0x271d   :  { %v3809_v4 = vpop.xlane.xlu0 %3808 }
0x271e   :  { %v3813_v6 = vmul.f32 0.03125, %v3809_v4 }
0x271f   :  { %v3812_v8 = vpop.xlane.xlu1 %3811 }
0x2720   :  { %v3815_v9 = vadd.f32 1e-12, %v3813_v6  ;;  %v3814_v10 = vmul.f32 0.03125, %v3812_v8 }
0x2722   :  { %4872 = vrsqrt.f32 %v3815_v9  ;;  %v3816_v11 = vadd.f32 1e-12, %v3814_v10 }
0x2724   :  { %4874 = vrsqrt.f32 %v3816_v11 }
0x272c   :  { %v4873_v24 = vpop.eup %4872 }
0x272d   :  { %v3819_v27 = vmul.f32 %v4873_v24, %v3803_v62 }
0x272e   :  { %v4875_v0 = vpop.eup %4874 }
0x272f   :  { %v3820_v28 = vmul.f32 %v4875_v0, %v3804_v30  ;;  %v3825_v5 = vmul.f32 %v3824_v15, %v3819_v27 }
0x2731   :  { %v3826_v13 = vmul.f32 %v3824_v15, %v3820_v28  ;;  %v3831_v14 = vadd.f32 %v3830_v17, %v3825_v5 }
0x2733   :  { %v3832_v16 = vadd.f32 %v3830_v17, %v3826_v13  ;;  %3833 = vst.msk [vmem:[#allocation2] sm:$0xff] %vm75_vm1, %v3831_v14 }
0x2735   :  { %3834 = vst.msk [vmem:[#allocation2 + $0x8] sm:$0xff] %vm75_vm1, %v3832_v16 }
0x2736   :  { %4891 = shalt.err (!%p4888_p4)
}
0x2737   :  { %s4892_s28 = scalar_lea.hbm %s5795_s13, 256 }
0x2738   :  { %p4893_p5 = scmp.ne.s32.totalorder %s5795_s13, %s4892_s28  ;;  %p4896_p6 = scmp.lt.u32.totalorder %s4892_s28, %s5795_s13 }
0x273a   :  { %p4898_p7 = pnand %p4896_p6, %p4893_p5 }
0x273c   :  { %4901 = shalt.err (!%p4898_p7)
}
0x273d   :  { %s4907_s5 = smov 128   ;;  %s4908_s15 = smov 8  }
0x273e   :  { %3846 = dma.vmem_to_hbm [thread:$0]  %s3841_s12, 256, %s5795_s13, [#allocation3], %s4907_s5, %s4907_s5, %s4908_s15  }
0x273f   :  { %4902 = dma.done.wait [#allocation3], 256  }
0x2740   :  { %4903 = vsyncadd [#allocation3], 4294967040 }
0x2741   :  { %3850 = vsyncpa [#allocation3], 1 }

</bundles_post_ra>
